<compile_context>
chip_gen: v6e
topology: v6e:2x2x1
jax: 0.10.0
libtpu: 0.0.40
codegen_flags: <defaults>
</compile_context>

<pallas_src>
import functools

import jax
import jax.numpy as jnp
import numpy as np
from jax.experimental import pallas as pl
from jax.experimental.pallas import tpu as pltpu


# ----------------------------------------------------------------------------
# Small helpers
# ----------------------------------------------------------------------------
def _round_up(x, m):
    return (x + m - 1) // m * m


def _nbytes(shape, dtype):
    return int(np.prod(shape)) * np.dtype(dtype).itemsize


def _vmem_capacity_bytes():
    try:
        return int(pltpu.get_tpu_info().vmem_capacity_bytes)
    except Exception:
        return 128 * 1024 * 1024   # v5e/v6e default; v7x reports 64 MiB


def _compiler_params(step_block_bytes, temp_bytes):
    """Per-call VMEM budget: 2x (double-buffered I/O blocks) + in-kernel f32 temps."""
    cap = _vmem_capacity_bytes()
    want = 2 * step_block_bytes + temp_bytes + (4 << 20)
    limit = int(min(3 * cap // 4, max(32 << 20, want)))
    return pltpu.CompilerParams(
        dimension_semantics=("parallel",),       # batch-block axis; megacore on v7x
        vmem_limit_bytes=limit,
    )


def _cost(flops, arrays):
    return pl.CostEstimate(
        flops=int(flops), transcendentals=0,
        bytes_accessed=int(sum(_nbytes(s, d) for s, d in arrays)))


def _const_spec(shape):
    """Whole-array resident block (weights / masks / per-channel vectors)."""
    nd = len(shape)
    return pl.BlockSpec(shape, lambda g, _nd=nd: (0,) * _nd)


def _batch_spec(bb, rest):
    """Block of `bb` images: (bb, *rest), indexed by the single grid axis."""
    nrest = len(rest)
    return pl.BlockSpec((bb,) + tuple(rest),
                        lambda g, _n=nrest: (g,) + (0,) * _n)


# ----------------------------------------------------------------------------
# In-kernel 3x3 'same' conv via roll-commuted per-tap accumulation
# ----------------------------------------------------------------------------
def _conv3x3(sources, weight_lookup, mask_ref, w2, s):
    """sources: list of (C_k, S) operands; weight_lookup(k) -> matching (co, C_k) weights.

    For each tap: one matmul per source (f32 accumulation), then the (co, S) partial is
    rolled along the lane (spatial) axis and multiplied by the precomputed border mask.
    No (9*C, S) tap temporary is ever materialized.
    """
    acc = None
    for ky in range(3):
        for kx in range(3):
            k = ky * 3 + kx
            part = None
            for wmat, src in zip(weight_lookup(k), sources):
                d = jnp.dot(wmat, src, preferred_element_type=jnp.float32)
                part = d if part is None else part + d
            shift = ((1 - ky) * w2 + (1 - kx)) % s
            if shift:
                part = pltpu.roll(part, shift, 1)          # XLU, no HBM traffic
            if not (ky == 1 and kx == 1):
                part = part * mask_ref[k]                   # f32 mask on f32 partial
            acc = part if acc is None else acc + part
    return acc


# ----------------------------------------------------------------------------
# Pallas kernels (bb images per grid step; spatial axis is lane-dense)
# ----------------------------------------------------------------------------
def _convt_kernel(bb, t1_ref, wt_ref, bt_ref, yq_ref):
    """ConvTranspose2d(k=2, s=2): one (4*co_p, ci) x (ci, S/4) matmul -> 4 sub-pixel planes."""
    wt = wt_ref[...]
    bt = bt_ref[...]
    for b in range(bb):
        acc = jnp.dot(wt, t1_ref[b], preferred_element_type=jnp.float32)
        yq_ref[b] = (acc + bt).astype(yq_ref.dtype)


def _stage1_kernel(bb, w2, s,
                   mask_ref, y_ref, t2_ref,
                   wry_ref, wrt_ref, bres_ref, w1y_ref, w1t_ref, b1_ref,
                   ires_ref, a1_ref, s1_ref, ss1_ref):
    """res 1x1 conv + c1 3x3 conv + ReLU + per-image BN1 statistics.

    concat(y, t2) is implicit: weights are split per source and partials summed per tap.
    """
    wry = wry_ref[...]
    wrt = wrt_ref[...]
    bres = bres_ref[...]
    b1 = b1_ref[...]
    for b in range(bb):
        y = y_ref[b]           # (co_p, S) compute dtype
        t2 = t2_ref[b]         # (co2,  S)

        # residual 1x1 conv
        ires = (jnp.dot(wry, y, preferred_element_type=jnp.float32)
                + jnp.dot(wrt, t2, preferred_element_type=jnp.float32) + bres)
        ires_ref[b] = ires.astype(ires_ref.dtype)

        # 3x3 conv (roll-commuted accumulation), bias + ReLU in f32
        acc = _conv3x3([y, t2], lambda k: (w1y_ref[k], w1t_ref[k]),
                       mask_ref, w2, s)
        a1 = jnp.maximum(acc + b1, 0.0)
        a1c = a1.astype(a1_ref.dtype)
        a1_ref[b] = a1c
        a1f = a1c.astype(jnp.float32)          # stats consistent with what stage 2 reloads
        s1_ref[b] = jnp.sum(a1f, axis=1, keepdims=True)
        ss1_ref[b] = jnp.sum(a1f * a1f, axis=1, keepdims=True)


def _stage2_kernel(bb, w2, s,
                   mask_ref, a1_ref, sc1_ref, sh1_ref, w2t_ref, b2_ref,
                   a2_ref, s2_ref, ss2_ref):
    """BN1 affine (folded in, f32) + c2 3x3 conv + ReLU + per-image BN2 statistics."""
    sc1 = sc1_ref[...]
    sh1 = sh1_ref[...]
    b2 = b2_ref[...]
    for b in range(bb):
        h1 = a1_ref[b].astype(jnp.float32) * sc1 + sh1
        h1c = h1.astype(w2t_ref.dtype)         # cast only for the MXU operand
        acc = _conv3x3([h1c], lambda k: (w2t_ref[k],), mask_ref, w2, s)
        a2 = jnp.maximum(acc + b2, 0.0)
        a2c = a2.astype(a2_ref.dtype)
        a2_ref[b] = a2c
        a2f = a2c.astype(jnp.float32)
        s2_ref[b] = jnp.sum(a2f, axis=1, keepdims=True)
        ss2_ref[b] = jnp.sum(a2f * a2f, axis=1, keepdims=True)


def _finalize_kernel(a2_ref, sc2_ref, sh2_ref, ires_ref, out_ref):
    """BN2 affine + residual add (all f32, single store)."""
    out_ref[...] = (a2_ref[...].astype(jnp.float32) * sc2_ref[...]
                    + sh2_ref[...] + ires_ref[...].astype(jnp.float32))


# ----------------------------------------------------------------------------
# Forward pass
# ----------------------------------------------------------------------------
def upconvblock_forward(params, tensor1_nchw, tensor2_nchw, *,
                        batch_norm=True, eps=1e-3,
                        compute_dtype=jnp.bfloat16, images_per_step=None):
    f32 = jnp.float32
    cdt = compute_dtype
    cs = np.dtype(cdt).itemsize

    n, ci, h, w = tensor1_nchw.shape
    co = params['wt'].shape[1]
    co2 = tensor2_nchw.shape[1]
    cc = co + co2
    assert params['w_c1'].shape[1] == cc, "skip-tensor channels inconsistent with weights"
    h2, w2 = 2 * h, 2 * w
    s1 = h * w
    s = h2 * w2
    m_tot = n * s

    co_p = _round_up(co, 8)                   # sublane-pad output-channel dims

    # ---- images per grid step (amortize per-step overhead at small sizes) --------
    per_img = ((co_p + co2) + 3 * co_p) * s * max(cs, 4)
    if images_per_step is None:
        bb = 1
        for b in range(1, min(n, 4) + 1):
            if n % b == 0 and b * per_img <= (2 << 20):
                bb = b
    else:
        bb = int(images_per_step)
        assert n % bb == 0
    grid = (n // bb,)

    # ---- pack parameters into MXU-friendly matrices (padded to co_p) --------------
    def _padc(x, axis, target, value=0.0):
        padw = [(0, 0)] * x.ndim
        padw[axis] = (0, target - x.shape[axis])
        return jnp.pad(x, padw, constant_values=value)

    # ConvTranspose2d(k=2, s=2): rows packed (a, b, o)
    wt = _padc(params['wt'], 1, co_p)                                   # (ci, co_p, 2, 2)
    wt_pack = jnp.transpose(wt, (2, 3, 1, 0)).reshape(4 * co_p, ci).astype(cdt)
    bt4 = jnp.tile(_padc(params['bt'], 0, co_p), 4).reshape(4 * co_p, 1).astype(f32)

    # residual 1x1 conv, split across the implicit concat([y, t2])
    w_res = _padc(params['w_res'][:, :, 0, 0], 0, co_p)                 # (co_p, cc)
    wres_y = _padc(w_res[:, :co], 1, co_p).astype(cdt)                  # (co_p, co_p)
    wres_t = w_res[:, co:].astype(cdt)                                  # (co_p, co2)
    bres = _padc(params['b_res'], 0, co_p).reshape(co_p, 1).astype(f32)

    # c1 3x3 conv: per-tap (9, co_p, K) weights, k = ky*3 + kx, split across [y | t2]
    w_c1 = _padc(params['w_c1'], 0, co_p)                               # (co_p, cc, 3, 3)
    w1y = _padc(w_c1[:, :co], 1, co_p)
    w1y = jnp.transpose(w1y, (2, 3, 0, 1)).reshape(9, co_p, co_p).astype(cdt)
    w1t = jnp.transpose(w_c1[:, co:], (2, 3, 0, 1)).reshape(9, co_p, co2).astype(cdt)
    b1 = _padc(params['b_c1'], 0, co_p).reshape(co_p, 1).astype(f32)

    w_c2 = _padc(_padc(params['w_c2'], 0, co_p), 1, co_p)               # (co_p, co_p, 3, 3)
    w2t = jnp.transpose(w_c2, (2, 3, 0, 1)).reshape(9, co_p, co_p).astype(cdt)
    b2 = _padc(params['b_c2'], 0, co_p).reshape(co_p, 1).astype(f32)

    g1 = _padc(params['g1'], 0, co_p, 1.0)
    be1 = _padc(params['be1'], 0, co_p)
    g2 = _padc(params['g2'], 0, co_p, 1.0)
    be2 = _padc(params['be2'], 0, co_p)

    # ---- precomputed border masks for the 3x3 'same' conv (resident f32 input) ----
    idx = np.arange(s)
    row, col = idx // w2, idx % w2
    ones = np.ones(s, dtype=bool)
    rcond = [row >= 1, ones, row <= h2 - 2]
    ccond = [col >= 1, ones, col <= w2 - 2]
    masks_np = np.stack([rcond[ky] & ccond[kx]
                         for ky in range(3) for kx in range(3)], axis=0)
    masks = jnp.asarray(masks_np.astype(np.float32).reshape(9, 1, s))

    # ---- channel-major activations: (N, C, H*W), spatial on the lane axis ---------
    t1 = tensor1_nchw.reshape(n, ci, s1).astype(cdt)
    t2 = tensor2_nchw.reshape(n, co2, s).astype(cdt)

    # ---- ConvTranspose2d(k=2, s=2): one matmul per image --------------------------
    convt_blocks = (_nbytes((bb, ci, s1), cdt) + _nbytes((4 * co_p, ci), cdt)
                    + _nbytes((4 * co_p, 1), f32) + _nbytes((bb, 4 * co_p, s1), cdt))
    yq = pl.pallas_call(
        functools.partial(_convt_kernel, bb),
        grid=grid,
        in_specs=[_batch_spec(bb, (ci, s1)),
                  _const_spec((4 * co_p, ci)),
                  _const_spec((4 * co_p, 1))],
        out_specs=_batch_spec(bb, (4 * co_p, s1)),
        out_shape=jax.ShapeDtypeStruct((n, 4 * co_p, s1), cdt),
        compiler_params=_compiler_params(convt_blocks, bb * 4 * co_p * s1 * 4),
        cost_estimate=_cost(2 * n * s1 * ci * 4 * co_p,
                            [((n, ci, s1), cdt), ((4 * co_p, ci), cdt),
                             ((n, 4 * co_p, s1), cdt)]),
    )(t1, wt_pack, bt4)

    # sub-pixel interleave of the 4 quarter-resolution planes (one XLA pass, cdt)
    y = (yq.reshape(n, 2, 2, co_p, h, w)
           .transpose(0, 3, 4, 1, 5, 2)
           .reshape(n, co_p, s))

    # ---- stage 1: res 1x1 + c1 3x3 + ReLU + per-image BN1 sums --------------------
    st1_blocks = (_nbytes((9, 1, s), f32)
                  + _nbytes((bb, co_p, s), cdt) + _nbytes((bb, co2, s), cdt)
                  + _nbytes((9, co_p, co_p), cdt) + _nbytes((9, co_p, co2), cdt)
                  + _nbytes((co_p, co_p), cdt) + _nbytes((co_p, co2), cdt)
                  + 3 * _nbytes((co_p, 1), f32)
                  + 2 * _nbytes((bb, co_p, s), cdt) + 2 * _nbytes((bb, co_p, 1), f32))
    ires, a1, s1n, ss1n = pl.pallas_call(
        functools.partial(_stage1_kernel, bb, w2, s),
        grid=grid,
        in_specs=[_const_spec((9, 1, s)),
                  _batch_spec(bb, (co_p, s)), _batch_spec(bb, (co2, s)),
                  _const_spec((co_p, co_p)), _const_spec((co_p, co2)),
                  _const_spec((co_p, 1)),
                  _const_spec((9, co_p, co_p)), _const_spec((9, co_p, co2)),
                  _const_spec((co_p, 1))],
        out_specs=(_batch_spec(bb, (co_p, s)), _batch_spec(bb, (co_p, s)),
                   _batch_spec(bb, (co_p, 1)), _batch_spec(bb, (co_p, 1))),
        out_shape=(jax.ShapeDtypeStruct((n, co_p, s), cdt),     # residual branch (bf16)
                   jax.ShapeDtypeStruct((n, co_p, s), cdt),     # relu(c1(x))      (bf16)
                   jax.ShapeDtypeStruct((n, co_p, 1), f32),     # per-image sum
                   jax.ShapeDtypeStruct((n, co_p, 1), f32)),    # per-image sum of squares
        compiler_params=_compiler_params(st1_blocks, 3 * bb * co_p * s * 4),
        cost_estimate=_cost(2 * m_tot * co_p * 10 * (co_p + co2),
                            [((n, co_p, s), cdt), ((n, co2, s), cdt), ((9, 1, s), f32),
                             ((n, co_p, s), cdt), ((n, co_p, s), cdt),
                             ((n, co_p, 1), f32), ((n, co_p, 1), f32)]),
    )(masks, y, t2, wres_y, wres_t, bres, w1y, w1t, b1)

    # ---- finalize global (training-mode) BN statistics (tiny XLA glue) ------------
    def _bn_affine(sum_n, sumsq_n, gamma, beta):
        tot = jnp.sum(sum_n, axis=0)                        # (co_p, 1)
        tot2 = jnp.sum(sumsq_n, axis=0)
        mean = tot / m_tot
        var = jnp.maximum(tot2 / m_tot - mean * mean, 0.0)  # biased variance
        scale = gamma.reshape(co_p, 1).astype(f32) * jax.lax.rsqrt(var + eps)
        shift = beta.reshape(co_p, 1).astype(f32) - mean * scale
        return scale, shift

    if batch_norm:
        sc1, sh1 = _bn_affine(s1n, ss1n, g1, be1)
    else:
        sc1 = jnp.ones((co_p, 1), f32)
        sh1 = jnp.zeros((co_p, 1), f32)

    # ---- stage 2: BN1 affine + c2 3x3 + ReLU + per-image BN2 sums -----------------
    st2_blocks = (_nbytes((9, 1, s), f32) + _nbytes((bb, co_p, s), cdt)
                  + _nbytes((9, co_p, co_p), cdt) + 3 * _nbytes((co_p, 1), f32)
                  + _nbytes((bb, co_p, s), cdt) + 2 * _nbytes((bb, co_p, 1), f32))
    a2, s2n, ss2n = pl.pallas_call(
        functools.partial(_stage2_kernel, bb, w2, s),
        grid=grid,
        in_specs=[_const_spec((9, 1, s)), _batch_spec(bb, (co_p, s)),
                  _const_spec((co_p, 1)), _const_spec((co_p, 1)),
                  _const_spec((9, co_p, co_p)), _const_spec((co_p, 1))],
        out_specs=(_batch_spec(bb, (co_p, s)),
                   _batch_spec(bb, (co_p, 1)), _batch_spec(bb, (co_p, 1))),
        out_shape=(jax.ShapeDtypeStruct((n, co_p, s), cdt),
                   jax.ShapeDtypeStruct((n, co_p, 1), f32),
                   jax.ShapeDtypeStruct((n, co_p, 1), f32)),
        compiler_params=_compiler_params(st2_blocks, 3 * bb * co_p * s * 4),
        cost_estimate=_cost(2 * m_tot * co_p * 9 * co_p,
                            [((n, co_p, s), cdt), ((9, 1, s), f32),
                             ((n, co_p, s), cdt),
                             ((n, co_p, 1), f32), ((n, co_p, 1), f32)]),
    )(masks, a1, sc1, sh1, w2t, b2)

    if batch_norm:
        sc2, sh2 = _bn_affine(s2n, ss2n, g2, be2)
    else:
        sc2 = jnp.ones((co_p, 1), f32)
        sh2 = jnp.zeros((co_p, 1), f32)

    # ---- BN2 affine + residual add ------------------------------------------------
    fin_blocks = (2 * _nbytes((bb, co_p, s), cdt) + 2 * _nbytes((co_p, 1), f32)
                  + _nbytes((bb, co_p, s), f32))
    out = pl.pallas_call(
        _finalize_kernel,
        grid=grid,
        in_specs=[_batch_spec(bb, (co_p, s)),
                  _const_spec((co_p, 1)), _const_spec((co_p, 1)),
                  _batch_spec(bb, (co_p, s))],
        out_specs=_batch_spec(bb, (co_p, s)),
        out_shape=jax.ShapeDtypeStruct((n, co_p, s), f32),
        compiler_params=_compiler_params(fin_blocks, bb * co_p * s * 4),
        cost_estimate=_cost(4 * m_tot * co_p,
                            [((n, co_p, s), cdt), ((n, co_p, s), cdt),
                             ((n, co_p, s), f32)]),
    )(a2, sc2, sh2, ires)

    return out[:, :co, :].reshape(n, co, h2, w2)        # NCHW


# ----------------------------------------------------------------------------
# Deterministic parameter init (shapes follow the PyTorch module's __init__)
# ----------------------------------------------------------------------------
def init_params(key, in_size, out_size):
    ks = jax.random.split(key, 12)
    return {
        'wt':    0.1 * jax.random.normal(ks[0], (in_size, out_size, 2, 2), jnp.float32),
        'bt':    0.05 * jax.random.normal(ks[1], (out_size,), jnp.float32),
        'w_res': 0.1 * jax.random.normal(ks[2], (out_size, in_size, 1, 1), jnp.float32),
        'b_res': 0.05 * jax.random.normal(ks[3], (out_size,), jnp.float32),
        'w_c1':  0.1 * jax.random.normal(ks[4], (out_size, in_size, 3, 3), jnp.float32),
        'b_c1':  0.05 * jax.random.normal(ks[5], (out_size,), jnp.float32),
        'g1':    1.0 + 0.1 * jax.random.normal(ks[6], (out_size,), jnp.float32),
        'be1':   0.1 * jax.random.normal(ks[7], (out_size,), jnp.float32),
        'w_c2':  0.1 * jax.random.normal(ks[8], (out_size, out_size, 3, 3), jnp.float32),
        'b_c2':  0.05 * jax.random.normal(ks[9], (out_size,), jnp.float32),
        'g2':    1.0 + 0.1 * jax.random.normal(ks[10], (out_size,), jnp.float32),
        'be2':   0.1 * jax.random.normal(ks[11], (out_size,), jnp.float32),
    }


# ----------------------------------------------------------------------------
# Pure-JAX reference (mirrors PyTorch semantics directly, NCHW, float32)
# ----------------------------------------------------------------------------
def _ref_conv2d(x, w, b, pad):
    n, ci, h, ww = x.shape
    co, _, kh, kw = w.shape
    xp = jnp.pad(x, ((0, 0), (0, 0), (pad, pad), (pad, pad)))
    oh = h + 2 * pad - kh + 1
    ow = ww + 2 * pad - kw + 1
    patches = jnp.stack([xp[:, :, ky:ky + oh, kx:kx + ow]
                         for ky in range(kh) for kx in range(kw)], axis=0)
    wf = jnp.transpose(w, (2, 3, 0, 1)).reshape(kh * kw, co, ci)
    return jnp.einsum('knchw,koc->nohw', patches, wf) + b[None, :, None, None]


def _ref_bn_train(x, gamma, beta, eps):
    mean = x.mean(axis=(0, 2, 3), keepdims=True)
    var = ((x - mean) ** 2).mean(axis=(0, 2, 3), keepdims=True)
    return (x - mean) / jnp.sqrt(var + eps) * gamma[None, :, None, None] \
        + beta[None, :, None, None]


def ref_forward(params, t1, t2, batch_norm=True, eps=1e-3):
    y = jnp.einsum('nchw,cokl->nohkwl', t1, params['wt'])
    n, co, h, _, w, _ = y.shape
    y = y.reshape(n, co, 2 * h, 2 * w) + params['bt'][None, :, None, None]
    x = jnp.concatenate([y, t2], axis=1)
    i = _ref_conv2d(x, params['w_res'], params['b_res'], pad=0)
    hx = jnp.maximum(_ref_conv2d(x, params['w_c1'], params['b_c1'], pad=1), 0.0)
    if batch_norm:
        hx = _ref_bn_train(hx, params['g1'], params['be1'], eps)
    hx = jnp.maximum(_ref_conv2d(hx, params['w_c2'], params['b_c2'], pad=1), 0.0)
    if batch_norm:
        hx = _ref_bn_train(hx, params['g2'], params['be2'], eps)
    return hx + i


# ----------------------------------------------------------------------------
if __name__ == "__main__":
    key = jax.random.PRNGKey(0)
    kp, k1, k2 = jax.random.split(key, 3)

    in_size, out_size = 8, 4          # UpConvBlock(in_size=8, out_size=4, batch_norm=True)
    N, H, W = 2, 8, 8                 # tensor1 spatial; tensor2 is the 2x-resolution skip

    params = init_params(kp, in_size, out_size)
    tensor1 = jax.random.normal(k1, (N, in_size, H, W), jnp.float32)
    tensor2 = jax.random.normal(k2, (N, out_size, 2 * H, 2 * W), jnp.float32)

    ref = ref_forward(params, tensor1, tensor2, batch_norm=True)

    # correctness check: f32 compute path
    fwd_f32 = jax.jit(functools.partial(upconvblock_forward,
                                        batch_norm=True, compute_dtype=jnp.float32))
    out_f32 = jax.block_until_ready(fwd_f32(params, tensor1, tensor2))
    np.testing.assert_allclose(np.asarray(out_f32), np.asarray(ref), atol=2e-2, rtol=2e-2)

    # performance path: bf16 matmul operands / intermediates, f32 accumulation & BN stats
    fwd_bf16 = jax.jit(functools.partial(upconvblock_forward,
                                         batch_norm=True, compute_dtype=jnp.bfloat16))
    out_bf16 = jax.block_until_ready(fwd_bf16(params, tensor1, tensor2))
    np.testing.assert_allclose(np.asarray(out_bf16), np.asarray(ref), atol=6e-2, rtol=6e-2)

    print("KERNEL_OK")
</pallas_src>

<mosaic_0001>
module attributes {stable_mosaic.version = 11 : i64} {
  func.func @_convt_kernel(%arg0: i32, %arg1: memref<2x8x64xf32, #tpu.memory_space<vmem>>, %arg2: memref<32x8xf32, #tpu.memory_space<vmem>>, %arg3: memref<32x1xf32, #tpu.memory_space<vmem>>, %arg4: memref<2x32x64xf32, #tpu.memory_space<vmem>>) attributes {dimension_semantics = [#tpu.dimension_semantics<parallel>], iteration_bounds = array<i64: 1>, scalar_prefetch = 0 : i64, scratch_operands = 0 : i64, tpu.core_type = #tpu.core_type<tc>, window_params = [{transform_indices = @transform_0, window_bounds = array<i64: 2, 8, 64>}, {pipeline_mode = #tpu.pipeline_mode<synchronous>, transform_indices = @transform_1, window_bounds = array<i64: 32, 8>}, {pipeline_mode = #tpu.pipeline_mode<synchronous>, transform_indices = @transform_2, window_bounds = array<i64: 32, 1>}, {transform_indices = @transform_3, window_bounds = array<i64: 2, 32, 64>}]} {
    %c0 = arith.constant 0 : index
    %c0_0 = arith.constant 0 : index
    %0 = vector.load %arg2[%c0, %c0_0] : memref<32x8xf32, #tpu.memory_space<vmem>>, vector<32x8xf32>
    %c0_1 = arith.constant 0 : index
    %c0_2 = arith.constant 0 : index
    %1 = vector.load %arg3[%c0_1, %c0_2] : memref<32x1xf32, #tpu.memory_space<vmem>>, vector<32x1xf32>
    %c0_3 = arith.constant 0 : index
    %c0_4 = arith.constant 0 : index
    %c0_5 = arith.constant 0 : index
    %2 = vector.load %arg1[%c0_3, %c0_4, %c0_5] : memref<2x8x64xf32, #tpu.memory_space<vmem>>, vector<1x8x64xf32>
    %3 = vector.shape_cast %2 : vector<1x8x64xf32> to vector<8x64xf32>
    %cst = arith.constant dense<0.000000e+00> : vector<32x64xf32>
    %4 = tpu.matmul %0, %3, %cst {dimension_numbers = #tpu.dot_dimension_numbers<[1], [0], [0], [1], [0, 0, 1, 1], [], []>} : vector<32x8xf32>, vector<8x64xf32>, vector<32x64xf32> -> vector<32x64xf32>
    %5 = vector.broadcast %1 : vector<32x1xf32> to vector<32x64xf32>
    %6 = arith.addf %4, %5 : vector<32x64xf32>
    %c0_6 = arith.constant 0 : index
    %c0_7 = arith.constant 0 : index
    %c0_8 = arith.constant 0 : index
    %7 = vector.load %arg4[%c0_6, %c0_7, %c0_8] : memref<2x32x64xf32, #tpu.memory_space<vmem>>, vector<1x32x64xf32>
    %8 = vector.shape_cast %7 : vector<1x32x64xf32> to vector<32x64xf32>
    %9 = vector.shape_cast %6 : vector<32x64xf32> to vector<1x32x64xf32>
    tpu.vector_store %arg4[%c0_6, %c0_7, %c0_8], %9 {strides = array<i32>} : memref<2x32x64xf32, #tpu.memory_space<vmem>>, vector<1x32x64xf32>,
    %c1 = arith.constant 1 : index
    %c0_9 = arith.constant 0 : index
    %c0_10 = arith.constant 0 : index
    %10 = vector.load %arg1[%c1, %c0_9, %c0_10] : memref<2x8x64xf32, #tpu.memory_space<vmem>>, vector<1x8x64xf32>
    %11 = vector.shape_cast %10 : vector<1x8x64xf32> to vector<8x64xf32>
    %cst_11 = arith.constant dense<0.000000e+00> : vector<32x64xf32>
    %12 = tpu.matmul %0, %11, %cst_11 {dimension_numbers = #tpu.dot_dimension_numbers<[1], [0], [0], [1], [0, 0, 1, 1], [], []>} : vector<32x8xf32>, vector<8x64xf32>, vector<32x64xf32> -> vector<32x64xf32>
    %13 = vector.broadcast %1 : vector<32x1xf32> to vector<32x64xf32>
    %14 = arith.addf %12, %13 : vector<32x64xf32>
    %c1_12 = arith.constant 1 : index
    %c0_13 = arith.constant 0 : index
    %c0_14 = arith.constant 0 : index
    %15 = vector.load %arg4[%c1_12, %c0_13, %c0_14] : memref<2x32x64xf32, #tpu.memory_space<vmem>>, vector<1x32x64xf32>
    %16 = vector.shape_cast %15 : vector<1x32x64xf32> to vector<32x64xf32>
    %17 = vector.shape_cast %14 : vector<32x64xf32> to vector<1x32x64xf32>
    tpu.vector_store %arg4[%c1_12, %c0_13, %c0_14], %17 {strides = array<i32>} : memref<2x32x64xf32, #tpu.memory_space<vmem>>, vector<1x32x64xf32>,
    return
  }
  func.func @transform_0(%arg0: i32) -> (i32, i32, i32) {
    %c0_i32 = arith.constant 0 : i32
    %c0_i32_0 = arith.constant 0 : i32
    %c0_i32_1 = arith.constant 0 : i32
    return %arg0, %c0_i32, %c0_i32_0 : i32, i32, i32
  }
  func.func @transform_1(%arg0: i32) -> (i32, i32) {
    %c0_i32 = arith.constant 0 : i32
    %c0_i32_0 = arith.constant 0 : i32
    %c0_i32_1 = arith.constant 0 : i32
    return %c0_i32, %c0_i32_0 : i32, i32
  }
  func.func @transform_2(%arg0: i32) -> (i32, i32) {
    %c0_i32 = arith.constant 0 : i32
    %c0_i32_0 = arith.constant 0 : i32
    %c0_i32_1 = arith.constant 0 : i32
    return %c0_i32, %c0_i32_0 : i32, i32
  }
  func.func @transform_3(%arg0: i32) -> (i32, i32, i32) {
    %c0_i32 = arith.constant 0 : i32
    %c0_i32_0 = arith.constant 0 : i32
    %c0_i32_1 = arith.constant 0 : i32
    return %arg0, %c0_i32, %c0_i32_0 : i32, i32, i32
  }
}

module attributes {stable_mosaic.version = 11 : i64} {
  func.func @_finalize_kernel(%arg0: i32, %arg1: memref<2x8x256xf32, #tpu.memory_space<vmem>>, %arg2: memref<8x1xf32, #tpu.memory_space<vmem>>, %arg3: memref<8x1xf32, #tpu.memory_space<vmem>>, %arg4: memref<2x8x256xf32, #tpu.memory_space<vmem>>, %arg5: memref<2x8x256xf32, #tpu.memory_space<vmem>>) attributes {dimension_semantics = [#tpu.dimension_semantics<parallel>], iteration_bounds = array<i64: 1>, scalar_prefetch = 0 : i64, scratch_operands = 0 : i64, tpu.core_type = #tpu.core_type<tc>, window_params = [{transform_indices = @transform_0, window_bounds = array<i64: 2, 8, 256>}, {pipeline_mode = #tpu.pipeline_mode<synchronous>, transform_indices = @transform_1, window_bounds = array<i64: 8, 1>}, {pipeline_mode = #tpu.pipeline_mode<synchronous>, transform_indices = @transform_2, window_bounds = array<i64: 8, 1>}, {transform_indices = @transform_3, window_bounds = array<i64: 2, 8, 256>}, {transform_indices = @transform_4, window_bounds = array<i64: 2, 8, 256>}]} {
    %c0 = arith.constant 0 : index
    %c0_0 = arith.constant 0 : index
    %c0_1 = arith.constant 0 : index
    %0 = vector.load %arg1[%c0, %c0_0, %c0_1] : memref<2x8x256xf32, #tpu.memory_space<vmem>>, vector<2x8x256xf32>
    %c0_2 = arith.constant 0 : index
    %c0_3 = arith.constant 0 : index
    %1 = vector.load %arg2[%c0_2, %c0_3] : memref<8x1xf32, #tpu.memory_space<vmem>>, vector<8x1xf32>
    %2 = vector.shape_cast %1 : vector<8x1xf32> to vector<1x8x1xf32>
    %3 = vector.broadcast %2 : vector<1x8x1xf32> to vector<2x8x256xf32>
    %4 = arith.mulf %0, %3 : vector<2x8x256xf32>
    %c0_4 = arith.constant 0 : index
    %c0_5 = arith.constant 0 : index
    %5 = vector.load %arg3[%c0_4, %c0_5] : memref<8x1xf32, #tpu.memory_space<vmem>>, vector<8x1xf32>
    %6 = vector.shape_cast %5 : vector<8x1xf32> to vector<1x8x1xf32>
    %7 = vector.broadcast %6 : vector<1x8x1xf32> to vector<2x8x256xf32>
    %8 = arith.addf %4, %7 : vector<2x8x256xf32>
    %c0_6 = arith.constant 0 : index
    %c0_7 = arith.constant 0 : index
    %c0_8 = arith.constant 0 : index
    %9 = vector.load %arg4[%c0_6, %c0_7, %c0_8] : memref<2x8x256xf32, #tpu.memory_space<vmem>>, vector<2x8x256xf32>
    %10 = arith.addf %8, %9 : vector<2x8x256xf32>
    %c0_9 = arith.constant 0 : index
    %c0_10 = arith.constant 0 : index
    %c0_11 = arith.constant 0 : index
    %11 = vector.load %arg5[%c0_9, %c0_10, %c0_11] : memref<2x8x256xf32, #tpu.memory_space<vmem>>, vector<2x8x256xf32>
    tpu.vector_store %arg5[%c0_9, %c0_10, %c0_11], %10 {strides = array<i32>} : memref<2x8x256xf32, #tpu.memory_space<vmem>>, vector<2x8x256xf32>,
    return
  }
  func.func @transform_0(%arg0: i32) -> (i32, i32, i32) {
    %c0_i32 = arith.constant 0 : i32
    %c0_i32_0 = arith.constant 0 : i32
    %c0_i32_1 = arith.constant 0 : i32
    return %arg0, %c0_i32, %c0_i32_0 : i32, i32, i32
  }
  func.func @transform_1(%arg0: i32) -> (i32, i32) {
    %c0_i32 = arith.constant 0 : i32
    %c0_i32_0 = arith.constant 0 : i32
    %c0_i32_1 = arith.constant 0 : i32
    return %c0_i32, %c0_i32_0 : i32, i32
  }
  func.func @transform_2(%arg0: i32) -> (i32, i32) {
    %c0_i32 = arith.constant 0 : i32
    %c0_i32_0 = arith.constant 0 : i32
    %c0_i32_1 = arith.constant 0 : i32
    return %c0_i32, %c0_i32_0 : i32, i32
  }
  func.func @transform_3(%arg0: i32) -> (i32, i32, i32) {
    %c0_i32 = arith.constant 0 : i32
    %c0_i32_0 = arith.constant 0 : i32
    %c0_i32_1 = arith.constant 0 : i32
    return %arg0, %c0_i32, %c0_i32_0 : i32, i32, i32
  }
  func.func @transform_4(%arg0: i32) -> (i32, i32, i32) {
    %c0_i32 = arith.constant 0 : i32
    %c0_i32_0 = arith.constant 0 : i32
    %c0_i32_1 = arith.constant 0 : i32
    return %arg0, %c0_i32, %c0_i32_0 : i32, i32, i32
  }
}

module attributes {stable_mosaic.version = 11 : i64} {
  func.func @_stage1_kernel(%arg0: i32, %arg1: memref<9x1x256xf32, #tpu.memory_space<vmem>>, %arg2: memref<2x8x256xf32, #tpu.memory_space<vmem>>, %arg3: memref<2x4x256xf32, #tpu.memory_space<vmem>>, %arg4: memref<8x8xf32, #tpu.memory_space<vmem>>, %arg5: memref<8x4xf32, #tpu.memory_space<vmem>>, %arg6: memref<8x1xf32, #tpu.memory_space<vmem>>, %arg7: memref<9x8x8xf32, #tpu.memory_space<vmem>>, %arg8: memref<9x8x4xf32, #tpu.memory_space<vmem>>, %arg9: memref<8x1xf32, #tpu.memory_space<vmem>>, %arg10: memref<2x8x256xf32, #tpu.memory_space<vmem>>, %arg11: memref<2x8x256xf32, #tpu.memory_space<vmem>>, %arg12: memref<2x8x1xf32, #tpu.memory_space<vmem>>, %arg13: memref<2x8x1xf32, #tpu.memory_space<vmem>>) attributes {dimension_semantics = [#tpu.dimension_semantics<parallel>], iteration_bounds = array<i64: 1>, scalar_prefetch = 0 : i64, scratch_operands = 0 : i64, tpu.core_type = #tpu.core_type<tc>, window_params = [{pipeline_mode = #tpu.pipeline_mode<synchronous>, transform_indices = @transform_0, window_bounds = array<i64: 9, 1, 256>}, {transform_indices = @transform_1, window_bounds = array<i64: 2, 8, 256>}, {transform_indices = @transform_2, window_bounds = array<i64: 2, 4, 256>}, {pipeline_mode = #tpu.pipeline_mode<synchronous>, transform_indices = @transform_3, window_bounds = array<i64: 8, 8>}, {pipeline_mode = #tpu.pipeline_mode<synchronous>, transform_indices = @transform_4, window_bounds = array<i64: 8, 4>}, {pipeline_mode = #tpu.pipeline_mode<synchronous>, transform_indices = @transform_5, window_bounds = array<i64: 8, 1>}, {pipeline_mode = #tpu.pipeline_mode<synchronous>, transform_indices = @transform_6, window_bounds = array<i64: 9, 8, 8>}, {pipeline_mode = #tpu.pipeline_mode<synchronous>, transform_indices = @transform_7, window_bounds = array<i64: 9, 8, 4>}, {pipeline_mode = #tpu.pipeline_mode<synchronous>, transform_indices = @transform_8, window_bounds = array<i64: 8, 1>}, {transform_indices = @transform_9, window_bounds = array<i64: 2, 8, 256>}, {transform_indices = @transform_10, window_bounds = array<i64: 2, 8, 256>}, {transform_indices = @transform_11, window_bounds = array<i64: 2, 8, 1>}, {transform_indices = @transform_12, window_bounds = array<i64: 2, 8, 1>}]} {
    %c0 = arith.constant 0 : index
    %c0_0 = arith.constant 0 : index
    %0 = vector.load %arg4[%c0, %c0_0] : memref<8x8xf32, #tpu.memory_space<vmem>>, vector<8x8xf32>
    %c0_1 = arith.constant 0 : index
    %c0_2 = arith.constant 0 : index
    %1 = vector.load %arg5[%c0_1, %c0_2] : memref<8x4xf32, #tpu.memory_space<vmem>>, vector<8x4xf32>
    %c0_3 = arith.constant 0 : index
    %c0_4 = arith.constant 0 : index
    %2 = vector.load %arg6[%c0_3, %c0_4] : memref<8x1xf32, #tpu.memory_space<vmem>>, vector<8x1xf32>
    %c0_5 = arith.constant 0 : index
    %c0_6 = arith.constant 0 : index
    %3 = vector.load %arg9[%c0_5, %c0_6] : memref<8x1xf32, #tpu.memory_space<vmem>>, vector<8x1xf32>
    %c0_7 = arith.constant 0 : index
    %c0_8 = arith.constant 0 : index
    %c0_9 = arith.constant 0 : index
    %4 = vector.load %arg2[%c0_7, %c0_8, %c0_9] : memref<2x8x256xf32, #tpu.memory_space<vmem>>, vector<1x8x256xf32>
    %5 = vector.shape_cast %4 : vector<1x8x256xf32> to vector<8x256xf32>
    %c0_10 = arith.constant 0 : index
    %c0_11 = arith.constant 0 : index
    %c0_12 = arith.constant 0 : index
    %6 = vector.load %arg3[%c0_10, %c0_11, %c0_12] : memref<2x4x256xf32, #tpu.memory_space<vmem>>, vector<1x4x256xf32>
    %7 = vector.shape_cast %6 : vector<1x4x256xf32> to vector<4x256xf32>
    %cst = arith.constant dense<0.000000e+00> : vector<8x256xf32>
    %8 = tpu.matmul %0, %5, %cst {dimension_numbers = #tpu.dot_dimension_numbers<[1], [0], [0], [1], [0, 0, 1, 1], [], []>} : vector<8x8xf32>, vector<8x256xf32>, vector<8x256xf32> -> vector<8x256xf32>
    %cst_13 = arith.constant dense<0.000000e+00> : vector<8x256xf32>
    %9 = tpu.matmul %1, %7, %cst_13 {dimension_numbers = #tpu.dot_dimension_numbers<[1], [0], [0], [1], [0, 0, 1, 1], [], []>} : vector<8x4xf32>, vector<4x256xf32>, vector<8x256xf32> -> vector<8x256xf32>
    %10 = arith.addf %8, %9 : vector<8x256xf32>
    %11 = vector.broadcast %2 : vector<8x1xf32> to vector<8x256xf32>
    %12 = arith.addf %10, %11 : vector<8x256xf32>
    %c0_14 = arith.constant 0 : index
    %c0_15 = arith.constant 0 : index
    %c0_16 = arith.constant 0 : index
    %13 = vector.load %arg10[%c0_14, %c0_15, %c0_16] : memref<2x8x256xf32, #tpu.memory_space<vmem>>, vector<1x8x256xf32>
    %14 = vector.shape_cast %13 : vector<1x8x256xf32> to vector<8x256xf32>
    %15 = vector.shape_cast %12 : vector<8x256xf32> to vector<1x8x256xf32>
    tpu.vector_store %arg10[%c0_14, %c0_15, %c0_16], %15 {strides = array<i32>} : memref<2x8x256xf32, #tpu.memory_space<vmem>>, vector<1x8x256xf32>,
    %c0_17 = arith.constant 0 : index
    %c0_18 = arith.constant 0 : index
    %c0_19 = arith.constant 0 : index
    %16 = vector.load %arg7[%c0_17, %c0_18, %c0_19] : memref<9x8x8xf32, #tpu.memory_space<vmem>>, vector<1x8x8xf32>
    %17 = vector.shape_cast %16 : vector<1x8x8xf32> to vector<8x8xf32>
    %c0_20 = arith.constant 0 : index
    %c0_21 = arith.constant 0 : index
    %c0_22 = arith.constant 0 : index
    %18 = vector.load %arg8[%c0_20, %c0_21, %c0_22] : memref<9x8x4xf32, #tpu.memory_space<vmem>>, vector<1x8x4xf32>
    %19 = vector.shape_cast %18 : vector<1x8x4xf32> to vector<8x4xf32>
    %cst_23 = arith.constant dense<0.000000e+00> : vector<8x256xf32>
    %20 = tpu.matmul %17, %5, %cst_23 {dimension_numbers = #tpu.dot_dimension_numbers<[1], [0], [0], [1], [0, 0, 1, 1], [], []>} : vector<8x8xf32>, vector<8x256xf32>, vector<8x256xf32> -> vector<8x256xf32>
    %cst_24 = arith.constant dense<0.000000e+00> : vector<8x256xf32>
    %21 = tpu.matmul %19, %7, %cst_24 {dimension_numbers = #tpu.dot_dimension_numbers<[1], [0], [0], [1], [0, 0, 1, 1], [], []>} : vector<8x4xf32>, vector<4x256xf32>, vector<8x256xf32> -> vector<8x256xf32>
    %22 = arith.addf %20, %21 : vector<8x256xf32>
    %c17_i32 = arith.constant 17 : i32
    %23 = tpu.dynamic_rotate %22 by %c17_i32 dim 1 : vector<8x256xf32>, i32 -> vector<8x256xf32>
    %c0_25 = arith.constant 0 : index
    %c0_26 = arith.constant 0 : index
    %c0_27 = arith.constant 0 : index
    %24 = vector.load %arg1[%c0_25, %c0_26, %c0_27] : memref<9x1x256xf32, #tpu.memory_space<vmem>>, vector<1x1x256xf32>
    %25 = vector.shape_cast %24 : vector<1x1x256xf32> to vector<1x256xf32>
    %26 = vector.broadcast %25 : vector<1x256xf32> to vector<8x256xf32>
    %27 = arith.mulf %23, %26 : vector<8x256xf32>
    %c1 = arith.constant 1 : index
    %c0_28 = arith.constant 0 : index
    %c0_29 = arith.constant 0 : index
    %28 = vector.load %arg7[%c1, %c0_28, %c0_29] : memref<9x8x8xf32, #tpu.memory_space<vmem>>, vector<1x8x8xf32>
    %29 = vector.shape_cast %28 : vector<1x8x8xf32> to vector<8x8xf32>
    %c1_30 = arith.constant 1 : index
    %c0_31 = arith.constant 0 : index
    %c0_32 = arith.constant 0 : index
    %30 = vector.load %arg8[%c1_30, %c0_31, %c0_32] : memref<9x8x4xf32, #tpu.memory_space<vmem>>, vector<1x8x4xf32>
    %31 = vector.shape_cast %30 : vector<1x8x4xf32> to vector<8x4xf32>
    %cst_33 = arith.constant dense<0.000000e+00> : vector<8x256xf32>
    %32 = tpu.matmul %29, %5, %cst_33 {dimension_numbers = #tpu.dot_dimension_numbers<[1], [0], [0], [1], [0, 0, 1, 1], [], []>} : vector<8x8xf32>, vector<8x256xf32>, vector<8x256xf32> -> vector<8x256xf32>
    %cst_34 = arith.constant dense<0.000000e+00> : vector<8x256xf32>
    %33 = tpu.matmul %31, %7, %cst_34 {dimension_numbers = #tpu.dot_dimension_numbers<[1], [0], [0], [1], [0, 0, 1, 1], [], []>} : vector<8x4xf32>, vector<4x256xf32>, vector<8x256xf32> -> vector<8x256xf32>
    %34 = arith.addf %32, %33 : vector<8x256xf32>
    %c16_i32 = arith.constant 16 : i32
    %35 = tpu.dynamic_rotate %34 by %c16_i32 dim 1 : vector<8x256xf32>, i32 -> vector<8x256xf32>
    %c1_35 = arith.constant 1 : index
    %c0_36 = arith.constant 0 : index
    %c0_37 = arith.constant 0 : index
    %36 = vector.load %arg1[%c1_35, %c0_36, %c0_37] : memref<9x1x256xf32, #tpu.memory_space<vmem>>, vector<1x1x256xf32>
    %37 = vector.shape_cast %36 : vector<1x1x256xf32> to vector<1x256xf32>
    %38 = vector.broadcast %37 : vector<1x256xf32> to vector<8x256xf32>
    %39 = arith.mulf %35, %38 : vector<8x256xf32>
    %40 = arith.addf %27, %39 : vector<8x256xf32>
    %c2 = arith.constant 2 : index
    %c0_38 = arith.constant 0 : index
    %c0_39 = arith.constant 0 : index
    %41 = vector.load %arg7[%c2, %c0_38, %c0_39] : memref<9x8x8xf32, #tpu.memory_space<vmem>>, vector<1x8x8xf32>
    %42 = vector.shape_cast %41 : vector<1x8x8xf32> to vector<8x8xf32>
    %c2_40 = arith.constant 2 : index
    %c0_41 = arith.constant 0 : index
    %c0_42 = arith.constant 0 : index
    %43 = vector.load %arg8[%c2_40, %c0_41, %c0_42] : memref<9x8x4xf32, #tpu.memory_space<vmem>>, vector<1x8x4xf32>
    %44 = vector.shape_cast %43 : vector<1x8x4xf32> to vector<8x4xf32>
    %cst_43 = arith.constant dense<0.000000e+00> : vector<8x256xf32>
    %45 = tpu.matmul %42, %5, %cst_43 {dimension_numbers = #tpu.dot_dimension_numbers<[1], [0], [0], [1], [0, 0, 1, 1], [], []>} : vector<8x8xf32>, vector<8x256xf32>, vector<8x256xf32> -> vector<8x256xf32>
    %cst_44 = arith.constant dense<0.000000e+00> : vector<8x256xf32>
    %46 = tpu.matmul %44, %7, %cst_44 {dimension_numbers = #tpu.dot_dimension_numbers<[1], [0], [0], [1], [0, 0, 1, 1], [], []>} : vector<8x4xf32>, vector<4x256xf32>, vector<8x256xf32> -> vector<8x256xf32>
    %47 = arith.addf %45, %46 : vector<8x256xf32>
    %c15_i32 = arith.constant 15 : i32
    %48 = tpu.dynamic_rotate %47 by %c15_i32 dim 1 : vector<8x256xf32>, i32 -> vector<8x256xf32>
    %c2_45 = arith.constant 2 : index
    %c0_46 = arith.constant 0 : index
    %c0_47 = arith.constant 0 : index
    %49 = vector.load %arg1[%c2_45, %c0_46, %c0_47] : memref<9x1x256xf32, #tpu.memory_space<vmem>>, vector<1x1x256xf32>
    %50 = vector.shape_cast %49 : vector<1x1x256xf32> to vector<1x256xf32>
    %51 = vector.broadcast %50 : vector<1x256xf32> to vector<8x256xf32>
    %52 = arith.mulf %48, %51 : vector<8x256xf32>
    %53 = arith.addf %40, %52 : vector<8x256xf32>
    %c3 = arith.constant 3 : index
    %c0_48 = arith.constant 0 : index
    %c0_49 = arith.constant 0 : index
    %54 = vector.load %arg7[%c3, %c0_48, %c0_49] : memref<9x8x8xf32, #tpu.memory_space<vmem>>, vector<1x8x8xf32>
    %55 = vector.shape_cast %54 : vector<1x8x8xf32> to vector<8x8xf32>
    %c3_50 = arith.constant 3 : index
    %c0_51 = arith.constant 0 : index
    %c0_52 = arith.constant 0 : index
    %56 = vector.load %arg8[%c3_50, %c0_51, %c0_52] : memref<9x8x4xf32, #tpu.memory_space<vmem>>, vector<1x8x4xf32>
    %57 = vector.shape_cast %56 : vector<1x8x4xf32> to vector<8x4xf32>
    %cst_53 = arith.constant dense<0.000000e+00> : vector<8x256xf32>
    %58 = tpu.matmul %55, %5, %cst_53 {dimension_numbers = #tpu.dot_dimension_numbers<[1], [0], [0], [1], [0, 0, 1, 1], [], []>} : vector<8x8xf32>, vector<8x256xf32>, vector<8x256xf32> -> vector<8x256xf32>
    %cst_54 = arith.constant dense<0.000000e+00> : vector<8x256xf32>
    %59 = tpu.matmul %57, %7, %cst_54 {dimension_numbers = #tpu.dot_dimension_numbers<[1], [0], [0], [1], [0, 0, 1, 1], [], []>} : vector<8x4xf32>, vector<4x256xf32>, vector<8x256xf32> -> vector<8x256xf32>
    %60 = arith.addf %58, %59 : vector<8x256xf32>
    %c1_i32 = arith.constant 1 : i32
    %61 = tpu.dynamic_rotate %60 by %c1_i32 dim 1 : vector<8x256xf32>, i32 -> vector<8x256xf32>
    %c3_55 = arith.constant 3 : index
    %c0_56 = arith.constant 0 : index
    %c0_57 = arith.constant 0 : index
    %62 = vector.load %arg1[%c3_55, %c0_56, %c0_57] : memref<9x1x256xf32, #tpu.memory_space<vmem>>, vector<1x1x256xf32>
    %63 = vector.shape_cast %62 : vector<1x1x256xf32> to vector<1x256xf32>
    %64 = vector.broadcast %63 : vector<1x256xf32> to vector<8x256xf32>
    %65 = arith.mulf %61, %64 : vector<8x256xf32>
    %66 = arith.addf %53, %65 : vector<8x256xf32>
    %c4 = arith.constant 4 : index
    %c0_58 = arith.constant 0 : index
    %c0_59 = arith.constant 0 : index
    %67 = vector.load %arg7[%c4, %c0_58, %c0_59] : memref<9x8x8xf32, #tpu.memory_space<vmem>>, vector<1x8x8xf32>
    %68 = vector.shape_cast %67 : vector<1x8x8xf32> to vector<8x8xf32>
    %c4_60 = arith.constant 4 : index
    %c0_61 = arith.constant 0 : index
    %c0_62 = arith.constant 0 : index
    %69 = vector.load %arg8[%c4_60, %c0_61, %c0_62] : memref<9x8x4xf32, #tpu.memory_space<vmem>>, vector<1x8x4xf32>
    %70 = vector.shape_cast %69 : vector<1x8x4xf32> to vector<8x4xf32>
    %cst_63 = arith.constant dense<0.000000e+00> : vector<8x256xf32>
    %71 = tpu.matmul %68, %5, %cst_63 {dimension_numbers = #tpu.dot_dimension_numbers<[1], [0], [0], [1], [0, 0, 1, 1], [], []>} : vector<8x8xf32>, vector<8x256xf32>, vector<8x256xf32> -> vector<8x256xf32>
    %cst_64 = arith.constant dense<0.000000e+00> : vector<8x256xf32>
    %72 = tpu.matmul %70, %7, %cst_64 {dimension_numbers = #tpu.dot_dimension_numbers<[1], [0], [0], [1], [0, 0, 1, 1], [], []>} : vector<8x4xf32>, vector<4x256xf32>, vector<8x256xf32> -> vector<8x256xf32>
    %73 = arith.addf %71, %72 : vector<8x256xf32>
    %74 = arith.addf %66, %73 : vector<8x256xf32>
    %c5 = arith.constant 5 : index
    %c0_65 = arith.constant 0 : index
    %c0_66 = arith.constant 0 : index
    %75 = vector.load %arg7[%c5, %c0_65, %c0_66] : memref<9x8x8xf32, #tpu.memory_space<vmem>>, vector<1x8x8xf32>
    %76 = vector.shape_cast %75 : vector<1x8x8xf32> to vector<8x8xf32>
    %c5_67 = arith.constant 5 : index
    %c0_68 = arith.constant 0 : index
    %c0_69 = arith.constant 0 : index
    %77 = vector.load %arg8[%c5_67, %c0_68, %c0_69] : memref<9x8x4xf32, #tpu.memory_space<vmem>>, vector<1x8x4xf32>
    %78 = vector.shape_cast %77 : vector<1x8x4xf32> to vector<8x4xf32>
    %cst_70 = arith.constant dense<0.000000e+00> : vector<8x256xf32>
    %79 = tpu.matmul %76, %5, %cst_70 {dimension_numbers = #tpu.dot_dimension_numbers<[1], [0], [0], [1], [0, 0, 1, 1], [], []>} : vector<8x8xf32>, vector<8x256xf32>, vector<8x256xf32> -> vector<8x256xf32>
    %cst_71 = arith.constant dense<0.000000e+00> : vector<8x256xf32>
    %80 = tpu.matmul %78, %7, %cst_71 {dimension_numbers = #tpu.dot_dimension_numbers<[1], [0], [0], [1], [0, 0, 1, 1], [], []>} : vector<8x4xf32>, vector<4x256xf32>, vector<8x256xf32> -> vector<8x256xf32>
    %81 = arith.addf %79, %80 : vector<8x256xf32>
    %c255_i32 = arith.constant 255 : i32
    %82 = tpu.dynamic_rotate %81 by %c255_i32 dim 1 : vector<8x256xf32>, i32 -> vector<8x256xf32>
    %c5_72 = arith.constant 5 : index
    %c0_73 = arith.constant 0 : index
    %c0_74 = arith.constant 0 : index
    %83 = vector.load %arg1[%c5_72, %c0_73, %c0_74] : memref<9x1x256xf32, #tpu.memory_space<vmem>>, vector<1x1x256xf32>
    %84 = vector.shape_cast %83 : vector<1x1x256xf32> to vector<1x256xf32>
    %85 = vector.broadcast %84 : vector<1x256xf32> to vector<8x256xf32>
    %86 = arith.mulf %82, %85 : vector<8x256xf32>
    %87 = arith.addf %74, %86 : vector<8x256xf32>
    %c6 = arith.constant 6 : index
    %c0_75 = arith.constant 0 : index
    %c0_76 = arith.constant 0 : index
    %88 = vector.load %arg7[%c6, %c0_75, %c0_76] : memref<9x8x8xf32, #tpu.memory_space<vmem>>, vector<1x8x8xf32>
    %89 = vector.shape_cast %88 : vector<1x8x8xf32> to vector<8x8xf32>
    %c6_77 = arith.constant 6 : index
    %c0_78 = arith.constant 0 : index
    %c0_79 = arith.constant 0 : index
    %90 = vector.load %arg8[%c6_77, %c0_78, %c0_79] : memref<9x8x4xf32, #tpu.memory_space<vmem>>, vector<1x8x4xf32>
    %91 = vector.shape_cast %90 : vector<1x8x4xf32> to vector<8x4xf32>
    %cst_80 = arith.constant dense<0.000000e+00> : vector<8x256xf32>
    %92 = tpu.matmul %89, %5, %cst_80 {dimension_numbers = #tpu.dot_dimension_numbers<[1], [0], [0], [1], [0, 0, 1, 1], [], []>} : vector<8x8xf32>, vector<8x256xf32>, vector<8x256xf32> -> vector<8x256xf32>
    %cst_81 = arith.constant dense<0.000000e+00> : vector<8x256xf32>
    %93 = tpu.matmul %91, %7, %cst_81 {dimension_numbers = #tpu.dot_dimension_numbers<[1], [0], [0], [1], [0, 0, 1, 1], [], []>} : vector<8x4xf32>, vector<4x256xf32>, vector<8x256xf32> -> vector<8x256xf32>
    %94 = arith.addf %92, %93 : vector<8x256xf32>
    %c241_i32 = arith.constant 241 : i32
    %95 = tpu.dynamic_rotate %94 by %c241_i32 dim 1 : vector<8x256xf32>, i32 -> vector<8x256xf32>
    %c6_82 = arith.constant 6 : index
    %c0_83 = arith.constant 0 : index
    %c0_84 = arith.constant 0 : index
    %96 = vector.load %arg1[%c6_82, %c0_83, %c0_84] : memref<9x1x256xf32, #tpu.memory_space<vmem>>, vector<1x1x256xf32>
    %97 = vector.shape_cast %96 : vector<1x1x256xf32> to vector<1x256xf32>
    %98 = vector.broadcast %97 : vector<1x256xf32> to vector<8x256xf32>
    %99 = arith.mulf %95, %98 : vector<8x256xf32>
    %100 = arith.addf %87, %99 : vector<8x256xf32>
    %c7 = arith.constant 7 : index
    %c0_85 = arith.constant 0 : index
    %c0_86 = arith.constant 0 : index
    %101 = vector.load %arg7[%c7, %c0_85, %c0_86] : memref<9x8x8xf32, #tpu.memory_space<vmem>>, vector<1x8x8xf32>
    %102 = vector.shape_cast %101 : vector<1x8x8xf32> to vector<8x8xf32>
    %c7_87 = arith.constant 7 : index
    %c0_88 = arith.constant 0 : index
    %c0_89 = arith.constant 0 : index
    %103 = vector.load %arg8[%c7_87, %c0_88, %c0_89] : memref<9x8x4xf32, #tpu.memory_space<vmem>>, vector<1x8x4xf32>
    %104 = vector.shape_cast %103 : vector<1x8x4xf32> to vector<8x4xf32>
    %cst_90 = arith.constant dense<0.000000e+00> : vector<8x256xf32>
    %105 = tpu.matmul %102, %5, %cst_90 {dimension_numbers = #tpu.dot_dimension_numbers<[1], [0], [0], [1], [0, 0, 1, 1], [], []>} : vector<8x8xf32>, vector<8x256xf32>, vector<8x256xf32> -> vector<8x256xf32>
    %cst_91 = arith.constant dense<0.000000e+00> : vector<8x256xf32>
    %106 = tpu.matmul %104, %7, %cst_91 {dimension_numbers = #tpu.dot_dimension_numbers<[1], [0], [0], [1], [0, 0, 1, 1], [], []>} : vector<8x4xf32>, vector<4x256xf32>, vector<8x256xf32> -> vector<8x256xf32>
    %107 = arith.addf %105, %106 : vector<8x256xf32>
    %c240_i32 = arith.constant 240 : i32
    %108 = tpu.dynamic_rotate %107 by %c240_i32 dim 1 : vector<8x256xf32>, i32 -> vector<8x256xf32>
    %c7_92 = arith.constant 7 : index
    %c0_93 = arith.constant 0 : index
    %c0_94 = arith.constant 0 : index
    %109 = vector.load %arg1[%c7_92, %c0_93, %c0_94] : memref<9x1x256xf32, #tpu.memory_space<vmem>>, vector<1x1x256xf32>
    %110 = vector.shape_cast %109 : vector<1x1x256xf32> to vector<1x256xf32>
    %111 = vector.broadcast %110 : vector<1x256xf32> to vector<8x256xf32>
    %112 = arith.mulf %108, %111 : vector<8x256xf32>
    %113 = arith.addf %100, %112 : vector<8x256xf32>
    %c8 = arith.constant 8 : index
    %c0_95 = arith.constant 0 : index
    %c0_96 = arith.constant 0 : index
    %114 = vector.load %arg7[%c8, %c0_95, %c0_96] : memref<9x8x8xf32, #tpu.memory_space<vmem>>, vector<1x8x8xf32>
    %115 = vector.shape_cast %114 : vector<1x8x8xf32> to vector<8x8xf32>
    %c8_97 = arith.constant 8 : index
    %c0_98 = arith.constant 0 : index
    %c0_99 = arith.constant 0 : index
    %116 = vector.load %arg8[%c8_97, %c0_98, %c0_99] : memref<9x8x4xf32, #tpu.memory_space<vmem>>, vector<1x8x4xf32>
    %117 = vector.shape_cast %116 : vector<1x8x4xf32> to vector<8x4xf32>
    %cst_100 = arith.constant dense<0.000000e+00> : vector<8x256xf32>
    %118 = tpu.matmul %115, %5, %cst_100 {dimension_numbers = #tpu.dot_dimension_numbers<[1], [0], [0], [1], [0, 0, 1, 1], [], []>} : vector<8x8xf32>, vector<8x256xf32>, vector<8x256xf32> -> vector<8x256xf32>
    %cst_101 = arith.constant dense<0.000000e+00> : vector<8x256xf32>
    %119 = tpu.matmul %117, %7, %cst_101 {dimension_numbers = #tpu.dot_dimension_numbers<[1], [0], [0], [1], [0, 0, 1, 1], [], []>} : vector<8x4xf32>, vector<4x256xf32>, vector<8x256xf32> -> vector<8x256xf32>
    %120 = arith.addf %118, %119 : vector<8x256xf32>
    %c239_i32 = arith.constant 239 : i32
    %121 = tpu.dynamic_rotate %120 by %c239_i32 dim 1 : vector<8x256xf32>, i32 -> vector<8x256xf32>
    %c8_102 = arith.constant 8 : index
    %c0_103 = arith.constant 0 : index
    %c0_104 = arith.constant 0 : index
    %122 = vector.load %arg1[%c8_102, %c0_103, %c0_104] : memref<9x1x256xf32, #tpu.memory_space<vmem>>, vector<1x1x256xf32>
    %123 = vector.shape_cast %122 : vector<1x1x256xf32> to vector<1x256xf32>
    %124 = vector.broadcast %123 : vector<1x256xf32> to vector<8x256xf32>
    %125 = arith.mulf %121, %124 : vector<8x256xf32>
    %126 = arith.addf %113, %125 : vector<8x256xf32>
    %127 = vector.broadcast %3 : vector<8x1xf32> to vector<8x256xf32>
    %128 = arith.addf %126, %127 : vector<8x256xf32>
    %cst_105 = arith.constant 0.000000e+00 : f32
    %129 = vector.broadcast %cst_105 : f32 to vector<8x256xf32>
    %130 = arith.maximumf %128, %129 : vector<8x256xf32>
    %c0_106 = arith.constant 0 : index
    %c0_107 = arith.constant 0 : index
    %c0_108 = arith.constant 0 : index
    %131 = vector.load %arg11[%c0_106, %c0_107, %c0_108] : memref<2x8x256xf32, #tpu.memory_space<vmem>>, vector<1x8x256xf32>
    %132 = vector.shape_cast %131 : vector<1x8x256xf32> to vector<8x256xf32>
    %133 = vector.shape_cast %130 : vector<8x256xf32> to vector<1x8x256xf32>
    tpu.vector_store %arg11[%c0_106, %c0_107, %c0_108], %133 {strides = array<i32>} : memref<2x8x256xf32, #tpu.memory_space<vmem>>, vector<1x8x256xf32>,
    %cst_109 = arith.constant dense<0.000000e+00> : vector<8xf32>
    %134 = vector.multi_reduction <add>, %130, %cst_109 [1] : vector<8x256xf32> to vector<8xf32>
    %135 = vector.shape_cast %134 : vector<8xf32> to vector<8x1xf32>
    %c0_110 = arith.constant 0 : index
    %c0_111 = arith.constant 0 : index
    %c0_112 = arith.constant 0 : index
    %136 = vector.load %arg12[%c0_110, %c0_111, %c0_112] : memref<2x8x1xf32, #tpu.memory_space<vmem>>, vector<1x8x1xf32>
    %137 = vector.shape_cast %136 : vector<1x8x1xf32> to vector<8x1xf32>
    %138 = vector.shape_cast %135 : vector<8x1xf32> to vector<1x8x1xf32>
    tpu.vector_store %arg12[%c0_110, %c0_111, %c0_112], %138 {strides = array<i32>} : memref<2x8x1xf32, #tpu.memory_space<vmem>>, vector<1x8x1xf32>,
    %139 = arith.mulf %130, %130 : vector<8x256xf32>
    %cst_113 = arith.constant dense<0.000000e+00> : vector<8xf32>
    %140 = vector.multi_reduction <add>, %139, %cst_113 [1] : vector<8x256xf32> to vector<8xf32>
    %141 = vector.shape_cast %140 : vector<8xf32> to vector<8x1xf32>
    %c0_114 = arith.constant 0 : index
    %c0_115 = arith.constant 0 : index
    %c0_116 = arith.constant 0 : index
    %142 = vector.load %arg13[%c0_114, %c0_115, %c0_116] : memref<2x8x1xf32, #tpu.memory_space<vmem>>, vector<1x8x1xf32>
    %143 = vector.shape_cast %142 : vector<1x8x1xf32> to vector<8x1xf32>
    %144 = vector.shape_cast %141 : vector<8x1xf32> to vector<1x8x1xf32>
    tpu.vector_store %arg13[%c0_114, %c0_115, %c0_116], %144 {strides = array<i32>} : memref<2x8x1xf32, #tpu.memory_space<vmem>>, vector<1x8x1xf32>,
    %c1_117 = arith.constant 1 : index
    %c0_118 = arith.constant 0 : index
    %c0_119 = arith.constant 0 : index
    %145 = vector.load %arg2[%c1_117, %c0_118, %c0_119] : memref<2x8x256xf32, #tpu.memory_space<vmem>>, vector<1x8x256xf32>
    %146 = vector.shape_cast %145 : vector<1x8x256xf32> to vector<8x256xf32>
    %c1_120 = arith.constant 1 : index
    %c0_121 = arith.constant 0 : index
    %c0_122 = arith.constant 0 : index
    %147 = vector.load %arg3[%c1_120, %c0_121, %c0_122] : memref<2x4x256xf32, #tpu.memory_space<vmem>>, vector<1x4x256xf32>
    %148 = vector.shape_cast %147 : vector<1x4x256xf32> to vector<4x256xf32>
    %cst_123 = arith.constant dense<0.000000e+00> : vector<8x256xf32>
    %149 = tpu.matmul %0, %146, %cst_123 {dimension_numbers = #tpu.dot_dimension_numbers<[1], [0], [0], [1], [0, 0, 1, 1], [], []>} : vector<8x8xf32>, vector<8x256xf32>, vector<8x256xf32> -> vector<8x256xf32>
    %cst_124 = arith.constant dense<0.000000e+00> : vector<8x256xf32>
    %150 = tpu.matmul %1, %148, %cst_124 {dimension_numbers = #tpu.dot_dimension_numbers<[1], [0], [0], [1], [0, 0, 1, 1], [], []>} : vector<8x4xf32>, vector<4x256xf32>, vector<8x256xf32> -> vector<8x256xf32>
    %151 = arith.addf %149, %150 : vector<8x256xf32>
    %152 = vector.broadcast %2 : vector<8x1xf32> to vector<8x256xf32>
    %153 = arith.addf %151, %152 : vector<8x256xf32>
    %c1_125 = arith.constant 1 : index
    %c0_126 = arith.constant 0 : index
    %c0_127 = arith.constant 0 : index
    %154 = vector.load %arg10[%c1_125, %c0_126, %c0_127] : memref<2x8x256xf32, #tpu.memory_space<vmem>>, vector<1x8x256xf32>
    %155 = vector.shape_cast %154 : vector<1x8x256xf32> to vector<8x256xf32>
    %156 = vector.shape_cast %153 : vector<8x256xf32> to vector<1x8x256xf32>
    tpu.vector_store %arg10[%c1_125, %c0_126, %c0_127], %156 {strides = array<i32>} : memref<2x8x256xf32, #tpu.memory_space<vmem>>, vector<1x8x256xf32>,
    %c0_128 = arith.constant 0 : index
    %c0_129 = arith.constant 0 : index
    %c0_130 = arith.constant 0 : index
    %157 = vector.load %arg7[%c0_128, %c0_129, %c0_130] : memref<9x8x8xf32, #tpu.memory_space<vmem>>, vector<1x8x8xf32>
    %158 = vector.shape_cast %157 : vector<1x8x8xf32> to vector<8x8xf32>
    %c0_131 = arith.constant 0 : index
    %c0_132 = arith.constant 0 : index
    %c0_133 = arith.constant 0 : index
    %159 = vector.load %arg8[%c0_131, %c0_132, %c0_133] : memref<9x8x4xf32, #tpu.memory_space<vmem>>, vector<1x8x4xf32>
    %160 = vector.shape_cast %159 : vector<1x8x4xf32> to vector<8x4xf32>
    %cst_134 = arith.constant dense<0.000000e+00> : vector<8x256xf32>
    %161 = tpu.matmul %158, %146, %cst_134 {dimension_numbers = #tpu.dot_dimension_numbers<[1], [0], [0], [1], [0, 0, 1, 1], [], []>} : vector<8x8xf32>, vector<8x256xf32>, vector<8x256xf32> -> vector<8x256xf32>
    %cst_135 = arith.constant dense<0.000000e+00> : vector<8x256xf32>
    %162 = tpu.matmul %160, %148, %cst_135 {dimension_numbers = #tpu.dot_dimension_numbers<[1], [0], [0], [1], [0, 0, 1, 1], [], []>} : vector<8x4xf32>, vector<4x256xf32>, vector<8x256xf32> -> vector<8x256xf32>
    %163 = arith.addf %161, %162 : vector<8x256xf32>
    %c17_i32_136 = arith.constant 17 : i32
    %164 = tpu.dynamic_rotate %163 by %c17_i32_136 dim 1 : vector<8x256xf32>, i32 -> vector<8x256xf32>
    %c0_137 = arith.constant 0 : index
    %c0_138 = arith.constant 0 : index
    %c0_139 = arith.constant 0 : index
    %165 = vector.load %arg1[%c0_137, %c0_138, %c0_139] : memref<9x1x256xf32, #tpu.memory_space<vmem>>, vector<1x1x256xf32>
    %166 = vector.shape_cast %165 : vector<1x1x256xf32> to vector<1x256xf32>
    %167 = vector.broadcast %166 : vector<1x256xf32> to vector<8x256xf32>
    %168 = arith.mulf %164, %167 : vector<8x256xf32>
    %c1_140 = arith.constant 1 : index
    %c0_141 = arith.constant 0 : index
    %c0_142 = arith.constant 0 : index
    %169 = vector.load %arg7[%c1_140, %c0_141, %c0_142] : memref<9x8x8xf32, #tpu.memory_space<vmem>>, vector<1x8x8xf32>
    %170 = vector.shape_cast %169 : vector<1x8x8xf32> to vector<8x8xf32>
    %c1_143 = arith.constant 1 : index
    %c0_144 = arith.constant 0 : index
    %c0_145 = arith.constant 0 : index
    %171 = vector.load %arg8[%c1_143, %c0_144, %c0_145] : memref<9x8x4xf32, #tpu.memory_space<vmem>>, vector<1x8x4xf32>
    %172 = vector.shape_cast %171 : vector<1x8x4xf32> to vector<8x4xf32>
    %cst_146 = arith.constant dense<0.000000e+00> : vector<8x256xf32>
    %173 = tpu.matmul %170, %146, %cst_146 {dimension_numbers = #tpu.dot_dimension_numbers<[1], [0], [0], [1], [0, 0, 1, 1], [], []>} : vector<8x8xf32>, vector<8x256xf32>, vector<8x256xf32> -> vector<8x256xf32>
    %cst_147 = arith.constant dense<0.000000e+00> : vector<8x256xf32>
    %174 = tpu.matmul %172, %148, %cst_147 {dimension_numbers = #tpu.dot_dimension_numbers<[1], [0], [0], [1], [0, 0, 1, 1], [], []>} : vector<8x4xf32>, vector<4x256xf32>, vector<8x256xf32> -> vector<8x256xf32>
    %175 = arith.addf %173, %174 : vector<8x256xf32>
    %c16_i32_148 = arith.constant 16 : i32
    %176 = tpu.dynamic_rotate %175 by %c16_i32_148 dim 1 : vector<8x256xf32>, i32 -> vector<8x256xf32>
    %c1_149 = arith.constant 1 : index
    %c0_150 = arith.constant 0 : index
    %c0_151 = arith.constant 0 : index
    %177 = vector.load %arg1[%c1_149, %c0_150, %c0_151] : memref<9x1x256xf32, #tpu.memory_space<vmem>>, vector<1x1x256xf32>
    %178 = vector.shape_cast %177 : vector<1x1x256xf32> to vector<1x256xf32>
    %179 = vector.broadcast %178 : vector<1x256xf32> to vector<8x256xf32>
    %180 = arith.mulf %176, %179 : vector<8x256xf32>
    %181 = arith.addf %168, %180 : vector<8x256xf32>
    %c2_152 = arith.constant 2 : index
    %c0_153 = arith.constant 0 : index
    %c0_154 = arith.constant 0 : index
    %182 = vector.load %arg7[%c2_152, %c0_153, %c0_154] : memref<9x8x8xf32, #tpu.memory_space<vmem>>, vector<1x8x8xf32>
    %183 = vector.shape_cast %182 : vector<1x8x8xf32> to vector<8x8xf32>
    %c2_155 = arith.constant 2 : index
    %c0_156 = arith.constant 0 : index
    %c0_157 = arith.constant 0 : index
    %184 = vector.load %arg8[%c2_155, %c0_156, %c0_157] : memref<9x8x4xf32, #tpu.memory_space<vmem>>, vector<1x8x4xf32>
    %185 = vector.shape_cast %184 : vector<1x8x4xf32> to vector<8x4xf32>
    %cst_158 = arith.constant dense<0.000000e+00> : vector<8x256xf32>
    %186 = tpu.matmul %183, %146, %cst_158 {dimension_numbers = #tpu.dot_dimension_numbers<[1], [0], [0], [1], [0, 0, 1, 1], [], []>} : vector<8x8xf32>, vector<8x256xf32>, vector<8x256xf32> -> vector<8x256xf32>
    %cst_159 = arith.constant dense<0.000000e+00> : vector<8x256xf32>
    %187 = tpu.matmul %185, %148, %cst_159 {dimension_numbers = #tpu.dot_dimension_numbers<[1], [0], [0], [1], [0, 0, 1, 1], [], []>} : vector<8x4xf32>, vector<4x256xf32>, vector<8x256xf32> -> vector<8x256xf32>
    %188 = arith.addf %186, %187 : vector<8x256xf32>
    %c15_i32_160 = arith.constant 15 : i32
    %189 = tpu.dynamic_rotate %188 by %c15_i32_160 dim 1 : vector<8x256xf32>, i32 -> vector<8x256xf32>
    %c2_161 = arith.constant 2 : index
    %c0_162 = arith.constant 0 : index
    %c0_163 = arith.constant 0 : index
    %190 = vector.load %arg1[%c2_161, %c0_162, %c0_163] : memref<9x1x256xf32, #tpu.memory_space<vmem>>, vector<1x1x256xf32>
    %191 = vector.shape_cast %190 : vector<1x1x256xf32> to vector<1x256xf32>
    %192 = vector.broadcast %191 : vector<1x256xf32> to vector<8x256xf32>
    %193 = arith.mulf %189, %192 : vector<8x256xf32>
    %194 = arith.addf %181, %193 : vector<8x256xf32>
    %c3_164 = arith.constant 3 : index
    %c0_165 = arith.constant 0 : index
    %c0_166 = arith.constant 0 : index
    %195 = vector.load %arg7[%c3_164, %c0_165, %c0_166] : memref<9x8x8xf32, #tpu.memory_space<vmem>>, vector<1x8x8xf32>
    %196 = vector.shape_cast %195 : vector<1x8x8xf32> to vector<8x8xf32>
    %c3_167 = arith.constant 3 : index
    %c0_168 = arith.constant 0 : index
    %c0_169 = arith.constant 0 : index
    %197 = vector.load %arg8[%c3_167, %c0_168, %c0_169] : memref<9x8x4xf32, #tpu.memory_space<vmem>>, vector<1x8x4xf32>
    %198 = vector.shape_cast %197 : vector<1x8x4xf32> to vector<8x4xf32>
    %cst_170 = arith.constant dense<0.000000e+00> : vector<8x256xf32>
    %199 = tpu.matmul %196, %146, %cst_170 {dimension_numbers = #tpu.dot_dimension_numbers<[1], [0], [0], [1], [0, 0, 1, 1], [], []>} : vector<8x8xf32>, vector<8x256xf32>, vector<8x256xf32> -> vector<8x256xf32>
    %cst_171 = arith.constant dense<0.000000e+00> : vector<8x256xf32>
    %200 = tpu.matmul %198, %148, %cst_171 {dimension_numbers = #tpu.dot_dimension_numbers<[1], [0], [0], [1], [0, 0, 1, 1], [], []>} : vector<8x4xf32>, vector<4x256xf32>, vector<8x256xf32> -> vector<8x256xf32>
    %201 = arith.addf %199, %200 : vector<8x256xf32>
    %c1_i32_172 = arith.constant 1 : i32
    %202 = tpu.dynamic_rotate %201 by %c1_i32_172 dim 1 : vector<8x256xf32>, i32 -> vector<8x256xf32>
    %c3_173 = arith.constant 3 : index
    %c0_174 = arith.constant 0 : index
    %c0_175 = arith.constant 0 : index
    %203 = vector.load %arg1[%c3_173, %c0_174, %c0_175] : memref<9x1x256xf32, #tpu.memory_space<vmem>>, vector<1x1x256xf32>
    %204 = vector.shape_cast %203 : vector<1x1x256xf32> to vector<1x256xf32>
    %205 = vector.broadcast %204 : vector<1x256xf32> to vector<8x256xf32>
    %206 = arith.mulf %202, %205 : vector<8x256xf32>
    %207 = arith.addf %194, %206 : vector<8x256xf32>
    %c4_176 = arith.constant 4 : index
    %c0_177 = arith.constant 0 : index
    %c0_178 = arith.constant 0 : index
    %208 = vector.load %arg7[%c4_176, %c0_177, %c0_178] : memref<9x8x8xf32, #tpu.memory_space<vmem>>, vector<1x8x8xf32>
    %209 = vector.shape_cast %208 : vector<1x8x8xf32> to vector<8x8xf32>
    %c4_179 = arith.constant 4 : index
    %c0_180 = arith.constant 0 : index
    %c0_181 = arith.constant 0 : index
    %210 = vector.load %arg8[%c4_179, %c0_180, %c0_181] : memref<9x8x4xf32, #tpu.memory_space<vmem>>, vector<1x8x4xf32>
    %211 = vector.shape_cast %210 : vector<1x8x4xf32> to vector<8x4xf32>
    %cst_182 = arith.constant dense<0.000000e+00> : vector<8x256xf32>
    %212 = tpu.matmul %209, %146, %cst_182 {dimension_numbers = #tpu.dot_dimension_numbers<[1], [0], [0], [1], [0, 0, 1, 1], [], []>} : vector<8x8xf32>, vector<8x256xf32>, vector<8x256xf32> -> vector<8x256xf32>
    %cst_183 = arith.constant dense<0.000000e+00> : vector<8x256xf32>
    %213 = tpu.matmul %211, %148, %cst_183 {dimension_numbers = #tpu.dot_dimension_numbers<[1], [0], [0], [1], [0, 0, 1, 1], [], []>} : vector<8x4xf32>, vector<4x256xf32>, vector<8x256xf32> -> vector<8x256xf32>
    %214 = arith.addf %212, %213 : vector<8x256xf32>
    %215 = arith.addf %207, %214 : vector<8x256xf32>
    %c5_184 = arith.constant 5 : index
    %c0_185 = arith.constant 0 : index
    %c0_186 = arith.constant 0 : index
    %216 = vector.load %arg7[%c5_184, %c0_185, %c0_186] : memref<9x8x8xf32, #tpu.memory_space<vmem>>, vector<1x8x8xf32>
    %217 = vector.shape_cast %216 : vector<1x8x8xf32> to vector<8x8xf32>
    %c5_187 = arith.constant 5 : index
    %c0_188 = arith.constant 0 : index
    %c0_189 = arith.constant 0 : index
    %218 = vector.load %arg8[%c5_187, %c0_188, %c0_189] : memref<9x8x4xf32, #tpu.memory_space<vmem>>, vector<1x8x4xf32>
    %219 = vector.shape_cast %218 : vector<1x8x4xf32> to vector<8x4xf32>
    %cst_190 = arith.constant dense<0.000000e+00> : vector<8x256xf32>
    %220 = tpu.matmul %217, %146, %cst_190 {dimension_numbers = #tpu.dot_dimension_numbers<[1], [0], [0], [1], [0, 0, 1, 1], [], []>} : vector<8x8xf32>, vector<8x256xf32>, vector<8x256xf32> -> vector<8x256xf32>
    %cst_191 = arith.constant dense<0.000000e+00> : vector<8x256xf32>
    %221 = tpu.matmul %219, %148, %cst_191 {dimension_numbers = #tpu.dot_dimension_numbers<[1], [0], [0], [1], [0, 0, 1, 1], [], []>} : vector<8x4xf32>, vector<4x256xf32>, vector<8x256xf32> -> vector<8x256xf32>
    %222 = arith.addf %220, %221 : vector<8x256xf32>
    %c255_i32_192 = arith.constant 255 : i32
    %223 = tpu.dynamic_rotate %222 by %c255_i32_192 dim 1 : vector<8x256xf32>, i32 -> vector<8x256xf32>
    %c5_193 = arith.constant 5 : index
    %c0_194 = arith.constant 0 : index
    %c0_195 = arith.constant 0 : index
    %224 = vector.load %arg1[%c5_193, %c0_194, %c0_195] : memref<9x1x256xf32, #tpu.memory_space<vmem>>, vector<1x1x256xf32>
    %225 = vector.shape_cast %224 : vector<1x1x256xf32> to vector<1x256xf32>
    %226 = vector.broadcast %225 : vector<1x256xf32> to vector<8x256xf32>
    %227 = arith.mulf %223, %226 : vector<8x256xf32>
    %228 = arith.addf %215, %227 : vector<8x256xf32>
    %c6_196 = arith.constant 6 : index
    %c0_197 = arith.constant 0 : index
    %c0_198 = arith.constant 0 : index
    %229 = vector.load %arg7[%c6_196, %c0_197, %c0_198] : memref<9x8x8xf32, #tpu.memory_space<vmem>>, vector<1x8x8xf32>
    %230 = vector.shape_cast %229 : vector<1x8x8xf32> to vector<8x8xf32>
    %c6_199 = arith.constant 6 : index
    %c0_200 = arith.constant 0 : index
    %c0_201 = arith.constant 0 : index
    %231 = vector.load %arg8[%c6_199, %c0_200, %c0_201] : memref<9x8x4xf32, #tpu.memory_space<vmem>>, vector<1x8x4xf32>
    %232 = vector.shape_cast %231 : vector<1x8x4xf32> to vector<8x4xf32>
    %cst_202 = arith.constant dense<0.000000e+00> : vector<8x256xf32>
    %233 = tpu.matmul %230, %146, %cst_202 {dimension_numbers = #tpu.dot_dimension_numbers<[1], [0], [0], [1], [0, 0, 1, 1], [], []>} : vector<8x8xf32>, vector<8x256xf32>, vector<8x256xf32> -> vector<8x256xf32>
    %cst_203 = arith.constant dense<0.000000e+00> : vector<8x256xf32>
    %234 = tpu.matmul %232, %148, %cst_203 {dimension_numbers = #tpu.dot_dimension_numbers<[1], [0], [0], [1], [0, 0, 1, 1], [], []>} : vector<8x4xf32>, vector<4x256xf32>, vector<8x256xf32> -> vector<8x256xf32>
    %235 = arith.addf %233, %234 : vector<8x256xf32>
    %c241_i32_204 = arith.constant 241 : i32
    %236 = tpu.dynamic_rotate %235 by %c241_i32_204 dim 1 : vector<8x256xf32>, i32 -> vector<8x256xf32>
    %c6_205 = arith.constant 6 : index
    %c0_206 = arith.constant 0 : index
    %c0_207 = arith.constant 0 : index
    %237 = vector.load %arg1[%c6_205, %c0_206, %c0_207] : memref<9x1x256xf32, #tpu.memory_space<vmem>>, vector<1x1x256xf32>
    %238 = vector.shape_cast %237 : vector<1x1x256xf32> to vector<1x256xf32>
    %239 = vector.broadcast %238 : vector<1x256xf32> to vector<8x256xf32>
    %240 = arith.mulf %236, %239 : vector<8x256xf32>
    %241 = arith.addf %228, %240 : vector<8x256xf32>
    %c7_208 = arith.constant 7 : index
    %c0_209 = arith.constant 0 : index
    %c0_210 = arith.constant 0 : index
    %242 = vector.load %arg7[%c7_208, %c0_209, %c0_210] : memref<9x8x8xf32, #tpu.memory_space<vmem>>, vector<1x8x8xf32>
    %243 = vector.shape_cast %242 : vector<1x8x8xf32> to vector<8x8xf32>
    %c7_211 = arith.constant 7 : index
    %c0_212 = arith.constant 0 : index
    %c0_213 = arith.constant 0 : index
    %244 = vector.load %arg8[%c7_211, %c0_212, %c0_213] : memref<9x8x4xf32, #tpu.memory_space<vmem>>, vector<1x8x4xf32>
    %245 = vector.shape_cast %244 : vector<1x8x4xf32> to vector<8x4xf32>
    %cst_214 = arith.constant dense<0.000000e+00> : vector<8x256xf32>
    %246 = tpu.matmul %243, %146, %cst_214 {dimension_numbers = #tpu.dot_dimension_numbers<[1], [0], [0], [1], [0, 0, 1, 1], [], []>} : vector<8x8xf32>, vector<8x256xf32>, vector<8x256xf32> -> vector<8x256xf32>
    %cst_215 = arith.constant dense<0.000000e+00> : vector<8x256xf32>
    %247 = tpu.matmul %245, %148, %cst_215 {dimension_numbers = #tpu.dot_dimension_numbers<[1], [0], [0], [1], [0, 0, 1, 1], [], []>} : vector<8x4xf32>, vector<4x256xf32>, vector<8x256xf32> -> vector<8x256xf32>
    %248 = arith.addf %246, %247 : vector<8x256xf32>
    %c240_i32_216 = arith.constant 240 : i32
    %249 = tpu.dynamic_rotate %248 by %c240_i32_216 dim 1 : vector<8x256xf32>, i32 -> vector<8x256xf32>
    %c7_217 = arith.constant 7 : index
    %c0_218 = arith.constant 0 : index
    %c0_219 = arith.constant 0 : index
    %250 = vector.load %arg1[%c7_217, %c0_218, %c0_219] : memref<9x1x256xf32, #tpu.memory_space<vmem>>, vector<1x1x256xf32>
    %251 = vector.shape_cast %250 : vector<1x1x256xf32> to vector<1x256xf32>
    %252 = vector.broadcast %251 : vector<1x256xf32> to vector<8x256xf32>
    %253 = arith.mulf %249, %252 : vector<8x256xf32>
    %254 = arith.addf %241, %253 : vector<8x256xf32>
    %c8_220 = arith.constant 8 : index
    %c0_221 = arith.constant 0 : index
    %c0_222 = arith.constant 0 : index
    %255 = vector.load %arg7[%c8_220, %c0_221, %c0_222] : memref<9x8x8xf32, #tpu.memory_space<vmem>>, vector<1x8x8xf32>
    %256 = vector.shape_cast %255 : vector<1x8x8xf32> to vector<8x8xf32>
    %c8_223 = arith.constant 8 : index
    %c0_224 = arith.constant 0 : index
    %c0_225 = arith.constant 0 : index
    %257 = vector.load %arg8[%c8_223, %c0_224, %c0_225] : memref<9x8x4xf32, #tpu.memory_space<vmem>>, vector<1x8x4xf32>
    %258 = vector.shape_cast %257 : vector<1x8x4xf32> to vector<8x4xf32>
    %cst_226 = arith.constant dense<0.000000e+00> : vector<8x256xf32>
    %259 = tpu.matmul %256, %146, %cst_226 {dimension_numbers = #tpu.dot_dimension_numbers<[1], [0], [0], [1], [0, 0, 1, 1], [], []>} : vector<8x8xf32>, vector<8x256xf32>, vector<8x256xf32> -> vector<8x256xf32>
    %cst_227 = arith.constant dense<0.000000e+00> : vector<8x256xf32>
    %260 = tpu.matmul %258, %148, %cst_227 {dimension_numbers = #tpu.dot_dimension_numbers<[1], [0], [0], [1], [0, 0, 1, 1], [], []>} : vector<8x4xf32>, vector<4x256xf32>, vector<8x256xf32> -> vector<8x256xf32>
    %261 = arith.addf %259, %260 : vector<8x256xf32>
    %c239_i32_228 = arith.constant 239 : i32
    %262 = tpu.dynamic_rotate %261 by %c239_i32_228 dim 1 : vector<8x256xf32>, i32 -> vector<8x256xf32>
    %c8_229 = arith.constant 8 : index
    %c0_230 = arith.constant 0 : index
    %c0_231 = arith.constant 0 : index
    %263 = vector.load %arg1[%c8_229, %c0_230, %c0_231] : memref<9x1x256xf32, #tpu.memory_space<vmem>>, vector<1x1x256xf32>
    %264 = vector.shape_cast %263 : vector<1x1x256xf32> to vector<1x256xf32>
    %265 = vector.broadcast %264 : vector<1x256xf32> to vector<8x256xf32>
    %266 = arith.mulf %262, %265 : vector<8x256xf32>
    %267 = arith.addf %254, %266 : vector<8x256xf32>
    %268 = vector.broadcast %3 : vector<8x1xf32> to vector<8x256xf32>
    %269 = arith.addf %267, %268 : vector<8x256xf32>
    %cst_232 = arith.constant 0.000000e+00 : f32
    %270 = vector.broadcast %cst_232 : f32 to vector<8x256xf32>
    %271 = arith.maximumf %269, %270 : vector<8x256xf32>
    %c1_233 = arith.constant 1 : index
    %c0_234 = arith.constant 0 : index
    %c0_235 = arith.constant 0 : index
    %272 = vector.load %arg11[%c1_233, %c0_234, %c0_235] : memref<2x8x256xf32, #tpu.memory_space<vmem>>, vector<1x8x256xf32>
    %273 = vector.shape_cast %272 : vector<1x8x256xf32> to vector<8x256xf32>
    %274 = vector.shape_cast %271 : vector<8x256xf32> to vector<1x8x256xf32>
    tpu.vector_store %arg11[%c1_233, %c0_234, %c0_235], %274 {strides = array<i32>} : memref<2x8x256xf32, #tpu.memory_space<vmem>>, vector<1x8x256xf32>,
    %cst_236 = arith.constant dense<0.000000e+00> : vector<8xf32>
    %275 = vector.multi_reduction <add>, %271, %cst_236 [1] : vector<8x256xf32> to vector<8xf32>
    %276 = vector.shape_cast %275 : vector<8xf32> to vector<8x1xf32>
    %c1_237 = arith.constant 1 : index
    %c0_238 = arith.constant 0 : index
    %c0_239 = arith.constant 0 : index
    %277 = vector.load %arg12[%c1_237, %c0_238, %c0_239] : memref<2x8x1xf32, #tpu.memory_space<vmem>>, vector<1x8x1xf32>
    %278 = vector.shape_cast %277 : vector<1x8x1xf32> to vector<8x1xf32>
    %279 = vector.shape_cast %276 : vector<8x1xf32> to vector<1x8x1xf32>
    tpu.vector_store %arg12[%c1_237, %c0_238, %c0_239], %279 {strides = array<i32>} : memref<2x8x1xf32, #tpu.memory_space<vmem>>, vector<1x8x1xf32>,
    %280 = arith.mulf %271, %271 : vector<8x256xf32>
    %cst_240 = arith.constant dense<0.000000e+00> : vector<8xf32>
    %281 = vector.multi_reduction <add>, %280, %cst_240 [1] : vector<8x256xf32> to vector<8xf32>
    %282 = vector.shape_cast %281 : vector<8xf32> to vector<8x1xf32>
    %c1_241 = arith.constant 1 : index
    %c0_242 = arith.constant 0 : index
    %c0_243 = arith.constant 0 : index
    %283 = vector.load %arg13[%c1_241, %c0_242, %c0_243] : memref<2x8x1xf32, #tpu.memory_space<vmem>>, vector<1x8x1xf32>
    %284 = vector.shape_cast %283 : vector<1x8x1xf32> to vector<8x1xf32>
    %285 = vector.shape_cast %282 : vector<8x1xf32> to vector<1x8x1xf32>
    tpu.vector_store %arg13[%c1_241, %c0_242, %c0_243], %285 {strides = array<i32>} : memref<2x8x1xf32, #tpu.memory_space<vmem>>, vector<1x8x1xf32>,
    return
  }
  func.func @transform_0(%arg0: i32) -> (i32, i32, i32) {
    %c0_i32 = arith.constant 0 : i32
    %c0_i32_0 = arith.constant 0 : i32
    %c0_i32_1 = arith.constant 0 : i32
    %c0_i32_2 = arith.constant 0 : i32
    return %c0_i32, %c0_i32_0, %c0_i32_1 : i32, i32, i32
  }
  func.func @transform_1(%arg0: i32) -> (i32, i32, i32) {
    %c0_i32 = arith.constant 0 : i32
    %c0_i32_0 = arith.constant 0 : i32
    %c0_i32_1 = arith.constant 0 : i32
    return %arg0, %c0_i32, %c0_i32_0 : i32, i32, i32
  }
  func.func @transform_2(%arg0: i32) -> (i32, i32, i32) {
    %c0_i32 = arith.constant 0 : i32
    %c0_i32_0 = arith.constant 0 : i32
    %c0_i32_1 = arith.constant 0 : i32
    return %arg0, %c0_i32, %c0_i32_0 : i32, i32, i32
  }
  func.func @transform_3(%arg0: i32) -> (i32, i32) {
    %c0_i32 = arith.constant 0 : i32
    %c0_i32_0 = arith.constant 0 : i32
    %c0_i32_1 = arith.constant 0 : i32
    return %c0_i32, %c0_i32_0 : i32, i32
  }
  func.func @transform_4(%arg0: i32) -> (i32, i32) {
    %c0_i32 = arith.constant 0 : i32
    %c0_i32_0 = arith.constant 0 : i32
    %c0_i32_1 = arith.constant 0 : i32
    return %c0_i32, %c0_i32_0 : i32, i32
  }
  func.func @transform_5(%arg0: i32) -> (i32, i32) {
    %c0_i32 = arith.constant 0 : i32
    %c0_i32_0 = arith.constant 0 : i32
    %c0_i32_1 = arith.constant 0 : i32
    return %c0_i32, %c0_i32_0 : i32, i32
  }
  func.func @transform_6(%arg0: i32) -> (i32, i32, i32) {
    %c0_i32 = arith.constant 0 : i32
    %c0_i32_0 = arith.constant 0 : i32
    %c0_i32_1 = arith.constant 0 : i32
    %c0_i32_2 = arith.constant 0 : i32
    return %c0_i32, %c0_i32_0, %c0_i32_1 : i32, i32, i32
  }
  func.func @transform_7(%arg0: i32) -> (i32, i32, i32) {
    %c0_i32 = arith.constant 0 : i32
    %c0_i32_0 = arith.constant 0 : i32
    %c0_i32_1 = arith.constant 0 : i32
    %c0_i32_2 = arith.constant 0 : i32
    return %c0_i32, %c0_i32_0, %c0_i32_1 : i32, i32, i32
  }
  func.func @transform_8(%arg0: i32) -> (i32, i32) {
    %c0_i32 = arith.constant 0 : i32
    %c0_i32_0 = arith.constant 0 : i32
    %c0_i32_1 = arith.constant 0 : i32
    return %c0_i32, %c0_i32_0 : i32, i32
  }
  func.func @transform_9(%arg0: i32) -> (i32, i32, i32) {
    %c0_i32 = arith.constant 0 : i32
    %c0_i32_0 = arith.constant 0 : i32
    %c0_i32_1 = arith.constant 0 : i32
    return %arg0, %c0_i32, %c0_i32_0 : i32, i32, i32
  }
  func.func @transform_10(%arg0: i32) -> (i32, i32, i32) {
    %c0_i32 = arith.constant 0 : i32
    %c0_i32_0 = arith.constant 0 : i32
    %c0_i32_1 = arith.constant 0 : i32
    return %arg0, %c0_i32, %c0_i32_0 : i32, i32, i32
  }
  func.func @transform_11(%arg0: i32) -> (i32, i32, i32) {
    %c0_i32 = arith.constant 0 : i32
    %c0_i32_0 = arith.constant 0 : i32
    %c0_i32_1 = arith.constant 0 : i32
    return %arg0, %c0_i32, %c0_i32_0 : i32, i32, i32
  }
  func.func @transform_12(%arg0: i32) -> (i32, i32, i32) {
    %c0_i32 = arith.constant 0 : i32
    %c0_i32_0 = arith.constant 0 : i32
    %c0_i32_1 = arith.constant 0 : i32
    return %arg0, %c0_i32, %c0_i32_0 : i32, i32, i32
  }
}

module attributes {stable_mosaic.version = 11 : i64} {
  func.func @_stage2_kernel(%arg0: i32, %arg1: memref<9x1x256xf32, #tpu.memory_space<vmem>>, %arg2: memref<2x8x256xf32, #tpu.memory_space<vmem>>, %arg3: memref<8x1xf32, #tpu.memory_space<vmem>>, %arg4: memref<8x1xf32, #tpu.memory_space<vmem>>, %arg5: memref<9x8x8xf32, #tpu.memory_space<vmem>>, %arg6: memref<8x1xf32, #tpu.memory_space<vmem>>, %arg7: memref<2x8x256xf32, #tpu.memory_space<vmem>>, %arg8: memref<2x8x1xf32, #tpu.memory_space<vmem>>, %arg9: memref<2x8x1xf32, #tpu.memory_space<vmem>>) attributes {dimension_semantics = [#tpu.dimension_semantics<parallel>], iteration_bounds = array<i64: 1>, scalar_prefetch = 0 : i64, scratch_operands = 0 : i64, tpu.core_type = #tpu.core_type<tc>, window_params = [{pipeline_mode = #tpu.pipeline_mode<synchronous>, transform_indices = @transform_0, window_bounds = array<i64: 9, 1, 256>}, {transform_indices = @transform_1, window_bounds = array<i64: 2, 8, 256>}, {pipeline_mode = #tpu.pipeline_mode<synchronous>, transform_indices = @transform_2, window_bounds = array<i64: 8, 1>}, {pipeline_mode = #tpu.pipeline_mode<synchronous>, transform_indices = @transform_3, window_bounds = array<i64: 8, 1>}, {pipeline_mode = #tpu.pipeline_mode<synchronous>, transform_indices = @transform_4, window_bounds = array<i64: 9, 8, 8>}, {pipeline_mode = #tpu.pipeline_mode<synchronous>, transform_indices = @transform_5, window_bounds = array<i64: 8, 1>}, {transform_indices = @transform_6, window_bounds = array<i64: 2, 8, 256>}, {transform_indices = @transform_7, window_bounds = array<i64: 2, 8, 1>}, {transform_indices = @transform_8, window_bounds = array<i64: 2, 8, 1>}]} {
    %c0 = arith.constant 0 : index
    %c0_0 = arith.constant 0 : index
    %0 = vector.load %arg3[%c0, %c0_0] : memref<8x1xf32, #tpu.memory_space<vmem>>, vector<8x1xf32>
    %c0_1 = arith.constant 0 : index
    %c0_2 = arith.constant 0 : index
    %1 = vector.load %arg4[%c0_1, %c0_2] : memref<8x1xf32, #tpu.memory_space<vmem>>, vector<8x1xf32>
    %c0_3 = arith.constant 0 : index
    %c0_4 = arith.constant 0 : index
    %2 = vector.load %arg6[%c0_3, %c0_4] : memref<8x1xf32, #tpu.memory_space<vmem>>, vector<8x1xf32>
    %c0_5 = arith.constant 0 : index
    %c0_6 = arith.constant 0 : index
    %c0_7 = arith.constant 0 : index
    %3 = vector.load %arg2[%c0_5, %c0_6, %c0_7] : memref<2x8x256xf32, #tpu.memory_space<vmem>>, vector<1x8x256xf32>
    %4 = vector.shape_cast %3 : vector<1x8x256xf32> to vector<8x256xf32>
    %5 = vector.broadcast %0 : vector<8x1xf32> to vector<8x256xf32>
    %6 = arith.mulf %4, %5 : vector<8x256xf32>
    %7 = vector.broadcast %1 : vector<8x1xf32> to vector<8x256xf32>
    %8 = arith.addf %6, %7 : vector<8x256xf32>
    %c0_8 = arith.constant 0 : index
    %c0_9 = arith.constant 0 : index
    %c0_10 = arith.constant 0 : index
    %9 = vector.load %arg5[%c0_8, %c0_9, %c0_10] : memref<9x8x8xf32, #tpu.memory_space<vmem>>, vector<1x8x8xf32>
    %10 = vector.shape_cast %9 : vector<1x8x8xf32> to vector<8x8xf32>
    %cst = arith.constant dense<0.000000e+00> : vector<8x256xf32>
    %11 = tpu.matmul %10, %8, %cst {dimension_numbers = #tpu.dot_dimension_numbers<[1], [0], [0], [1], [0, 0, 1, 1], [], []>} : vector<8x8xf32>, vector<8x256xf32>, vector<8x256xf32> -> vector<8x256xf32>
    %c17_i32 = arith.constant 17 : i32
    %12 = tpu.dynamic_rotate %11 by %c17_i32 dim 1 : vector<8x256xf32>, i32 -> vector<8x256xf32>
    %c0_11 = arith.constant 0 : index
    %c0_12 = arith.constant 0 : index
    %c0_13 = arith.constant 0 : index
    %13 = vector.load %arg1[%c0_11, %c0_12, %c0_13] : memref<9x1x256xf32, #tpu.memory_space<vmem>>, vector<1x1x256xf32>
    %14 = vector.shape_cast %13 : vector<1x1x256xf32> to vector<1x256xf32>
    %15 = vector.broadcast %14 : vector<1x256xf32> to vector<8x256xf32>
    %16 = arith.mulf %12, %15 : vector<8x256xf32>
    %c1 = arith.constant 1 : index
    %c0_14 = arith.constant 0 : index
    %c0_15 = arith.constant 0 : index
    %17 = vector.load %arg5[%c1, %c0_14, %c0_15] : memref<9x8x8xf32, #tpu.memory_space<vmem>>, vector<1x8x8xf32>
    %18 = vector.shape_cast %17 : vector<1x8x8xf32> to vector<8x8xf32>
    %cst_16 = arith.constant dense<0.000000e+00> : vector<8x256xf32>
    %19 = tpu.matmul %18, %8, %cst_16 {dimension_numbers = #tpu.dot_dimension_numbers<[1], [0], [0], [1], [0, 0, 1, 1], [], []>} : vector<8x8xf32>, vector<8x256xf32>, vector<8x256xf32> -> vector<8x256xf32>
    %c16_i32 = arith.constant 16 : i32
    %20 = tpu.dynamic_rotate %19 by %c16_i32 dim 1 : vector<8x256xf32>, i32 -> vector<8x256xf32>
    %c1_17 = arith.constant 1 : index
    %c0_18 = arith.constant 0 : index
    %c0_19 = arith.constant 0 : index
    %21 = vector.load %arg1[%c1_17, %c0_18, %c0_19] : memref<9x1x256xf32, #tpu.memory_space<vmem>>, vector<1x1x256xf32>
    %22 = vector.shape_cast %21 : vector<1x1x256xf32> to vector<1x256xf32>
    %23 = vector.broadcast %22 : vector<1x256xf32> to vector<8x256xf32>
    %24 = arith.mulf %20, %23 : vector<8x256xf32>
    %25 = arith.addf %16, %24 : vector<8x256xf32>
    %c2 = arith.constant 2 : index
    %c0_20 = arith.constant 0 : index
    %c0_21 = arith.constant 0 : index
    %26 = vector.load %arg5[%c2, %c0_20, %c0_21] : memref<9x8x8xf32, #tpu.memory_space<vmem>>, vector<1x8x8xf32>
    %27 = vector.shape_cast %26 : vector<1x8x8xf32> to vector<8x8xf32>
    %cst_22 = arith.constant dense<0.000000e+00> : vector<8x256xf32>
    %28 = tpu.matmul %27, %8, %cst_22 {dimension_numbers = #tpu.dot_dimension_numbers<[1], [0], [0], [1], [0, 0, 1, 1], [], []>} : vector<8x8xf32>, vector<8x256xf32>, vector<8x256xf32> -> vector<8x256xf32>
    %c15_i32 = arith.constant 15 : i32
    %29 = tpu.dynamic_rotate %28 by %c15_i32 dim 1 : vector<8x256xf32>, i32 -> vector<8x256xf32>
    %c2_23 = arith.constant 2 : index
    %c0_24 = arith.constant 0 : index
    %c0_25 = arith.constant 0 : index
    %30 = vector.load %arg1[%c2_23, %c0_24, %c0_25] : memref<9x1x256xf32, #tpu.memory_space<vmem>>, vector<1x1x256xf32>
    %31 = vector.shape_cast %30 : vector<1x1x256xf32> to vector<1x256xf32>
    %32 = vector.broadcast %31 : vector<1x256xf32> to vector<8x256xf32>
    %33 = arith.mulf %29, %32 : vector<8x256xf32>
    %34 = arith.addf %25, %33 : vector<8x256xf32>
    %c3 = arith.constant 3 : index
    %c0_26 = arith.constant 0 : index
    %c0_27 = arith.constant 0 : index
    %35 = vector.load %arg5[%c3, %c0_26, %c0_27] : memref<9x8x8xf32, #tpu.memory_space<vmem>>, vector<1x8x8xf32>
    %36 = vector.shape_cast %35 : vector<1x8x8xf32> to vector<8x8xf32>
    %cst_28 = arith.constant dense<0.000000e+00> : vector<8x256xf32>
    %37 = tpu.matmul %36, %8, %cst_28 {dimension_numbers = #tpu.dot_dimension_numbers<[1], [0], [0], [1], [0, 0, 1, 1], [], []>} : vector<8x8xf32>, vector<8x256xf32>, vector<8x256xf32> -> vector<8x256xf32>
    %c1_i32 = arith.constant 1 : i32
    %38 = tpu.dynamic_rotate %37 by %c1_i32 dim 1 : vector<8x256xf32>, i32 -> vector<8x256xf32>
    %c3_29 = arith.constant 3 : index
    %c0_30 = arith.constant 0 : index
    %c0_31 = arith.constant 0 : index
    %39 = vector.load %arg1[%c3_29, %c0_30, %c0_31] : memref<9x1x256xf32, #tpu.memory_space<vmem>>, vector<1x1x256xf32>
    %40 = vector.shape_cast %39 : vector<1x1x256xf32> to vector<1x256xf32>
    %41 = vector.broadcast %40 : vector<1x256xf32> to vector<8x256xf32>
    %42 = arith.mulf %38, %41 : vector<8x256xf32>
    %43 = arith.addf %34, %42 : vector<8x256xf32>
    %c4 = arith.constant 4 : index
    %c0_32 = arith.constant 0 : index
    %c0_33 = arith.constant 0 : index
    %44 = vector.load %arg5[%c4, %c0_32, %c0_33] : memref<9x8x8xf32, #tpu.memory_space<vmem>>, vector<1x8x8xf32>
    %45 = vector.shape_cast %44 : vector<1x8x8xf32> to vector<8x8xf32>
    %cst_34 = arith.constant dense<0.000000e+00> : vector<8x256xf32>
    %46 = tpu.matmul %45, %8, %cst_34 {dimension_numbers = #tpu.dot_dimension_numbers<[1], [0], [0], [1], [0, 0, 1, 1], [], []>} : vector<8x8xf32>, vector<8x256xf32>, vector<8x256xf32> -> vector<8x256xf32>
    %47 = arith.addf %43, %46 : vector<8x256xf32>
    %c5 = arith.constant 5 : index
    %c0_35 = arith.constant 0 : index
    %c0_36 = arith.constant 0 : index
    %48 = vector.load %arg5[%c5, %c0_35, %c0_36] : memref<9x8x8xf32, #tpu.memory_space<vmem>>, vector<1x8x8xf32>
    %49 = vector.shape_cast %48 : vector<1x8x8xf32> to vector<8x8xf32>
    %cst_37 = arith.constant dense<0.000000e+00> : vector<8x256xf32>
    %50 = tpu.matmul %49, %8, %cst_37 {dimension_numbers = #tpu.dot_dimension_numbers<[1], [0], [0], [1], [0, 0, 1, 1], [], []>} : vector<8x8xf32>, vector<8x256xf32>, vector<8x256xf32> -> vector<8x256xf32>
    %c255_i32 = arith.constant 255 : i32
    %51 = tpu.dynamic_rotate %50 by %c255_i32 dim 1 : vector<8x256xf32>, i32 -> vector<8x256xf32>
    %c5_38 = arith.constant 5 : index
    %c0_39 = arith.constant 0 : index
    %c0_40 = arith.constant 0 : index
    %52 = vector.load %arg1[%c5_38, %c0_39, %c0_40] : memref<9x1x256xf32, #tpu.memory_space<vmem>>, vector<1x1x256xf32>
    %53 = vector.shape_cast %52 : vector<1x1x256xf32> to vector<1x256xf32>
    %54 = vector.broadcast %53 : vector<1x256xf32> to vector<8x256xf32>
    %55 = arith.mulf %51, %54 : vector<8x256xf32>
    %56 = arith.addf %47, %55 : vector<8x256xf32>
    %c6 = arith.constant 6 : index
    %c0_41 = arith.constant 0 : index
    %c0_42 = arith.constant 0 : index
    %57 = vector.load %arg5[%c6, %c0_41, %c0_42] : memref<9x8x8xf32, #tpu.memory_space<vmem>>, vector<1x8x8xf32>
    %58 = vector.shape_cast %57 : vector<1x8x8xf32> to vector<8x8xf32>
    %cst_43 = arith.constant dense<0.000000e+00> : vector<8x256xf32>
    %59 = tpu.matmul %58, %8, %cst_43 {dimension_numbers = #tpu.dot_dimension_numbers<[1], [0], [0], [1], [0, 0, 1, 1], [], []>} : vector<8x8xf32>, vector<8x256xf32>, vector<8x256xf32> -> vector<8x256xf32>
    %c241_i32 = arith.constant 241 : i32
    %60 = tpu.dynamic_rotate %59 by %c241_i32 dim 1 : vector<8x256xf32>, i32 -> vector<8x256xf32>
    %c6_44 = arith.constant 6 : index
    %c0_45 = arith.constant 0 : index
    %c0_46 = arith.constant 0 : index
    %61 = vector.load %arg1[%c6_44, %c0_45, %c0_46] : memref<9x1x256xf32, #tpu.memory_space<vmem>>, vector<1x1x256xf32>
    %62 = vector.shape_cast %61 : vector<1x1x256xf32> to vector<1x256xf32>
    %63 = vector.broadcast %62 : vector<1x256xf32> to vector<8x256xf32>
    %64 = arith.mulf %60, %63 : vector<8x256xf32>
    %65 = arith.addf %56, %64 : vector<8x256xf32>
    %c7 = arith.constant 7 : index
    %c0_47 = arith.constant 0 : index
    %c0_48 = arith.constant 0 : index
    %66 = vector.load %arg5[%c7, %c0_47, %c0_48] : memref<9x8x8xf32, #tpu.memory_space<vmem>>, vector<1x8x8xf32>
    %67 = vector.shape_cast %66 : vector<1x8x8xf32> to vector<8x8xf32>
    %cst_49 = arith.constant dense<0.000000e+00> : vector<8x256xf32>
    %68 = tpu.matmul %67, %8, %cst_49 {dimension_numbers = #tpu.dot_dimension_numbers<[1], [0], [0], [1], [0, 0, 1, 1], [], []>} : vector<8x8xf32>, vector<8x256xf32>, vector<8x256xf32> -> vector<8x256xf32>
    %c240_i32 = arith.constant 240 : i32
    %69 = tpu.dynamic_rotate %68 by %c240_i32 dim 1 : vector<8x256xf32>, i32 -> vector<8x256xf32>
    %c7_50 = arith.constant 7 : index
    %c0_51 = arith.constant 0 : index
    %c0_52 = arith.constant 0 : index
    %70 = vector.load %arg1[%c7_50, %c0_51, %c0_52] : memref<9x1x256xf32, #tpu.memory_space<vmem>>, vector<1x1x256xf32>
    %71 = vector.shape_cast %70 : vector<1x1x256xf32> to vector<1x256xf32>
    %72 = vector.broadcast %71 : vector<1x256xf32> to vector<8x256xf32>
    %73 = arith.mulf %69, %72 : vector<8x256xf32>
    %74 = arith.addf %65, %73 : vector<8x256xf32>
    %c8 = arith.constant 8 : index
    %c0_53 = arith.constant 0 : index
    %c0_54 = arith.constant 0 : index
    %75 = vector.load %arg5[%c8, %c0_53, %c0_54] : memref<9x8x8xf32, #tpu.memory_space<vmem>>, vector<1x8x8xf32>
    %76 = vector.shape_cast %75 : vector<1x8x8xf32> to vector<8x8xf32>
    %cst_55 = arith.constant dense<0.000000e+00> : vector<8x256xf32>
    %77 = tpu.matmul %76, %8, %cst_55 {dimension_numbers = #tpu.dot_dimension_numbers<[1], [0], [0], [1], [0, 0, 1, 1], [], []>} : vector<8x8xf32>, vector<8x256xf32>, vector<8x256xf32> -> vector<8x256xf32>
    %c239_i32 = arith.constant 239 : i32
    %78 = tpu.dynamic_rotate %77 by %c239_i32 dim 1 : vector<8x256xf32>, i32 -> vector<8x256xf32>
    %c8_56 = arith.constant 8 : index
    %c0_57 = arith.constant 0 : index
    %c0_58 = arith.constant 0 : index
    %79 = vector.load %arg1[%c8_56, %c0_57, %c0_58] : memref<9x1x256xf32, #tpu.memory_space<vmem>>, vector<1x1x256xf32>
    %80 = vector.shape_cast %79 : vector<1x1x256xf32> to vector<1x256xf32>
    %81 = vector.broadcast %80 : vector<1x256xf32> to vector<8x256xf32>
    %82 = arith.mulf %78, %81 : vector<8x256xf32>
    %83 = arith.addf %74, %82 : vector<8x256xf32>
    %84 = vector.broadcast %2 : vector<8x1xf32> to vector<8x256xf32>
    %85 = arith.addf %83, %84 : vector<8x256xf32>
    %cst_59 = arith.constant 0.000000e+00 : f32
    %86 = vector.broadcast %cst_59 : f32 to vector<8x256xf32>
    %87 = arith.maximumf %85, %86 : vector<8x256xf32>
    %c0_60 = arith.constant 0 : index
    %c0_61 = arith.constant 0 : index
    %c0_62 = arith.constant 0 : index
    %88 = vector.load %arg7[%c0_60, %c0_61, %c0_62] : memref<2x8x256xf32, #tpu.memory_space<vmem>>, vector<1x8x256xf32>
    %89 = vector.shape_cast %88 : vector<1x8x256xf32> to vector<8x256xf32>
    %90 = vector.shape_cast %87 : vector<8x256xf32> to vector<1x8x256xf32>
    tpu.vector_store %arg7[%c0_60, %c0_61, %c0_62], %90 {strides = array<i32>} : memref<2x8x256xf32, #tpu.memory_space<vmem>>, vector<1x8x256xf32>,
    %cst_63 = arith.constant dense<0.000000e+00> : vector<8xf32>
    %91 = vector.multi_reduction <add>, %87, %cst_63 [1] : vector<8x256xf32> to vector<8xf32>
    %92 = vector.shape_cast %91 : vector<8xf32> to vector<8x1xf32>
    %c0_64 = arith.constant 0 : index
    %c0_65 = arith.constant 0 : index
    %c0_66 = arith.constant 0 : index
    %93 = vector.load %arg8[%c0_64, %c0_65, %c0_66] : memref<2x8x1xf32, #tpu.memory_space<vmem>>, vector<1x8x1xf32>
    %94 = vector.shape_cast %93 : vector<1x8x1xf32> to vector<8x1xf32>
    %95 = vector.shape_cast %92 : vector<8x1xf32> to vector<1x8x1xf32>
    tpu.vector_store %arg8[%c0_64, %c0_65, %c0_66], %95 {strides = array<i32>} : memref<2x8x1xf32, #tpu.memory_space<vmem>>, vector<1x8x1xf32>,
    %96 = arith.mulf %87, %87 : vector<8x256xf32>
    %cst_67 = arith.constant dense<0.000000e+00> : vector<8xf32>
    %97 = vector.multi_reduction <add>, %96, %cst_67 [1] : vector<8x256xf32> to vector<8xf32>
    %98 = vector.shape_cast %97 : vector<8xf32> to vector<8x1xf32>
    %c0_68 = arith.constant 0 : index
    %c0_69 = arith.constant 0 : index
    %c0_70 = arith.constant 0 : index
    %99 = vector.load %arg9[%c0_68, %c0_69, %c0_70] : memref<2x8x1xf32, #tpu.memory_space<vmem>>, vector<1x8x1xf32>
    %100 = vector.shape_cast %99 : vector<1x8x1xf32> to vector<8x1xf32>
    %101 = vector.shape_cast %98 : vector<8x1xf32> to vector<1x8x1xf32>
    tpu.vector_store %arg9[%c0_68, %c0_69, %c0_70], %101 {strides = array<i32>} : memref<2x8x1xf32, #tpu.memory_space<vmem>>, vector<1x8x1xf32>,
    %c1_71 = arith.constant 1 : index
    %c0_72 = arith.constant 0 : index
    %c0_73 = arith.constant 0 : index
    %102 = vector.load %arg2[%c1_71, %c0_72, %c0_73] : memref<2x8x256xf32, #tpu.memory_space<vmem>>, vector<1x8x256xf32>
    %103 = vector.shape_cast %102 : vector<1x8x256xf32> to vector<8x256xf32>
    %104 = vector.broadcast %0 : vector<8x1xf32> to vector<8x256xf32>
    %105 = arith.mulf %103, %104 : vector<8x256xf32>
    %106 = vector.broadcast %1 : vector<8x1xf32> to vector<8x256xf32>
    %107 = arith.addf %105, %106 : vector<8x256xf32>
    %c0_74 = arith.constant 0 : index
    %c0_75 = arith.constant 0 : index
    %c0_76 = arith.constant 0 : index
    %108 = vector.load %arg5[%c0_74, %c0_75, %c0_76] : memref<9x8x8xf32, #tpu.memory_space<vmem>>, vector<1x8x8xf32>
    %109 = vector.shape_cast %108 : vector<1x8x8xf32> to vector<8x8xf32>
    %cst_77 = arith.constant dense<0.000000e+00> : vector<8x256xf32>
    %110 = tpu.matmul %109, %107, %cst_77 {dimension_numbers = #tpu.dot_dimension_numbers<[1], [0], [0], [1], [0, 0, 1, 1], [], []>} : vector<8x8xf32>, vector<8x256xf32>, vector<8x256xf32> -> vector<8x256xf32>
    %c17_i32_78 = arith.constant 17 : i32
    %111 = tpu.dynamic_rotate %110 by %c17_i32_78 dim 1 : vector<8x256xf32>, i32 -> vector<8x256xf32>
    %c0_79 = arith.constant 0 : index
    %c0_80 = arith.constant 0 : index
    %c0_81 = arith.constant 0 : index
    %112 = vector.load %arg1[%c0_79, %c0_80, %c0_81] : memref<9x1x256xf32, #tpu.memory_space<vmem>>, vector<1x1x256xf32>
    %113 = vector.shape_cast %112 : vector<1x1x256xf32> to vector<1x256xf32>
    %114 = vector.broadcast %113 : vector<1x256xf32> to vector<8x256xf32>
    %115 = arith.mulf %111, %114 : vector<8x256xf32>
    %c1_82 = arith.constant 1 : index
    %c0_83 = arith.constant 0 : index
    %c0_84 = arith.constant 0 : index
    %116 = vector.load %arg5[%c1_82, %c0_83, %c0_84] : memref<9x8x8xf32, #tpu.memory_space<vmem>>, vector<1x8x8xf32>
    %117 = vector.shape_cast %116 : vector<1x8x8xf32> to vector<8x8xf32>
    %cst_85 = arith.constant dense<0.000000e+00> : vector<8x256xf32>
    %118 = tpu.matmul %117, %107, %cst_85 {dimension_numbers = #tpu.dot_dimension_numbers<[1], [0], [0], [1], [0, 0, 1, 1], [], []>} : vector<8x8xf32>, vector<8x256xf32>, vector<8x256xf32> -> vector<8x256xf32>
    %c16_i32_86 = arith.constant 16 : i32
    %119 = tpu.dynamic_rotate %118 by %c16_i32_86 dim 1 : vector<8x256xf32>, i32 -> vector<8x256xf32>
    %c1_87 = arith.constant 1 : index
    %c0_88 = arith.constant 0 : index
    %c0_89 = arith.constant 0 : index
    %120 = vector.load %arg1[%c1_87, %c0_88, %c0_89] : memref<9x1x256xf32, #tpu.memory_space<vmem>>, vector<1x1x256xf32>
    %121 = vector.shape_cast %120 : vector<1x1x256xf32> to vector<1x256xf32>
    %122 = vector.broadcast %121 : vector<1x256xf32> to vector<8x256xf32>
    %123 = arith.mulf %119, %122 : vector<8x256xf32>
    %124 = arith.addf %115, %123 : vector<8x256xf32>
    %c2_90 = arith.constant 2 : index
    %c0_91 = arith.constant 0 : index
    %c0_92 = arith.constant 0 : index
    %125 = vector.load %arg5[%c2_90, %c0_91, %c0_92] : memref<9x8x8xf32, #tpu.memory_space<vmem>>, vector<1x8x8xf32>
    %126 = vector.shape_cast %125 : vector<1x8x8xf32> to vector<8x8xf32>
    %cst_93 = arith.constant dense<0.000000e+00> : vector<8x256xf32>
    %127 = tpu.matmul %126, %107, %cst_93 {dimension_numbers = #tpu.dot_dimension_numbers<[1], [0], [0], [1], [0, 0, 1, 1], [], []>} : vector<8x8xf32>, vector<8x256xf32>, vector<8x256xf32> -> vector<8x256xf32>
    %c15_i32_94 = arith.constant 15 : i32
    %128 = tpu.dynamic_rotate %127 by %c15_i32_94 dim 1 : vector<8x256xf32>, i32 -> vector<8x256xf32>
    %c2_95 = arith.constant 2 : index
    %c0_96 = arith.constant 0 : index
    %c0_97 = arith.constant 0 : index
    %129 = vector.load %arg1[%c2_95, %c0_96, %c0_97] : memref<9x1x256xf32, #tpu.memory_space<vmem>>, vector<1x1x256xf32>
    %130 = vector.shape_cast %129 : vector<1x1x256xf32> to vector<1x256xf32>
    %131 = vector.broadcast %130 : vector<1x256xf32> to vector<8x256xf32>
    %132 = arith.mulf %128, %131 : vector<8x256xf32>
    %133 = arith.addf %124, %132 : vector<8x256xf32>
    %c3_98 = arith.constant 3 : index
    %c0_99 = arith.constant 0 : index
    %c0_100 = arith.constant 0 : index
    %134 = vector.load %arg5[%c3_98, %c0_99, %c0_100] : memref<9x8x8xf32, #tpu.memory_space<vmem>>, vector<1x8x8xf32>
    %135 = vector.shape_cast %134 : vector<1x8x8xf32> to vector<8x8xf32>
    %cst_101 = arith.constant dense<0.000000e+00> : vector<8x256xf32>
    %136 = tpu.matmul %135, %107, %cst_101 {dimension_numbers = #tpu.dot_dimension_numbers<[1], [0], [0], [1], [0, 0, 1, 1], [], []>} : vector<8x8xf32>, vector<8x256xf32>, vector<8x256xf32> -> vector<8x256xf32>
    %c1_i32_102 = arith.constant 1 : i32
    %137 = tpu.dynamic_rotate %136 by %c1_i32_102 dim 1 : vector<8x256xf32>, i32 -> vector<8x256xf32>
    %c3_103 = arith.constant 3 : index
    %c0_104 = arith.constant 0 : index
    %c0_105 = arith.constant 0 : index
    %138 = vector.load %arg1[%c3_103, %c0_104, %c0_105] : memref<9x1x256xf32, #tpu.memory_space<vmem>>, vector<1x1x256xf32>
    %139 = vector.shape_cast %138 : vector<1x1x256xf32> to vector<1x256xf32>
    %140 = vector.broadcast %139 : vector<1x256xf32> to vector<8x256xf32>
    %141 = arith.mulf %137, %140 : vector<8x256xf32>
    %142 = arith.addf %133, %141 : vector<8x256xf32>
    %c4_106 = arith.constant 4 : index
    %c0_107 = arith.constant 0 : index
    %c0_108 = arith.constant 0 : index
    %143 = vector.load %arg5[%c4_106, %c0_107, %c0_108] : memref<9x8x8xf32, #tpu.memory_space<vmem>>, vector<1x8x8xf32>
    %144 = vector.shape_cast %143 : vector<1x8x8xf32> to vector<8x8xf32>
    %cst_109 = arith.constant dense<0.000000e+00> : vector<8x256xf32>
    %145 = tpu.matmul %144, %107, %cst_109 {dimension_numbers = #tpu.dot_dimension_numbers<[1], [0], [0], [1], [0, 0, 1, 1], [], []>} : vector<8x8xf32>, vector<8x256xf32>, vector<8x256xf32> -> vector<8x256xf32>
    %146 = arith.addf %142, %145 : vector<8x256xf32>
    %c5_110 = arith.constant 5 : index
    %c0_111 = arith.constant 0 : index
    %c0_112 = arith.constant 0 : index
    %147 = vector.load %arg5[%c5_110, %c0_111, %c0_112] : memref<9x8x8xf32, #tpu.memory_space<vmem>>, vector<1x8x8xf32>
    %148 = vector.shape_cast %147 : vector<1x8x8xf32> to vector<8x8xf32>
    %cst_113 = arith.constant dense<0.000000e+00> : vector<8x256xf32>
    %149 = tpu.matmul %148, %107, %cst_113 {dimension_numbers = #tpu.dot_dimension_numbers<[1], [0], [0], [1], [0, 0, 1, 1], [], []>} : vector<8x8xf32>, vector<8x256xf32>, vector<8x256xf32> -> vector<8x256xf32>
    %c255_i32_114 = arith.constant 255 : i32
    %150 = tpu.dynamic_rotate %149 by %c255_i32_114 dim 1 : vector<8x256xf32>, i32 -> vector<8x256xf32>
    %c5_115 = arith.constant 5 : index
    %c0_116 = arith.constant 0 : index
    %c0_117 = arith.constant 0 : index
    %151 = vector.load %arg1[%c5_115, %c0_116, %c0_117] : memref<9x1x256xf32, #tpu.memory_space<vmem>>, vector<1x1x256xf32>
    %152 = vector.shape_cast %151 : vector<1x1x256xf32> to vector<1x256xf32>
    %153 = vector.broadcast %152 : vector<1x256xf32> to vector<8x256xf32>
    %154 = arith.mulf %150, %153 : vector<8x256xf32>
    %155 = arith.addf %146, %154 : vector<8x256xf32>
    %c6_118 = arith.constant 6 : index
    %c0_119 = arith.constant 0 : index
    %c0_120 = arith.constant 0 : index
    %156 = vector.load %arg5[%c6_118, %c0_119, %c0_120] : memref<9x8x8xf32, #tpu.memory_space<vmem>>, vector<1x8x8xf32>
    %157 = vector.shape_cast %156 : vector<1x8x8xf32> to vector<8x8xf32>
    %cst_121 = arith.constant dense<0.000000e+00> : vector<8x256xf32>
    %158 = tpu.matmul %157, %107, %cst_121 {dimension_numbers = #tpu.dot_dimension_numbers<[1], [0], [0], [1], [0, 0, 1, 1], [], []>} : vector<8x8xf32>, vector<8x256xf32>, vector<8x256xf32> -> vector<8x256xf32>
    %c241_i32_122 = arith.constant 241 : i32
    %159 = tpu.dynamic_rotate %158 by %c241_i32_122 dim 1 : vector<8x256xf32>, i32 -> vector<8x256xf32>
    %c6_123 = arith.constant 6 : index
    %c0_124 = arith.constant 0 : index
    %c0_125 = arith.constant 0 : index
    %160 = vector.load %arg1[%c6_123, %c0_124, %c0_125] : memref<9x1x256xf32, #tpu.memory_space<vmem>>, vector<1x1x256xf32>
    %161 = vector.shape_cast %160 : vector<1x1x256xf32> to vector<1x256xf32>
    %162 = vector.broadcast %161 : vector<1x256xf32> to vector<8x256xf32>
    %163 = arith.mulf %159, %162 : vector<8x256xf32>
    %164 = arith.addf %155, %163 : vector<8x256xf32>
    %c7_126 = arith.constant 7 : index
    %c0_127 = arith.constant 0 : index
    %c0_128 = arith.constant 0 : index
    %165 = vector.load %arg5[%c7_126, %c0_127, %c0_128] : memref<9x8x8xf32, #tpu.memory_space<vmem>>, vector<1x8x8xf32>
    %166 = vector.shape_cast %165 : vector<1x8x8xf32> to vector<8x8xf32>
    %cst_129 = arith.constant dense<0.000000e+00> : vector<8x256xf32>
    %167 = tpu.matmul %166, %107, %cst_129 {dimension_numbers = #tpu.dot_dimension_numbers<[1], [0], [0], [1], [0, 0, 1, 1], [], []>} : vector<8x8xf32>, vector<8x256xf32>, vector<8x256xf32> -> vector<8x256xf32>
    %c240_i32_130 = arith.constant 240 : i32
    %168 = tpu.dynamic_rotate %167 by %c240_i32_130 dim 1 : vector<8x256xf32>, i32 -> vector<8x256xf32>
    %c7_131 = arith.constant 7 : index
    %c0_132 = arith.constant 0 : index
    %c0_133 = arith.constant 0 : index
    %169 = vector.load %arg1[%c7_131, %c0_132, %c0_133] : memref<9x1x256xf32, #tpu.memory_space<vmem>>, vector<1x1x256xf32>
    %170 = vector.shape_cast %169 : vector<1x1x256xf32> to vector<1x256xf32>
    %171 = vector.broadcast %170 : vector<1x256xf32> to vector<8x256xf32>
    %172 = arith.mulf %168, %171 : vector<8x256xf32>
    %173 = arith.addf %164, %172 : vector<8x256xf32>
    %c8_134 = arith.constant 8 : index
    %c0_135 = arith.constant 0 : index
    %c0_136 = arith.constant 0 : index
    %174 = vector.load %arg5[%c8_134, %c0_135, %c0_136] : memref<9x8x8xf32, #tpu.memory_space<vmem>>, vector<1x8x8xf32>
    %175 = vector.shape_cast %174 : vector<1x8x8xf32> to vector<8x8xf32>
    %cst_137 = arith.constant dense<0.000000e+00> : vector<8x256xf32>
    %176 = tpu.matmul %175, %107, %cst_137 {dimension_numbers = #tpu.dot_dimension_numbers<[1], [0], [0], [1], [0, 0, 1, 1], [], []>} : vector<8x8xf32>, vector<8x256xf32>, vector<8x256xf32> -> vector<8x256xf32>
    %c239_i32_138 = arith.constant 239 : i32
    %177 = tpu.dynamic_rotate %176 by %c239_i32_138 dim 1 : vector<8x256xf32>, i32 -> vector<8x256xf32>
    %c8_139 = arith.constant 8 : index
    %c0_140 = arith.constant 0 : index
    %c0_141 = arith.constant 0 : index
    %178 = vector.load %arg1[%c8_139, %c0_140, %c0_141] : memref<9x1x256xf32, #tpu.memory_space<vmem>>, vector<1x1x256xf32>
    %179 = vector.shape_cast %178 : vector<1x1x256xf32> to vector<1x256xf32>
    %180 = vector.broadcast %179 : vector<1x256xf32> to vector<8x256xf32>
    %181 = arith.mulf %177, %180 : vector<8x256xf32>
    %182 = arith.addf %173, %181 : vector<8x256xf32>
    %183 = vector.broadcast %2 : vector<8x1xf32> to vector<8x256xf32>
    %184 = arith.addf %182, %183 : vector<8x256xf32>
    %cst_142 = arith.constant 0.000000e+00 : f32
    %185 = vector.broadcast %cst_142 : f32 to vector<8x256xf32>
    %186 = arith.maximumf %184, %185 : vector<8x256xf32>
    %c1_143 = arith.constant 1 : index
    %c0_144 = arith.constant 0 : index
    %c0_145 = arith.constant 0 : index
    %187 = vector.load %arg7[%c1_143, %c0_144, %c0_145] : memref<2x8x256xf32, #tpu.memory_space<vmem>>, vector<1x8x256xf32>
    %188 = vector.shape_cast %187 : vector<1x8x256xf32> to vector<8x256xf32>
    %189 = vector.shape_cast %186 : vector<8x256xf32> to vector<1x8x256xf32>
    tpu.vector_store %arg7[%c1_143, %c0_144, %c0_145], %189 {strides = array<i32>} : memref<2x8x256xf32, #tpu.memory_space<vmem>>, vector<1x8x256xf32>,
    %cst_146 = arith.constant dense<0.000000e+00> : vector<8xf32>
    %190 = vector.multi_reduction <add>, %186, %cst_146 [1] : vector<8x256xf32> to vector<8xf32>
    %191 = vector.shape_cast %190 : vector<8xf32> to vector<8x1xf32>
    %c1_147 = arith.constant 1 : index
    %c0_148 = arith.constant 0 : index
    %c0_149 = arith.constant 0 : index
    %192 = vector.load %arg8[%c1_147, %c0_148, %c0_149] : memref<2x8x1xf32, #tpu.memory_space<vmem>>, vector<1x8x1xf32>
    %193 = vector.shape_cast %192 : vector<1x8x1xf32> to vector<8x1xf32>
    %194 = vector.shape_cast %191 : vector<8x1xf32> to vector<1x8x1xf32>
    tpu.vector_store %arg8[%c1_147, %c0_148, %c0_149], %194 {strides = array<i32>} : memref<2x8x1xf32, #tpu.memory_space<vmem>>, vector<1x8x1xf32>,
    %195 = arith.mulf %186, %186 : vector<8x256xf32>
    %cst_150 = arith.constant dense<0.000000e+00> : vector<8xf32>
    %196 = vector.multi_reduction <add>, %195, %cst_150 [1] : vector<8x256xf32> to vector<8xf32>
    %197 = vector.shape_cast %196 : vector<8xf32> to vector<8x1xf32>
    %c1_151 = arith.constant 1 : index
    %c0_152 = arith.constant 0 : index
    %c0_153 = arith.constant 0 : index
    %198 = vector.load %arg9[%c1_151, %c0_152, %c0_153] : memref<2x8x1xf32, #tpu.memory_space<vmem>>, vector<1x8x1xf32>
    %199 = vector.shape_cast %198 : vector<1x8x1xf32> to vector<8x1xf32>
    %200 = vector.shape_cast %197 : vector<8x1xf32> to vector<1x8x1xf32>
    tpu.vector_store %arg9[%c1_151, %c0_152, %c0_153], %200 {strides = array<i32>} : memref<2x8x1xf32, #tpu.memory_space<vmem>>, vector<1x8x1xf32>,
    return
  }
  func.func @transform_0(%arg0: i32) -> (i32, i32, i32) {
    %c0_i32 = arith.constant 0 : i32
    %c0_i32_0 = arith.constant 0 : i32
    %c0_i32_1 = arith.constant 0 : i32
    %c0_i32_2 = arith.constant 0 : i32
    return %c0_i32, %c0_i32_0, %c0_i32_1 : i32, i32, i32
  }
  func.func @transform_1(%arg0: i32) -> (i32, i32, i32) {
    %c0_i32 = arith.constant 0 : i32
    %c0_i32_0 = arith.constant 0 : i32
    %c0_i32_1 = arith.constant 0 : i32
    return %arg0, %c0_i32, %c0_i32_0 : i32, i32, i32
  }
  func.func @transform_2(%arg0: i32) -> (i32, i32) {
    %c0_i32 = arith.constant 0 : i32
    %c0_i32_0 = arith.constant 0 : i32
    %c0_i32_1 = arith.constant 0 : i32
    return %c0_i32, %c0_i32_0 : i32, i32
  }
  func.func @transform_3(%arg0: i32) -> (i32, i32) {
    %c0_i32 = arith.constant 0 : i32
    %c0_i32_0 = arith.constant 0 : i32
    %c0_i32_1 = arith.constant 0 : i32
    return %c0_i32, %c0_i32_0 : i32, i32
  }
  func.func @transform_4(%arg0: i32) -> (i32, i32, i32) {
    %c0_i32 = arith.constant 0 : i32
    %c0_i32_0 = arith.constant 0 : i32
    %c0_i32_1 = arith.constant 0 : i32
    %c0_i32_2 = arith.constant 0 : i32
    return %c0_i32, %c0_i32_0, %c0_i32_1 : i32, i32, i32
  }
  func.func @transform_5(%arg0: i32) -> (i32, i32) {
    %c0_i32 = arith.constant 0 : i32
    %c0_i32_0 = arith.constant 0 : i32
    %c0_i32_1 = arith.constant 0 : i32
    return %c0_i32, %c0_i32_0 : i32, i32
  }
  func.func @transform_6(%arg0: i32) -> (i32, i32, i32) {
    %c0_i32 = arith.constant 0 : i32
    %c0_i32_0 = arith.constant 0 : i32
    %c0_i32_1 = arith.constant 0 : i32
    return %arg0, %c0_i32, %c0_i32_0 : i32, i32, i32
  }
  func.func @transform_7(%arg0: i32) -> (i32, i32, i32) {
    %c0_i32 = arith.constant 0 : i32
    %c0_i32_0 = arith.constant 0 : i32
    %c0_i32_1 = arith.constant 0 : i32
    return %arg0, %c0_i32, %c0_i32_0 : i32, i32, i32
  }
  func.func @transform_8(%arg0: i32) -> (i32, i32, i32) {
    %c0_i32 = arith.constant 0 : i32
    %c0_i32_0 = arith.constant 0 : i32
    %c0_i32_1 = arith.constant 0 : i32
    return %arg0, %c0_i32, %c0_i32_0 : i32, i32, i32
  }
}

</mosaic_0001>

<bundles_post_ra>
// kernel: tile.0
= control target key start
LH: loop header
LB: loop body
LE: loop exit
PB: predicated region body
PF: predicated region fallthrough
CT: control target
= control target key end

     0   :  { %s67_s8 = smov 125   ;;  %vm8_vm0 = vcmask 7168   ;;  %s68_s11 = smov 126   ;;  %s118_s0 = inlined_call_operand.vmem [shape: f32[4,8], index: 0, kind: input, shape index: {}]   ;;  %s119_s1 = inlined_call_operand.vmem [shape: f32[32,1], index: 1, kind: output, shape index: {}]  }
   0x1   :  { %v5_v0 = vld [vmem:[%s118_s0] sm:$0xf]  ;;  %s66_s0 = smov 127   ;;  %s69_s12 = smov 124  }
   0x2   :  { %6 = vst [vmem:[#allocation0] sm:$0xf] %v5_v0  ;;  %s70_s13 = smov 123   ;;  %s71_s14 = smov 122  }
   0x3   :  { %s72_s15 = smov 121  }
   0x9   :  { %v10_v1 = vld [vmem:[#allocation0] sm:$0xf]  }
   0xa   :  { %v22_v2 = vld [vmem:[#allocation0] sm:$0xf]   ;;  %11 = vrot.lane.b32.xlu0 %v10_v1, %s66_s0 }
   0xb   :  { %23 = vrot.lane.b32.xlu1 %v22_v2, %s67_s8  ;;  %v16_v3 = vld [vmem:[#allocation0] sm:$0xf]  }
   0xc   :  { %v28_v4 = vld [vmem:[#allocation0] sm:$0xf]  }
   0xd   :  { %v7_v5 = vld [vmem:[#allocation0] sm:$0xf]  }
   0xe   :  { %9 = vst.msk [vmem:[%s119_s1] ss:$8 sm:$0xf] %vm8_vm0, %v7_v5   ;;  %17 = vrot.lane.b32.xlu0 %v16_v3, %s68_s11  ;;  %v34_v6 = vld [vmem:[#allocation0] sm:$0xf]  }
   0xf   :  { %29 = vrot.lane.b32.xlu1 %v28_v4, %s69_s12  ;;  %v40_v7 = vld [vmem:[#allocation0] sm:$0xf]  }
  0x10   :  { %v46_v8 = vld [vmem:[#allocation0] sm:$0xf]  }
  0x12   :  { %35 = vrot.lane.b32.xlu0 %v34_v6, %s70_s13 }
  0x13   :  { %41 = vrot.lane.b32.xlu1 %v40_v7, %s71_s14 }
  0x16   :  { %47 = vrot.lane.b32.xlu0 %v46_v8, %s72_s15 }
  0x7c   :  { %v12_v9 = vpop.permute.xlu0 %11  }
  0x7d   :  { %v24_v10 = vpop.permute.xlu1 %23   ;;  %52 = vst.msk [vmem:[%s119_s1 + $0x1] ss:$8 sm:$0xf] %vm8_vm0, %v12_v9  }
  0x7e   :  { %54 = vst.msk [vmem:[%s119_s1 + $0x3] ss:$8 sm:$0xf] %vm8_vm0, %v24_v10  }
  0x80   :  { %v18_v11 = vpop.permute.xlu0 %17  }
  0x81   :  { %v30_v12 = vpop.permute.xlu1 %29   ;;  %53 = vst.msk [vmem:[%s119_s1 + $0x2] ss:$8 sm:$0xf] %vm8_vm0, %v18_v11  }
  0x82   :  { %55 = vst.msk [vmem:[%s119_s1 + $0x4] ss:$8 sm:$0xf] %vm8_vm0, %v30_v12  }
  0x84   :  { %v36_v13 = vpop.permute.xlu0 %35  }
  0x85   :  { %v42_v14 = vpop.permute.xlu1 %41   ;;  %56 = vst.msk [vmem:[%s119_s1 + $0x5] ss:$8 sm:$0xf] %vm8_vm0, %v36_v13  }
  0x86   :  { %57 = vst.msk [vmem:[%s119_s1 + $0x6] ss:$8 sm:$0xf] %vm8_vm0, %v42_v14  }
  0x88   :  { %v48_v15 = vpop.permute.xlu0 %47  }
  0x89   :  { %58 = vst.msk [vmem:[%s119_s1 + $0x7] ss:$8 sm:$0xf] %vm8_vm0, %v48_v15  }

// kernel: tile.8
= control target key start
LH: loop header
LB: loop body
LE: loop exit
PB: predicated region body
PF: predicated region fallthrough
CT: control target
= control target key end

     0   :  { %s22_s0 = inlined_call_operand.vmem [shape: f32[8], index: 0, kind: input, shape index: {}]   ;;  %s23_s1 = inlined_call_operand.vmem [shape: f32[4,8], index: 1, kind: output, shape index: {}]  }
   0x1   :  { %v4_v0 = vld [vmem:[%s22_s0] ss:$0 sm:$0xff] }
   0x2   :  { %5 = vst [vmem:[%s23_s1] sm:$0xf] %v4_v0 }

// kernel: upconvblock_forward.4
= control target key start
LH: loop header
LB: loop body
LE: loop exit
PB: predicated region body
PF: predicated region fallthrough
CT: control target
= control target key end

     0   :  { %vm43_vm0 = vcmask 64512   ;;  %v284_v3 = vmov 0   ;;  %vm141_vm1 = vcmask 523264   ;;  %s375_s0 = inlined_call_operand.vmem [shape: f32[2,8,64], index: 0, kind: input, shape index: {}]   ;;  %s376_s1 = inlined_call_operand.vmem [shape: f32[32,8], index: 1, kind: input, shape index: {}]   ;;  %s377_s2 = inlined_call_operand.vmem [shape: f32[32,1], index: 2, kind: input, shape index: {}]   ;;  %s378_s3 = inlined_call_operand.vmem [shape: f32[2,32,64], index: 3, kind: output, shape index: {}]  }
   0x1   :  { %v22_v0 = vld [vmem:[%s375_s0] sm:$0xff]  ;;  %v246_v1 = vld [vmem:[%s375_s0 + $0x8] sm:$0xff]  ;;  %282 = vset.pattern.permute.xlu0 %v284_v3  ;;  %283 = vset.pattern.permute.xlu1 %v284_v3  ;;  %v16_v5 = vld [vmem:[%s376_s1 + $0x10] sm:$0xff] }
   0x2   :  { %v14_v2 = vld [vmem:[%s376_s1] sm:$0xff]  ;;  %265 = vmatprep.subr.mxu0 %v22_v0  ;;  %273 = vmatprep.subr.mxu1 %v246_v1  ;;  %v15_v4 = vld [vmem:[%s376_s1 + $0x8] sm:$0xff]  ;;  %v20_v7 = vld [vmem:[%s377_s2 + $0x10] sm:$0xff] }
   0x3   :  { %266 = vmatpush3.msra.mxu0 %v22_v0  ;;  %267 = vmatprep.mubr.msk.f32.mxu0 %vm43_vm0, %v14_v2  ;;  %v18_v6 = vld [vmem:[%s377_s2] sm:$0xff]  ;;  %v17_v8 = vld [vmem:[%s376_s1 + $0x18] sm:$0xff]  ;;  %v19_v9 = vld [vmem:[%s377_s2 + $0x8] sm:$0xff] }
   0x4   :  { %274 = vmatpush3.msra.mxu1 %v246_v1  ;;  %275 = vmatprep.mubr.msk.f32.mxu1 %vm43_vm0, %v14_v2  ;;  %v21_v10 = vld [vmem:[%s377_s2 + $0x18] sm:$0xff] }
   0x5   :  { %268 = vmatmul.mubr.msk.f32.vlgmr.msra.gmra.mxu0 %vm43_vm0, %v15_v4  ;;  %276 = vmatmul.mubr.msk.f32.vlgmr.msra.gmra.mxu1 %vm43_vm0, %v15_v4 }
   0x6   :  { %270 = vmatprep.mubr.msk.f32.mxu0 %vm43_vm0, %v16_v5  ;;  %278 = vmatprep.mubr.msk.f32.mxu1 %vm43_vm0, %v16_v5 }
   0x7   :  { %25 = vperm.xlu0 %282, %v18_v6   ;;  %35 = vperm.xlu1 %283, %v20_v7  }
   0x9   :  { %271 = vmatmul.mubr.msk.f32.gmra.mxu0 %vm43_vm0, %v17_v8  ;;  %279 = vmatmul.mubr.msk.f32.gmra.mxu1 %vm43_vm0, %v17_v8 }
   0xb   :  { %30 = vperm.xlu0 %282, %v19_v9   ;;  %40 = vperm.xlu1 %283, %v21_v10  }
  0x82   :  { %v26_v11 = vpop.permute.xlu0 %25  ;;  %v36_v12 = vpop.permute.xlu1 %35 }
  0x86   :  { %v31_v13 = vpop.permute.xlu0 %30  ;;  %v41_v20 = vpop.permute.xlu1 %40 }
  0xc5   :  { %v269_v14 = vpop.f32.mrf.mxu0  ;;  %v277_v15 = vpop.f32.mrf.mxu1 }
  0xc6   :  { %v128_v16 = vadd.f32 %v269_v14, %v31_v13  ;;  %v220_v17 = vadd.f32 %v277_v15, %v31_v13 }
  0xc7   :  { %v122_v18 = vpop.f32.mrf.mxu0  ;;  %v214_v19 = vpop.f32.mrf.mxu1 }
  0xc8   :  { %143 = vst.msk [vmem:[%s378_s3 + $0x8] sm:$0xff] %vm141_vm1, %v128_v16  ;;  %252 = vst.msk [vmem:[%s378_s3 + $0x28] sm:$0xff] %vm141_vm1, %v220_v17  ;;  %v123_v21 = vadd.f32 %v122_v18, %v26_v11  ;;  %v215_v22 = vadd.f32 %v214_v19, %v26_v11 }
  0xc9   :  { %v272_v23 = vpop.f32.mrf.mxu0  ;;  %v280_v24 = vpop.f32.mrf.mxu1 }
  0xca   :  { %142 = vst.msk [vmem:[%s378_s3] sm:$0xff] %vm141_vm1, %v123_v21  ;;  %251 = vst.msk [vmem:[%s378_s3 + $0x20] sm:$0xff] %vm141_vm1, %v215_v22  ;;  %v138_v25 = vadd.f32 %v272_v23, %v41_v20  ;;  %v230_v26 = vadd.f32 %v280_v24, %v41_v20 }
  0xcb   :  { %v132_v27 = vpop.f32.mrf.mxu0  ;;  %v224_v28 = vpop.f32.mrf.mxu1 }
  0xcc   :  { %145 = vst.msk [vmem:[%s378_s3 + $0x18] sm:$0xff] %vm141_vm1, %v138_v25  ;;  %254 = vst.msk [vmem:[%s378_s3 + $0x38] sm:$0xff] %vm141_vm1, %v230_v26  ;;  %v133_v29 = vadd.f32 %v132_v27, %v36_v12  ;;  %v225_v30 = vadd.f32 %v224_v28, %v36_v12 }
  0xce   :  { %144 = vst.msk [vmem:[%s378_s3 + $0x10] sm:$0xff] %vm141_vm1, %v133_v29  ;;  %253 = vst.msk [vmem:[%s378_s3 + $0x30] sm:$0xff] %vm141_vm1, %v225_v30 }

// kernel: upconvblock_forward.7
= control target key start
LH: loop header
LB: loop body
LE: loop exit
PB: predicated region body
PF: predicated region fallthrough
CT: control target
= control target key end

     0   :  { %v59_v0 = vmov 0   ;;  %s127_s1 = inlined_call_operand.vmem [shape: f32[8,1], index: 1, kind: input, shape index: {}]   ;;  %s128_s2 = inlined_call_operand.vmem [shape: f32[8,1], index: 2, kind: input, shape index: {}]   ;;  %s129_s0 = inlined_call_operand.vmem [shape: f32[2,8,256], index: 0, kind: input, shape index: {}]   ;;  %s130_s3 = inlined_call_operand.vmem [shape: f32[2,8,256], index: 3, kind: input, shape index: {}]   ;;  %s131_s4 = inlined_call_operand.vmem [shape: f32[2,8,256], index: 4, kind: output, shape index: {}]  }
   0x1   :  { %58 = vset.pattern.permute.xlu0 %v59_v0  ;;  %v21_v1 = vld [vmem:[%s127_s1] sm:$0xff]  ;;  %v18_v5 = vld [vmem:[%s129_s0 + $0x8] sm:$0xff]  ;;  %v19_v6 = vld [vmem:[%s129_s0 + $0x10] sm:$0xff] }
   0x2   :  { %24 = vperm.xlu0 %58, %v21_v1   ;;  %v31_v2 = vld [vmem:[%s128_s2] sm:$0xff]  ;;  %v20_v7 = vld [vmem:[%s129_s0 + $0x18] sm:$0xff]  ;;  %v42_v13 = vld [vmem:[%s130_s3 + $0x8] sm:$0xff] }
   0x3   :  { %v17_v3 = vld [vmem:[%s129_s0] sm:$0xff]  ;;  %v43_v14 = vld [vmem:[%s130_s3 + $0x10] sm:$0xff]  ;;  %v44_v15 = vld [vmem:[%s130_s3 + $0x18] sm:$0xff] }
   0x4   :  { %v41_v8 = vld [vmem:[%s130_s3] sm:$0xff] }
   0x6   :  { %34 = vperm.xlu0 %58, %v31_v2  }
  0x7d   :  { %v25_v4 = vpop.permute.xlu0 %24 }
  0x7e   :  { %v27_v9 = vmul.f32 %v25_v4, %v17_v3  ;;  %v28_v10 = vmul.f32 %v25_v4, %v18_v5  ;;  %v29_v11 = vmul.f32 %v25_v4, %v19_v6  ;;  %v30_v12 = vmul.f32 %v25_v4, %v20_v7 }
  0x81   :  { %v35_v16 = vpop.permute.xlu0 %34 }
  0x82   :  { %v37_v17 = vadd.f32 %v35_v16, %v27_v9  ;;  %v38_v18 = vadd.f32 %v35_v16, %v28_v10  ;;  %v39_v19 = vadd.f32 %v35_v16, %v29_v11  ;;  %v40_v20 = vadd.f32 %v35_v16, %v30_v12 }
  0x84   :  { %v45_v21 = vadd.f32 %v41_v8, %v37_v17  ;;  %v46_v22 = vadd.f32 %v42_v13, %v38_v18  ;;  %v47_v23 = vadd.f32 %v43_v14, %v39_v19  ;;  %v48_v24 = vadd.f32 %v44_v15, %v40_v20 }
  0x86   :  { %49 = vst [vmem:[%s131_s4] sm:$0xff] %v45_v21  ;;  %50 = vst [vmem:[%s131_s4 + $0x8] sm:$0xff] %v46_v22 }
  0x87   :  { %51 = vst [vmem:[%s131_s4 + $0x10] sm:$0xff] %v47_v23  ;;  %52 = vst [vmem:[%s131_s4 + $0x18] sm:$0xff] %v48_v24 }

// kernel: upconvblock_forward.6
= control target key start
LH: loop header
LB: loop body
LE: loop exit
PB: predicated region body
PF: predicated region fallthrough
CT: control target
= control target key end

     0   :  { %v1898_v0 = vmov 0   ;;  %v1899_v3 = vmov 0.0   ;;  %vm46_vm0 = vcmask 64512   ;;  %s1901_s11 = smov 16   ;;  %s1902_s12 = smov 15   ;;  %vm936_vm9 = vcmask 7168   ;;  %s2273_s2 = inlined_call_operand.vmem [shape: f32[8,1], index: 2, kind: input, shape index: {}]   ;;  %s2274_s3 = inlined_call_operand.vmem [shape: f32[8,1], index: 3, kind: input, shape index: {}]   ;;  %s2275_s5 = inlined_call_operand.vmem [shape: f32[8,1], index: 5, kind: input, shape index: {}]   ;;  %s2276_s1 = inlined_call_operand.vmem [shape: f32[2,8,256], index: 1, kind: input, shape index: {}]   ;;  %s2277_s4 = inlined_call_operand.vmem [shape: f32[9,8,8], index: 4, kind: input, shape index: {}]   ;;  %s2278_s0 = inlined_call_operand.vmem [shape: f32[9,1,256], index: 0, kind: input, shape index: {}]   ;;  %s2279_s6 = inlined_call_operand.vmem [shape: f32[2,8,256], index: 6, kind: output, shape index: {0}]   ;;  %s2280_s7 = inlined_call_operand.vmem [shape: f32[2,8,1], index: 7, kind: output, shape index: {1}]   ;;  %s2281_s8 = inlined_call_operand.vmem [shape: f32[2,8,1], index: 8, kind: output, shape index: {2}]  }
   0x1   :  { %1897 = vset.pattern.permute.xlu0 %v1898_v0  ;;  %v26_v1 = vld [vmem:[%s2273_s2] sm:$0xff]  ;;  %114 = vmatprep.mubr.f32.mxu0 %v1899_v3  ;;  %v30_v7 = vld [vmem:[%s2276_s1 + $0x8] sm:$0xff]  ;;  %v1837_v15 = vld [vmem:[%s2277_s4 + $0x10] sm:$0xff]  ;;  %s1903_s2 = smov 1   ;;  %s1904_s13 = smov 127  }
   0x2   :  { %33 = vperm.xlu0 %1897, %v26_v1   ;;  %v27_v2 = vld [vmem:[%s2274_s3] sm:$0xff]  ;;  %213 = vmatprep.mubr.f32.mxu1 %v1899_v3  ;;  %v1834_v14 = vld [vmem:[%s2277_s4 + $0x8] sm:$0xff]  ;;  %v1840_v16 = vld [vmem:[%s2277_s4 + $0x18] sm:$0xff]  ;;  %s1905_s3 = smov 113   ;;  %s1906_s14 = smov 112  }
   0x3   :  { %v28_v4 = vld [vmem:[%s2275_s5] sm:$0xff]  ;;  %v1858_v17 = vld [vmem:[%s2276_s1 + $0x18] sm:$0xff]  ;;  %v1845_v19 = vld [vmem:[%s2277_s4 + $0x28] sm:$0xff]  ;;  %s1907_s5 = smov 111  }
   0x4   :  { %v29_v6 = vld [vmem:[%s2276_s1] sm:$0xff]  ;;  %v1857_v20 = vld [vmem:[%s2276_s1 + $0x10] sm:$0xff]  ;;  %v1851_v25 = vld [vmem:[%s2277_s4 + $0x38] sm:$0xff] }
   0x5   :  { %v45_v13 = vld [vmem:[%s2277_s4] sm:$0xff]  ;;  %v1848_v24 = vld [vmem:[%s2277_s4 + $0x30] sm:$0xff] }
   0x6   :  { %40 = vperm.xlu0 %1897, %v27_v2   ;;  %v1843_v18 = vld [vmem:[%s2277_s4 + $0x20] sm:$0xff] }
   0x7   :  { %v1854_v27 = vld [vmem:[%s2277_s4 + $0x40] sm:$0xff]  ;;  %s1900_s4 = smov 17  }
   0xa   :  { %924 = vperm.xlu0 %1897, %v28_v4  }
  0x7d   :  { %v34_v5 = vpop.permute.xlu0 %33 }
  0x7e   :  { %v36_v8 = vmul.f32 %v34_v5, %v29_v6  ;;  %v37_v9 = vmul.f32 %v34_v5, %v30_v7  ;;  %v948_v21 = vmul.f32 %v1858_v17, %v34_v5  ;;  %v947_v23 = vmul.f32 %v1857_v20, %v34_v5 }
  0x81   :  { %v41_v10 = vpop.permute.xlu0 %40 }
  0x82   :  { %v43_v11 = vadd.f32 %v41_v10, %v36_v8  ;;  %v44_v12 = vadd.f32 %v41_v10, %v37_v9  ;;  %v950_v22 = vadd.f32 %v948_v21, %v41_v10  ;;  %v949_v26 = vadd.f32 %v947_v23, %v41_v10 }
  0x84   :  { %80 = vmatprep.subr.mxu0 %v44_v12  ;;  %179 = vmatprep.subr.mxu1 %v44_v12 }
  0x85   :  { %81 = vmatpush1.msra.mxu0 %v43_v11  ;;  %180 = vmatpush1.msra.mxu1 %v43_v11  ;;  %v2077_v0 = vpop.permute.xlu0 %924 }
  0x86   :  { %1833 = vmatmul.mubr.msk.f32.vlgmr.msra.gmra.mxu0 %vm46_vm0, %v45_v13  ;;  %1835 = vmatmul.mubr.msk.f32.vlgmr.msra.gmra.mxu1 %vm46_vm0, %v1834_v14 }
  0x87   :  { %279 = vmatprep.subr.mxu0 %v44_v12  ;;  %379 = vmatprep.subr.mxu1 %v44_v12 }
  0x88   :  { %280 = vmatpush1.msra.mxu0 %v43_v11  ;;  %380 = vmatpush1.msra.mxu1 %v43_v11 }
  0x89   :  { %479 = vmatprep.subr.mxu0 %v44_v12  ;;  %557 = vmatprep.subr.mxu1 %v44_v12 }
  0x8a   :  { %313 = vmatprep.mubr.f32.mxu0 %v1899_v3  ;;  %413 = vmatprep.mubr.f32.mxu1 %v1899_v3 }
  0x8b   :  { %1838 = vmatmul.mubr.msk.f32.vlgmr.msra.gmra.mxu0 %vm46_vm0, %v1837_v15  ;;  %1841 = vmatmul.mubr.msk.f32.vlgmr.msra.gmra.mxu1 %vm46_vm0, %v1840_v16 }
  0x8c   :  { %480 = vmatpush1.msra.mxu0 %v43_v11  ;;  %558 = vmatpush1.msra.mxu1 %v43_v11 }
  0x8d   :  { %657 = vmatprep.subr.mxu0 %v44_v12  ;;  %757 = vmatprep.subr.mxu1 %v44_v12 }
  0x8e   :  { %513 = vmatprep.mubr.f32.mxu0 %v1899_v3  ;;  %591 = vmatprep.mubr.f32.mxu1 %v1899_v3 }
  0x8f   :  { %1844 = vmatmul.mubr.msk.f32.vlgmr.msra.gmra.mxu0 %vm46_vm0, %v1843_v18  ;;  %1846 = vmatmul.mubr.msk.f32.vlgmr.msra.gmra.mxu1 %vm46_vm0, %v1845_v19 }
  0x90   :  { %658 = vmatpush1.msra.mxu0 %v43_v11  ;;  %758 = vmatpush1.msra.mxu1 %v43_v11 }
  0x91   :  { %857 = vmatprep.subr.mxu0 %v44_v12  ;;  %985 = vmatprep.subr.mxu1 %v950_v22 }
  0x92   :  { %691 = vmatprep.mubr.f32.mxu0 %v1899_v3  ;;  %791 = vmatprep.mubr.f32.mxu1 %v1899_v3 }
  0x93   :  { %1849 = vmatmul.mubr.msk.f32.vlgmr.msra.gmra.mxu0 %vm46_vm0, %v1848_v24  ;;  %1852 = vmatmul.mubr.msk.f32.vlgmr.msra.gmra.mxu1 %vm46_vm0, %v1851_v25 }
  0x94   :  { %858 = vmatpush1.msra.mxu0 %v43_v11  ;;  %986 = vmatpush1.msra.mxu1 %v949_v26  ;;  %v1836_v11 = vld [vmem:[%s2278_s0 + $0x2] sm:$0x3] }
  0x95   :  { %1080 = vmatprep.subr.mxu0 %v950_v22  ;;  %1177 = vmatprep.subr.mxu1 %v950_v22 }
  0x96   :  { %891 = vmatprep.mubr.f32.mxu0 %v1899_v3  ;;  %1019 = vmatprep.mubr.f32.mxu1 %v1899_v3 }
  0x97   :  { %1855 = vmatmul.mubr.msk.f32.vlgmr.msra.gmra.mxu0 %vm46_vm0, %v1854_v27  ;;  %1859 = vmatmul.mubr.msk.f32.vlgmr.msra.gmra.mxu1 %vm46_vm0, %v45_v13  ;;  %v130_v13 = vld [vmem:[%s2278_s0] sm:$0x3] }
  0x98   :  { %1081 = vmatpush1.msra.mxu0 %v949_v26  ;;  %1178 = vmatpush1.msra.mxu1 %v949_v26 }
  0x99   :  { %1274 = vmatprep.subr.mxu0 %v950_v22  ;;  %1371 = vmatprep.subr.mxu1 %v950_v22 }
  0x9a   :  { %1114 = vmatprep.mubr.f32.mxu0 %v1899_v3  ;;  %1211 = vmatprep.mubr.f32.mxu1 %v1899_v3 }
  0x9b   :  { %1861 = vmatmul.mubr.msk.f32.vlgmr.msra.gmra.mxu0 %vm46_vm0, %v1834_v14  ;;  %1864 = vmatmul.mubr.msk.f32.vlgmr.msra.gmra.mxu1 %vm46_vm0, %v1837_v15  ;;  %v1839_v15 = vld [vmem:[%s2278_s0 + $0x4] sm:$0x3] }
  0x9c   :  { %1275 = vmatpush1.msra.mxu0 %v949_v26  ;;  %1372 = vmatpush1.msra.mxu1 %v949_v26 }
  0x9d   :  { %1448 = vmatprep.subr.mxu0 %v950_v22  ;;  %1545 = vmatprep.subr.mxu1 %v950_v22 }
  0x9e   :  { %1308 = vmatprep.mubr.f32.mxu0 %v1899_v3  ;;  %1405 = vmatprep.mubr.f32.mxu1 %v1899_v3 }
  0x9f   :  { %1867 = vmatmul.mubr.msk.f32.vlgmr.msra.gmra.mxu0 %vm46_vm0, %v1840_v16  ;;  %1870 = vmatmul.mubr.msk.f32.vlgmr.msra.gmra.mxu1 %vm46_vm0, %v1843_v18 }
  0xa0   :  { %1449 = vmatpush1.msra.mxu0 %v949_v26  ;;  %1546 = vmatpush1.msra.mxu1 %v949_v26 }
  0xa1   :  { %1642 = vmatprep.subr.mxu0 %v950_v22  ;;  %1739 = vmatprep.subr.mxu1 %v950_v22  ;;  %v1842_v22 = vld [vmem:[%s2278_s0 + $0x6] sm:$0x3] }
  0xa2   :  { %1482 = vmatprep.mubr.f32.mxu0 %v1899_v3  ;;  %1579 = vmatprep.mubr.f32.mxu1 %v1899_v3 }
  0xa3   :  { %1872 = vmatmul.mubr.msk.f32.vlgmr.msra.gmra.mxu0 %vm46_vm0, %v1845_v19  ;;  %1875 = vmatmul.mubr.msk.f32.vlgmr.msra.gmra.mxu1 %vm46_vm0, %v1848_v24 }
  0xa4   :  { %1643 = vmatpush1.msra.mxu0 %v949_v26  ;;  %1740 = vmatpush1.msra.mxu1 %v949_v26 }
  0xa5   :  { %1676 = vmatprep.mubr.f32.mxu0 %v1899_v3  ;;  %1773 = vmatprep.mubr.f32.mxu1 %v1899_v3  ;;  %v125_v3 = vlaneseq }
  0xa7   :  { %1878 = vmatmul.mubr.msk.f32.vlgmr.msra.gmra.mxu0 %vm46_vm0, %v1851_v25  ;;  %1881 = vmatmul.mubr.msk.f32.vlgmr.msra.gmra.mxu1 %vm46_vm0, %v1854_v27  ;;  %v133_v6 = vshrl.u32 %v125_v3, 7  ;;  %v2079_v9 = vand.u32 127, %v125_v3 }
  0xa9   :  { %v2081_v10 = vsub.s32 0, %v133_v6  ;;  %v2086_v12 = vsub.s32 1, %v133_v6  ;;  %vm224_vm1 = vcmp.lt.s32.totalorder %v2079_v9, 16  ;;  %vm127_vm2 = vcmp.lt.s32.totalorder %v2079_v9, 17 }
  0xaa   :  { %vm324_vm3 = vcmp.lt.s32.totalorder %v2079_v9, 15  ;;  %vm424_vm4 = vcmp.lt.s32.totalorder %v2079_v9, 1  ;;  %vm602_vm5 = vcmp.lt.s32.totalorder %v2079_v9, 127  ;;  %vm702_vm6 = vcmp.lt.s32.totalorder %v2079_v9, 113 }
  0xab   :  { %v233_v17 = vrot.slane %v1836_v11, %v2081_v10  ;;  %v237_v18 = vrot.slane %v1836_v11, %v2086_v12  ;;  %v135_v19 = vrot.slane %v130_v13, %v2081_v10  ;;  %v139_v23 = vrot.slane %v130_v13, %v2086_v12 }
  0xac   :  { %v333_v24 = vrot.slane %v1839_v15, %v2081_v10  ;;  %v337_v25 = vrot.slane %v1839_v15, %v2086_v12  ;;  %vm802_vm7 = vcmp.lt.s32.totalorder %v2079_v9, 112  ;;  %vm902_vm8 = vcmp.lt.s32.totalorder %v2079_v9, 111 }
 0x146   :  { %v116_v28 = vpop.f32.mrf.mxu0  ;;  %v215_v29 = vpop.f32.mrf.mxu1 }
 0x147   :  { %121 = vrot.lane.b32.xlu1 %v116_v28, %s1900_s4  ;;  %220 = vrot.lane.b32.xlu0 %v215_v29, %s1901_s11 }
 0x148   :  { %v118_v30 = vpop.f32.mrf.mxu0  ;;  %v217_v31 = vpop.f32.mrf.mxu1 }
 0x14b   :  { %123 = vrot.lane.b32.xlu1 %v118_v30, %s1900_s4  ;;  %v315_v32 = vpop.f32.mrf.mxu0  ;;  %v415_v33 = vpop.f32.mrf.mxu1 }
 0x14c   :  { %320 = vrot.lane.b32.xlu0 %v315_v32, %s1902_s12 }
 0x14d   :  { %v317_v34 = vpop.f32.mrf.mxu0  ;;  %v417_v35 = vpop.f32.mrf.mxu1 }
 0x14f   :  { %222 = vrot.lane.b32.xlu1 %v217_v31, %s1901_s11  ;;  %v2042_v36 = vpop.f32.mrf.mxu0  ;;  %v593_v37 = vpop.f32.mrf.mxu1 }
 0x150   :  { %420 = vrot.lane.b32.xlu0 %v415_v33, %s1903_s2 }
 0x151   :  { %v2046_v38 = vpop.f32.mrf.mxu0  ;;  %v595_v39 = vpop.f32.mrf.mxu1 }
 0x153   :  { %322 = vrot.lane.b32.xlu1 %v317_v34, %s1902_s12  ;;  %v693_v40 = vpop.f32.mrf.mxu0  ;;  %v793_v41 = vpop.f32.mrf.mxu1  ;;  %v433_v34 = vrot.slane %v1842_v22, %v2081_v10 }
 0x154   :  { %598 = vrot.lane.b32.xlu0 %v593_v37, %s1904_s13 }
 0x155   :  { %v695_v42 = vpop.f32.mrf.mxu0  ;;  %v795_v43 = vpop.f32.mrf.mxu1 }
 0x157   :  { %422 = vrot.lane.b32.xlu1 %v417_v35, %s1903_s2  ;;  %v893_v44 = vpop.f32.mrf.mxu0  ;;  %v1021_v45 = vpop.f32.mrf.mxu1  ;;  %v437_v35 = vrot.slane %v1842_v22, %v2086_v12 }
 0x158   :  { %698 = vrot.lane.b32.xlu0 %v693_v40, %s1905_s3 }
 0x159   :  { %v895_v46 = vpop.f32.mrf.mxu0  ;;  %v1023_v47 = vpop.f32.mrf.mxu1 }
 0x15b   :  { %600 = vrot.lane.b32.xlu1 %v595_v39, %s1904_s13  ;;  %v1116_v48 = vpop.f32.mrf.mxu0  ;;  %v1213_v49 = vpop.f32.mrf.mxu1 }
 0x15c   :  { %798 = vrot.lane.b32.xlu0 %v793_v41, %s1906_s14 }
 0x15d   :  { %v1118_v50 = vpop.f32.mrf.mxu0  ;;  %v1215_v51 = vpop.f32.mrf.mxu1 }
 0x15f   :  { %700 = vrot.lane.b32.xlu1 %v695_v42, %s1905_s3  ;;  %v1310_v52 = vpop.f32.mrf.mxu0  ;;  %v2060_v53 = vpop.f32.mrf.mxu1 }
 0x160   :  { %1026 = vrot.lane.b32.xlu0 %v1021_v45, %s1900_s4 }
 0x161   :  { %v1312_v54 = vpop.f32.mrf.mxu0  ;;  %v2064_v55 = vpop.f32.mrf.mxu1 }
 0x163   :  { %800 = vrot.lane.b32.xlu1 %v795_v43, %s1906_s14  ;;  %v1484_v56 = vpop.f32.mrf.mxu0  ;;  %v1581_v57 = vpop.f32.mrf.mxu1 }
 0x164   :  { %898 = vrot.lane.b32.xlu0 %v893_v44, %s1907_s5 }
 0x165   :  { %v1583_v58 = vpop.f32.mrf.mxu1  ;;  %v1486_v59 = vpop.f32.mrf.mxu0 }
 0x167   :  { %1028 = vrot.lane.b32.xlu1 %v1023_v47, %s1900_s4  ;;  %v1775_v60 = vpop.f32.mrf.mxu1  ;;  %v1678_v61 = vpop.f32.mrf.mxu0 }
 0x168   :  { %1121 = vrot.lane.b32.xlu0 %v1116_v48, %s1901_s11 }
 0x169   :  { %v1777_v62 = vpop.f32.mrf.mxu1  ;;  %v1680_v63 = vpop.f32.mrf.mxu0 }
 0x16b   :  { %900 = vrot.lane.b32.xlu1 %v895_v46, %s1907_s5 }
 0x16c   :  { %1218 = vrot.lane.b32.xlu0 %v1213_v49, %s1902_s12 }
 0x16f   :  { %1123 = vrot.lane.b32.xlu1 %v1118_v50, %s1901_s11  ;;  %v1847_v50 = vld [vmem:[%s2278_s0 + $0xa] sm:$0x3] }
 0x170   :  { %1315 = vrot.lane.b32.xlu0 %v1310_v52, %s1903_s2 }
 0x173   :  { %1220 = vrot.lane.b32.xlu1 %v1215_v51, %s1902_s12 }
 0x174   :  { %1489 = vrot.lane.b32.xlu0 %v1484_v56, %s1904_s13  ;;  %v611_v56 = vrot.slane %v1847_v50, %v2081_v10 }
 0x177   :  { %1317 = vrot.lane.b32.xlu1 %v1312_v54, %s1903_s2 }
 0x178   :  { %1586 = vrot.lane.b32.xlu0 %v1581_v57, %s1905_s3  ;;  %v1850_v57 = vld [vmem:[%s2278_s0 + $0xc] sm:$0x3] }
 0x179   :  { %v715_v3 = vrot.slane %v1850_v57, %v2086_v12 }
 0x17b   :  { %1491 = vrot.lane.b32.xlu1 %v1486_v59, %s1904_s13 }
 0x17c   :  { %1683 = vrot.lane.b32.xlu0 %v1678_v61, %s1906_s14  ;;  %v615_v61 = vrot.slane %v1847_v50, %v2086_v12 }
 0x17f   :  { %1588 = vrot.lane.b32.xlu1 %v1583_v58, %s1905_s3 }
 0x180   :  { %1782 = vrot.lane.b32.xlu0 %v1777_v62, %s1907_s5  ;;  %v1853_v62 = vld [vmem:[%s2278_s0 + $0xe] sm:$0x3] }
 0x183   :  { %1685 = vrot.lane.b32.xlu1 %v1680_v63, %s1906_s14 }
 0x187   :  { %1780 = vrot.lane.b32.xlu1 %v1775_v60, %s1907_s5 }
 0x1b9   :  { %v122_v1 = vpop.permute.xlu1 %121  ;;  %v221_v2 = vpop.permute.xlu0 %220 }
 0x1bd   :  { %v124_v4 = vpop.permute.xlu1 %123 }
 0x1be   :  { %v321_v5 = vpop.permute.xlu0 %320  ;;  %v128_v27 = vsel %vm127_vm2, %v122_v1, %v124_v4  ;;  %v129_v28 = vsel %vm127_vm2, %v124_v4, %v122_v1 }
 0x1bf   :  { %v142_v40 = vmul.f32 %v135_v19, %v129_v28  ;;  %v143_v41 = vmul.f32 %v139_v23, %v128_v27 }
 0x1c1   :  { %v223_v7 = vpop.permute.xlu1 %222 }
 0x1c2   :  { %v421_v8 = vpop.permute.xlu0 %420  ;;  %v225_v20 = vsel %vm224_vm1, %v221_v2, %v223_v7  ;;  %v226_v21 = vsel %vm224_vm1, %v223_v7, %v221_v2  ;;  %v711_v2 = vrot.slane %v1850_v57, %v2081_v10  ;;  %v811_v7 = vrot.slane %v1853_v62, %v2081_v10 }
 0x1c3   :  { %v240_v32 = vmul.f32 %v233_v17, %v226_v21  ;;  %v241_v33 = vmul.f32 %v237_v18, %v225_v20  ;;  %v1856_v17 = vld [vmem:[%s2278_s0 + $0x10] sm:$0x3] }
 0x1c5   :  { %v323_v14 = vpop.permute.xlu1 %322  ;;  %v242_v46 = vadd.f32 %v240_v32, %v142_v40  ;;  %v243_v47 = vadd.f32 %v241_v33, %v143_v41  ;;  %v1862_v41 = vld [vmem:[%s2278_s0 + $0x2] sm:$0x3] }
 0x1c6   :  { %v599_v16 = vpop.permute.xlu0 %598  ;;  %v325_v29 = vsel %vm324_vm3, %v321_v5, %v323_v14  ;;  %v326_v30 = vsel %vm324_vm3, %v323_v14, %v321_v5  ;;  %v1132_v50 = vrot.slane %v1862_v41, %v2081_v10 }
 0x1c7   :  { %v340_v42 = vmul.f32 %v333_v24, %v326_v30  ;;  %v341_v43 = vmul.f32 %v337_v25, %v325_v29 }
 0x1c9   :  { %v423_v26 = vpop.permute.xlu1 %422  ;;  %v342_v51 = vadd.f32 %v340_v42, %v242_v46  ;;  %v343_v52 = vadd.f32 %v341_v43, %v243_v47 }
 0x1ca   :  { %v699_v31 = vpop.permute.xlu0 %698  ;;  %v425_v37 = vsel %vm424_vm4, %v421_v8, %v423_v26  ;;  %v426_v39 = vsel %vm424_vm4, %v423_v26, %v421_v8  ;;  %v815_v8 = vrot.slane %v1853_v62, %v2086_v12 }
 0x1cb   :  { %v440_v48 = vmul.f32 %v433_v34, %v426_v39  ;;  %v441_v49 = vmul.f32 %v437_v35, %v425_v37  ;;  %v1032_v37 = vld [vmem:[%s2278_s0] sm:$0x3] }
 0x1cc   :  { %v1037_v46 = vrot.slane %v1032_v37, %v2081_v10  ;;  %v1041_v47 = vrot.slane %v1032_v37, %v2086_v12 }
 0x1cd   :  { %v601_v44 = vpop.permute.xlu1 %600  ;;  %v442_v59 = vadd.f32 %v440_v48, %v342_v51  ;;  %v443_v60 = vadd.f32 %v441_v49, %v343_v52  ;;  %v1868_v49 = vld [vmem:[%s2278_s0 + $0x6] sm:$0x3]  ;;  %v1136_v51 = vrot.slane %v1862_v41, %v2086_v12 }
 0x1ce   :  { %v799_v45 = vpop.permute.xlu0 %798  ;;  %v603_v63 = vsel %vm602_vm5, %v599_v16, %v601_v44  ;;  %v604_v1 = vsel %vm602_vm5, %v601_v44, %v599_v16  ;;  %v1326_v62 = vrot.slane %v1868_v49, %v2081_v10 }
 0x1cf   :  { %v520_v13 = vadd.f32 %v2042_v36, %v442_v59  ;;  %v521_v14 = vadd.f32 %v2046_v38, %v443_v60  ;;  %v618_v15 = vmul.f32 %v611_v56, %v603_v63  ;;  %v619_v16 = vmul.f32 %v615_v61, %v604_v1 }
 0x1d0   :  { %v911_v36 = vrot.slane %v1856_v17, %v2081_v10  ;;  %v915_v38 = vrot.slane %v1856_v17, %v2086_v12  ;;  %v1330_v63 = vrot.slane %v1868_v49, %v2086_v12 }
 0x1d1   :  { %v701_v54 = vpop.permute.xlu1 %700  ;;  %v620_v24 = vadd.f32 %v618_v15, %v520_v13  ;;  %v621_v25 = vadd.f32 %v619_v16, %v521_v14 }
 0x1d2   :  { %v2133_v58 = vpop.permute.xlu0 %1026  ;;  %v703_v5 = vsel %vm702_vm6, %v699_v31, %v701_v54  ;;  %v704_v6 = vsel %vm702_vm6, %v701_v54, %v699_v31 }
 0x1d3   :  { %v718_v20 = vmul.f32 %v711_v2, %v703_v5  ;;  %v719_v21 = vmul.f32 %v715_v3, %v704_v6 }
 0x1d5   :  { %v801_v4 = vpop.permute.xlu1 %800  ;;  %v720_v28 = vadd.f32 %v718_v20, %v620_v24  ;;  %v721_v29 = vadd.f32 %v719_v21, %v621_v25  ;;  %v1873_v25 = vld [vmem:[%s2278_s0 + $0xa] sm:$0x3] }
 0x1d6   :  { %v899_v11 = vpop.permute.xlu0 %898  ;;  %v803_v18 = vsel %vm802_vm7, %v799_v45, %v801_v4  ;;  %v804_v19 = vsel %vm802_vm7, %v801_v4, %v799_v45  ;;  %v1865_v45 = vld [vmem:[%s2278_s0 + $0x4] sm:$0x3] }
 0x1d7   :  { %v818_v26 = vmul.f32 %v811_v7, %v803_v18  ;;  %v819_v27 = vmul.f32 %v815_v8, %v804_v19  ;;  %v1229_v59 = vrot.slane %v1865_v45, %v2081_v10  ;;  %v1233_v60 = vrot.slane %v1865_v45, %v2086_v12 }
 0x1d9   :  { %v1029_v22 = vpop.permute.xlu1 %1028  ;;  %v820_v34 = vadd.f32 %v818_v26, %v720_v28  ;;  %v821_v35 = vadd.f32 %v819_v27, %v721_v29 }
 0x1da   :  { %v1122_v23 = vpop.permute.xlu0 %1121  ;;  %v1030_v3 = vsel %vm127_vm2, %v2133_v58, %v1029_v22  ;;  %v1031_v4 = vsel %vm127_vm2, %v1029_v22, %v2133_v58 }
 0x1db   :  { %v1044_v15 = vmul.f32 %v1037_v46, %v1031_v4  ;;  %v1045_v16 = vmul.f32 %v1041_v47, %v1030_v3 }
 0x1dd   :  { %v901_v30 = vpop.permute.xlu1 %900 }
 0x1de   :  { %v903_v31 = vsel %vm902_vm8, %v899_v11, %v901_v30  ;;  %v904_v32 = vsel %vm902_vm8, %v901_v30, %v899_v11  ;;  %v1219_v33 = vpop.permute.xlu0 %1218  ;;  %v1876_v30 = vld [vmem:[%s2278_s0 + $0xc] sm:$0x3] }
 0x1df   :  { %v918_v39 = vmul.f32 %v911_v36, %v903_v31  ;;  %v919_v40 = vmul.f32 %v915_v38, %v904_v32  ;;  %v1597_v41 = vrot.slane %v1876_v30, %v2081_v10 }
 0x1e1   :  { %v920_v42 = vadd.f32 %v918_v39, %v820_v34  ;;  %v921_v43 = vadd.f32 %v919_v40, %v821_v35  ;;  %v1124_v44 = vpop.permute.xlu1 %1123  ;;  %v1504_v34 = vrot.slane %v1873_v25, %v2086_v12  ;;  %v1879_v35 = vld [vmem:[%s2278_s0 + $0xe] sm:$0x3] }
 0x1e2   :  { %v1316_v48 = vpop.permute.xlu0 %1315  ;;  %v1125_v56 = vsel %vm224_vm1, %v1122_v23, %v1124_v44  ;;  %v1126_v57 = vsel %vm224_vm1, %v1124_v44, %v1122_v23  ;;  %v1694_v45 = vrot.slane %v1879_v35, %v2081_v10  ;;  %v1698_v46 = vrot.slane %v1879_v35, %v2086_v12 }
 0x1e3   :  { %v927_v52 = vadd.f32 %v2077_v0, %v920_v42  ;;  %v928_v54 = vadd.f32 %v2077_v0, %v921_v43  ;;  %v1139_v7 = vmul.f32 %v1132_v50, %v1126_v57  ;;  %v1140_v8 = vmul.f32 %v1136_v51, %v1125_v56 }
 0x1e4   :  { %v1601_v42 = vrot.slane %v1876_v30, %v2086_v12 }
 0x1e5   :  { %v1221_v61 = vpop.permute.xlu1 %1220  ;;  %v929_v1 = vmax.f32 %v927_v52, 0.0  ;;  %v930_v2 = vmax.f32 %v928_v54, 0.0  ;;  %v1141_v36 = vadd.f32 %v1139_v7, %v1044_v15  ;;  %v1142_v38 = vadd.f32 %v1140_v8, %v1045_v16  ;;  %v1882_v52 = vld [vmem:[%s2278_s0 + $0x10] sm:$0x3] }
 0x1e6   :  { %v1222_v5 = vsel %vm324_vm3, %v1219_v33, %v1221_v61  ;;  %v1223_v6 = vsel %vm324_vm3, %v1221_v61, %v1219_v33  ;;  %v1490_v13 = vpop.permute.xlu0 %1489  ;;  %v1500_v33 = vrot.slane %v1873_v25, %v2081_v10 }
 0x1e7   :  { %932 = vst [vmem:[%s2279_s6 + $0x8] sm:$0xff] %v930_v2  ;;  %v933_v11 = vadd.f32 %v930_v2, %v929_v1  ;;  %931 = vst [vmem:[%s2279_s6] sm:$0xff] %v929_v1  ;;  %v938_v14 = vmul.f32 %v929_v1, %v929_v1  ;;  %v939_v58 = vmul.f32 %v930_v2, %v930_v2 }
 0x1e8   :  { %v1236_v17 = vmul.f32 %v1229_v59, %v1223_v6  ;;  %v1237_v18 = vmul.f32 %v1233_v60, %v1222_v5 }
 0x1e9   :  { %v1318_v19 = vpop.permute.xlu1 %1317  ;;  %934 = vadd.xlane.f32.xlu1 %v933_v11  ;;  %v940_v22 = vadd.f32 %v939_v58, %v938_v14 }
 0x1ea   :  { %v1319_v20 = vsel %vm424_vm4, %v1316_v48, %v1318_v19  ;;  %v1320_v21 = vsel %vm424_vm4, %v1318_v19, %v1316_v48  ;;  %v1238_v26 = vadd.f32 %v1236_v17, %v1141_v36  ;;  %v1239_v27 = vadd.f32 %v1237_v18, %v1142_v38  ;;  %v1587_v29 = vpop.permute.xlu0 %1586 }
 0x1eb   :  { %v1333_v23 = vmul.f32 %v1326_v62, %v1320_v21  ;;  %v1334_v24 = vmul.f32 %v1330_v63, %v1319_v20  ;;  %941 = vadd.xlane.f32.xlu0 %v940_v22 }
 0x1ed   :  { %v1492_v28 = vpop.permute.xlu1 %1491  ;;  %v1335_v31 = vadd.f32 %v1333_v23, %v1238_v26  ;;  %v1336_v32 = vadd.f32 %v1334_v24, %v1239_v27 }
 0x1ee   :  { %v1493_v37 = vsel %vm602_vm5, %v1490_v13, %v1492_v28  ;;  %v1494_v39 = vsel %vm602_vm5, %v1492_v28, %v1490_v13  ;;  %v1684_v51 = vpop.permute.xlu0 %1683 }
 0x1ef   :  { %v1412_v47 = vadd.f32 %v2060_v53, %v1335_v31  ;;  %v1413_v48 = vadd.f32 %v2064_v55, %v1336_v32  ;;  %v1507_v49 = vmul.f32 %v1500_v33, %v1493_v37  ;;  %v1508_v50 = vmul.f32 %v1504_v34, %v1494_v39 }
 0x1f0   :  { %v1791_v53 = vrot.slane %v1882_v52, %v2081_v10  ;;  %v1795_v55 = vrot.slane %v1882_v52, %v2086_v12 }
 0x1f1   :  { %v1589_v40 = vpop.permute.xlu1 %1588  ;;  %v1509_v61 = vadd.f32 %v1507_v49, %v1412_v47  ;;  %v1510_v62 = vadd.f32 %v1508_v50, %v1413_v48 }
 0x1f2   :  { %v1590_v43 = vsel %vm702_vm6, %v1587_v29, %v1589_v40  ;;  %v1591_v44 = vsel %vm702_vm6, %v1589_v40, %v1587_v29  ;;  %v1783_v4 = vpop.permute.xlu0 %1782 }
 0x1f3   :  { %v1604_v54 = vmul.f32 %v1597_v41, %v1590_v43  ;;  %v1605_v56 = vmul.f32 %v1601_v42, %v1591_v44 }
 0x1f5   :  { %v1686_v57 = vpop.permute.xlu1 %1685  ;;  %v1606_v2 = vadd.f32 %v1604_v54, %v1509_v61  ;;  %v1607_v3 = vadd.f32 %v1605_v56, %v1510_v62 }
 0x1f6   :  { %v1687_v59 = vsel %vm802_vm7, %v1684_v51, %v1686_v57  ;;  %v1688_v60 = vsel %vm802_vm7, %v1686_v57, %v1684_v51 }
 0x1f7   :  { %v1701_v63 = vmul.f32 %v1694_v45, %v1687_v59  ;;  %v1702_v1 = vmul.f32 %v1698_v46, %v1688_v60 }
 0x1f9   :  { %v1781_v5 = vpop.permute.xlu1 %1780  ;;  %v1703_v8 = vadd.f32 %v1701_v63, %v1606_v2  ;;  %v1704_v11 = vadd.f32 %v1702_v1, %v1607_v3 }
 0x1fa   :  { %v1784_v6 = vsel %vm902_vm8, %v1781_v5, %v1783_v4  ;;  %v1785_v7 = vsel %vm902_vm8, %v1783_v4, %v1781_v5 }
 0x1fb   :  { %v1798_v13 = vmul.f32 %v1791_v53, %v1784_v6  ;;  %v1799_v10 = vmul.f32 %v1795_v55, %v1785_v7 }
 0x1fd   :  { %v1800_v14 = vadd.f32 %v1798_v13, %v1703_v8  ;;  %v1801_v12 = vadd.f32 %v1799_v10, %v1704_v11 }
 0x1ff   :  { %v1802_v58 = vadd.f32 %v1800_v14, %v2077_v0  ;;  %v1803_v15 = vadd.f32 %v1801_v12, %v2077_v0 }
 0x201   :  { %v1804_v16 = vmax.f32 %v1802_v58, 0.0  ;;  %v1805_v17 = vmax.f32 %v1803_v15, 0.0 }
 0x203   :  { %1883 = vst [vmem:[%s2279_s6 + $0x10] sm:$0xff] %v1804_v16  ;;  %1884 = vst [vmem:[%s2279_s6 + $0x18] sm:$0xff] %v1805_v17  ;;  %v1809_v9 = vadd.f32 %v1805_v17, %v1804_v16  ;;  %v1814_v18 = vmul.f32 %v1804_v16, %v1804_v16  ;;  %v1815_v19 = vmul.f32 %v1805_v17, %v1805_v17 }
 0x205   :  { %1810 = vadd.xlane.f32.xlu0 %v1809_v9  ;;  %v1816_v20 = vadd.f32 %v1815_v19, %v1814_v18 }
 0x207   :  { %1817 = vadd.xlane.f32.xlu1 %v1816_v20 }
 0x272   :  { %v935_v21 = vpop.xlane.xlu1 %934 }
 0x273   :  { %937 = vst.msk [vmem:[%s2280_s7] sm:$0xff] %vm936_vm9, %v935_v21 }
 0x274   :  { %v942_v0 = vpop.xlane.xlu0 %941 }
 0x275   :  { %943 = vst.msk [vmem:[%s2281_s8] sm:$0xff] %vm936_vm9, %v942_v0 }
 0x28e   :  { %v1811_v22 = vpop.xlane.xlu0 %1810 }
 0x28f   :  { %1885 = vst.msk [vmem:[%s2280_s7 + $0x8] sm:$0xff] %vm936_vm9, %v1811_v22 }
 0x290   :  { %v1818_v36 = vpop.xlane.xlu1 %1817 }
 0x291   :  { %1886 = vst.msk [vmem:[%s2281_s8 + $0x8] sm:$0xff] %vm936_vm9, %v1818_v36 }

// kernel: upconvblock_forward.5
= control target key start
LH: loop header
LB: loop body
LE: loop exit
PB: predicated region body
PF: predicated region fallthrough
CT: control target
= control target key end

     0   :  { %vm49_vm0 = vcmask 1043456   ;;  %v3658_v3 = vmov 0.0   ;;  %vm125_vm1 = vcmask 64512   ;;  %vm45_vm2 = vcmask 31744   ;;  %s3664_s13 = smov 127   ;;  %s3665_s14 = smov 113   ;;  %s4503_s1 = inlined_call_operand.vmem [shape: f32[2,8,256], index: 1, kind: input, shape index: {}]   ;;  %s4504_s2 = inlined_call_operand.vmem [shape: f32[2,4,256], index: 2, kind: input, shape index: {}]   ;;  %s4505_s3 = inlined_call_operand.vmem [shape: f32[8,8], index: 3, kind: input, shape index: {}]   ;;  %s4506_s4 = inlined_call_operand.vmem [shape: f32[8,4], index: 4, kind: input, shape index: {}]   ;;  %s4507_s6 = inlined_call_operand.vmem [shape: f32[9,8,8], index: 6, kind: input, shape index: {}]   ;;  %s4508_s7 = inlined_call_operand.vmem [shape: f32[9,8,4], index: 7, kind: input, shape index: {}]   ;;  %s4509_s8 = inlined_call_operand.vmem [shape: f32[8,1], index: 8, kind: input, shape index: {}]   ;;  %s4510_s0 = inlined_call_operand.vmem [shape: f32[9,1,256], index: 0, kind: input, shape index: {}]   ;;  %s4511_s10 = inlined_call_operand.vmem [shape: f32[2,8,256], index: 10, kind: output, shape index: {1}]   ;;  %s4512_s5 = inlined_call_operand.vmem [shape: f32[8,1], index: 5, kind: input, shape index: {}]   ;;  %s4513_s11 = inlined_call_operand.vmem [shape: f32[2,8,1], index: 11, kind: output, shape index: {2}]   ;;  %s4514_s12 = inlined_call_operand.vmem [shape: f32[2,8,1], index: 12, kind: output, shape index: {3}]   ;;  %s4515_s9 = inlined_call_operand.vmem [shape: f32[2,8,256], index: 9, kind: output, shape index: {0}]  }
   0x1   :  { %v3736_v0 = vld [vmem:[%s4503_s1 + $0x8] sm:$0xff]  ;;  %v3741_v1 = vld [vmem:[%s4504_s2] sm:$0xff]  ;;  %193 = vmatprep.mubr.f32.mxu1 %v3658_v3  ;;  %118 = vmatprep.mubr.f32.mxu0 %v3658_v3  ;;  %v3824_v11 = vld [vmem:[%s4507_s6 + $0x10] sm:$0xff]  ;;  %v3659_v29 = vmov 0   ;;  %s3666_s15 = smov 112   ;;  %s3667_s16 = smov 111  }
   0x2   :  { %v3746_v2 = vld [vmem:[%s4503_s1] sm:$0xff]  ;;  %159 = vmatprep.subr.mxu1 %v3736_v0  ;;  %v3753_v4 = vcombine.high %v3741_v1, %v3741_v1  ;;  %v3802_v9 = vld [vmem:[%s4507_s6 + $0x8] sm:$0xff]  ;;  %v3832_v12 = vld [vmem:[%s4508_s7 + $0x10] sm:$0xff]  ;;  %3654 = vset.pattern.permute.xlu0 %v3659_v29  ;;  %vm1782_vm11 = vcmask 7168  }
   0x3   :  { %v3758_v5 = vld [vmem:[%s4505_s3] sm:$0xff]  ;;  %160 = vmatpush1.msra.mxu1 %v3746_v2  ;;  %v3810_v10 = vld [vmem:[%s4508_s7 + $0x8] sm:$0xff]  ;;  %v3846_v13 = vld [vmem:[%s4507_s6 + $0x18] sm:$0xff]  ;;  %3655 = vset.pattern.permute.xlu1 %v3659_v29  ;;  %s3662_s3 = smov 15  }
   0x4   :  { %v3764_v6 = vld [vmem:[%s4506_s4] sm:$0xff]  ;;  %3509 = vmatprep.subr.msk.mxu0 %vm49_vm0, %v3753_v4  ;;  %3512 = vmatmul.mubr.msk.f32.vlgmr.msra.gmra.mxu1 %vm125_vm1, %v3758_v5  ;;  %v3854_v14 = vld [vmem:[%s4508_s7 + $0x18] sm:$0xff]  ;;  %v3890_v17 = vld [vmem:[%s4507_s6 + $0x28] sm:$0xff]  ;;  %s3663_s4 = smov 1  }
   0x5   :  { %3510 = vmatpush1.msk.msra.mxu0 %vm49_vm0, %v3741_v1  ;;  %318 = vmatprep.subr.mxu1 %v3736_v0  ;;  %v3780_v7 = vld [vmem:[%s4507_s6] sm:$0xff]  ;;  %v3898_v18 = vld [vmem:[%s4508_s7 + $0x28] sm:$0xff]  ;;  %v3912_v19 = vld [vmem:[%s4507_s6 + $0x30] sm:$0xff] }
   0x6   :  { %3511 = vmatmul.mubr.msk.f32.vlgmr.msra.gmra.mxu0 %vm45_vm2, %v3764_v6  ;;  %3513 = vmatprep.subr.msk.mxu0 %vm49_vm0, %v3753_v4  ;;  %v3788_v8 = vld [vmem:[%s4508_s7] sm:$0xff]  ;;  %v3920_v20 = vld [vmem:[%s4508_s7 + $0x30] sm:$0xff]  ;;  %v3934_v21 = vld [vmem:[%s4507_s6 + $0x38] sm:$0xff] }
   0x7   :  { %3514 = vmatpush1.msk.msra.mxu0 %vm49_vm0, %v3741_v1  ;;  %319 = vmatpush1.msra.mxu1 %v3746_v2  ;;  %v3868_v15 = vld [vmem:[%s4507_s6 + $0x20] sm:$0xff]  ;;  %v3939_v22 = vld [vmem:[%s4504_s2 + $0x8] sm:$0xff]  ;;  %v3947_v23 = vld [vmem:[%s4508_s7 + $0x38] sm:$0xff] }
   0x8   :  { %352 = vmatprep.mubr.f32.mxu1 %v3658_v3  ;;  %278 = vmatprep.mubr.f32.mxu0 %v3658_v3  ;;  %v3876_v16 = vld [vmem:[%s4508_s7 + $0x20] sm:$0xff]  ;;  %v3957_v24 = vcombine.high %v3939_v22, %v3939_v22  ;;  %v3978_v27 = vld [vmem:[%s4503_s1 + $0x18] sm:$0xff]  ;;  %v3985_v28 = vld [vmem:[%s4503_s1 + $0x10] sm:$0xff]  ;;  %s3660_s1 = smov 17  }
   0x9   :  { %3516 = vmatmul.mubr.msk.f32.vlgmr.msra.gmra.mxu1 %vm125_vm1, %v3780_v7  ;;  %3519 = vmatprep.subr.msk.mxu0 %vm49_vm0, %v3753_v4  ;;  %v3965_v25 = vld [vmem:[%s4507_s6 + $0x40] sm:$0xff] }
   0xa   :  { %3515 = vmatmul.mubr.msk.f32.vlgmr.msra.gmra.mxu0 %vm45_vm2, %v3788_v8  ;;  %493 = vmatprep.subr.mxu1 %v3736_v0  ;;  %v3973_v26 = vld [vmem:[%s4508_s7 + $0x40] sm:$0xff]  ;;  %s3661_s7 = smov 16  }
   0xb   :  { %3520 = vmatpush1.msk.msra.mxu0 %vm49_vm0, %v3741_v1  ;;  %494 = vmatpush1.msra.mxu1 %v3746_v2 }
   0xc   :  { %527 = vmatprep.mubr.f32.mxu1 %v3658_v3  ;;  %453 = vmatprep.mubr.f32.mxu0 %v3658_v3 }
   0xd   :  { %3522 = vmatmul.mubr.msk.f32.vlgmr.msra.gmra.mxu1 %vm125_vm1, %v3802_v9  ;;  %3526 = vmatprep.subr.msk.mxu0 %vm49_vm0, %v3753_v4 }
   0xe   :  { %3521 = vmatmul.mubr.msk.f32.vlgmr.msra.gmra.mxu0 %vm45_vm2, %v3810_v10  ;;  %669 = vmatprep.subr.mxu1 %v3736_v0 }
   0xf   :  { %3527 = vmatpush1.msk.msra.mxu0 %vm49_vm0, %v3741_v1  ;;  %670 = vmatpush1.msra.mxu1 %v3746_v2 }
  0x10   :  { %703 = vmatprep.mubr.f32.mxu1 %v3658_v3  ;;  %629 = vmatprep.mubr.f32.mxu0 %v3658_v3 }
  0x11   :  { %3529 = vmatmul.mubr.msk.f32.vlgmr.msra.gmra.mxu1 %vm125_vm1, %v3824_v11  ;;  %3533 = vmatprep.subr.msk.mxu0 %vm49_vm0, %v3753_v4 }
  0x12   :  { %3528 = vmatmul.mubr.msk.f32.vlgmr.msra.gmra.mxu0 %vm45_vm2, %v3832_v12  ;;  %845 = vmatprep.subr.mxu1 %v3736_v0 }
  0x13   :  { %3534 = vmatpush1.msk.msra.mxu0 %vm49_vm0, %v3741_v1  ;;  %846 = vmatpush1.msra.mxu1 %v3746_v2 }
  0x14   :  { %879 = vmatprep.mubr.f32.mxu1 %v3658_v3  ;;  %805 = vmatprep.mubr.f32.mxu0 %v3658_v3 }
  0x15   :  { %3536 = vmatmul.mubr.msk.f32.vlgmr.msra.gmra.mxu1 %vm125_vm1, %v3846_v13  ;;  %3540 = vmatprep.subr.msk.mxu0 %vm49_vm0, %v3753_v4 }
  0x16   :  { %3535 = vmatmul.mubr.msk.f32.vlgmr.msra.gmra.mxu0 %vm45_vm2, %v3854_v14  ;;  %1021 = vmatprep.subr.mxu1 %v3736_v0 }
  0x17   :  { %3541 = vmatpush1.msk.msra.mxu0 %vm49_vm0, %v3741_v1  ;;  %1022 = vmatpush1.msra.mxu1 %v3746_v2 }
  0x18   :  { %1055 = vmatprep.mubr.f32.mxu1 %v3658_v3  ;;  %981 = vmatprep.mubr.f32.mxu0 %v3658_v3 }
  0x19   :  { %3543 = vmatmul.mubr.msk.f32.vlgmr.msra.gmra.mxu1 %vm125_vm1, %v3868_v15  ;;  %3546 = vmatprep.subr.msk.mxu0 %vm49_vm0, %v3753_v4 }
  0x1a   :  { %3542 = vmatmul.mubr.msk.f32.vlgmr.msra.gmra.mxu0 %vm45_vm2, %v3876_v16  ;;  %1175 = vmatprep.subr.mxu1 %v3736_v0 }
  0x1b   :  { %3547 = vmatpush1.msk.msra.mxu0 %vm49_vm0, %v3741_v1  ;;  %1176 = vmatpush1.msra.mxu1 %v3746_v2 }
  0x1c   :  { %1209 = vmatprep.mubr.f32.mxu1 %v3658_v3  ;;  %1135 = vmatprep.mubr.f32.mxu0 %v3658_v3 }
  0x1d   :  { %3549 = vmatmul.mubr.msk.f32.vlgmr.msra.gmra.mxu1 %vm125_vm1, %v3890_v17  ;;  %3553 = vmatprep.subr.msk.mxu0 %vm49_vm0, %v3753_v4 }
  0x1e   :  { %3548 = vmatmul.mubr.msk.f32.vlgmr.msra.gmra.mxu0 %vm45_vm2, %v3898_v18  ;;  %1351 = vmatprep.subr.mxu1 %v3736_v0 }
  0x1f   :  { %3554 = vmatpush1.msk.msra.mxu0 %vm49_vm0, %v3741_v1  ;;  %1352 = vmatpush1.msra.mxu1 %v3746_v2 }
  0x20   :  { %1385 = vmatprep.mubr.f32.mxu1 %v3658_v3  ;;  %1311 = vmatprep.mubr.f32.mxu0 %v3658_v3 }
  0x21   :  { %3556 = vmatmul.mubr.msk.f32.vlgmr.msra.gmra.mxu1 %vm125_vm1, %v3912_v19  ;;  %3560 = vmatprep.subr.msk.mxu0 %vm49_vm0, %v3753_v4 }
  0x22   :  { %3555 = vmatmul.mubr.msk.f32.vlgmr.msra.gmra.mxu0 %vm45_vm2, %v3920_v20  ;;  %1527 = vmatprep.subr.mxu1 %v3736_v0 }
  0x23   :  { %3561 = vmatpush1.msk.msra.mxu0 %vm49_vm0, %v3741_v1  ;;  %1528 = vmatpush1.msra.mxu1 %v3746_v2 }
  0x24   :  { %1561 = vmatprep.mubr.f32.mxu1 %v3658_v3  ;;  %1487 = vmatprep.mubr.f32.mxu0 %v3658_v3 }
  0x25   :  { %3563 = vmatmul.mubr.msk.f32.vlgmr.msra.gmra.mxu1 %vm125_vm1, %v3934_v21  ;;  %3567 = vmatprep.subr.msk.mxu0 %vm49_vm0, %v3753_v4 }
  0x26   :  { %3562 = vmatmul.mubr.msk.f32.vlgmr.msra.gmra.mxu0 %vm45_vm2, %v3947_v23  ;;  %1703 = vmatprep.subr.mxu1 %v3736_v0 }
  0x27   :  { %3568 = vmatpush1.msk.msra.mxu0 %vm49_vm0, %v3741_v1  ;;  %1704 = vmatpush1.msra.mxu1 %v3746_v2 }
  0x28   :  { %1737 = vmatprep.mubr.f32.mxu1 %v3658_v3  ;;  %1663 = vmatprep.mubr.f32.mxu0 %v3658_v3 }
  0x29   :  { %3570 = vmatmul.mubr.msk.f32.vlgmr.msra.gmra.mxu1 %vm125_vm1, %v3965_v25  ;;  %3575 = vmatprep.subr.msk.mxu0 %vm49_vm0, %v3957_v24 }
  0x2a   :  { %3569 = vmatmul.mubr.msk.f32.vlgmr.msra.gmra.mxu0 %vm45_vm2, %v3973_v26  ;;  %1902 = vmatprep.subr.mxu1 %v3978_v27 }
  0x2b   :  { %3576 = vmatpush1.msk.msra.mxu0 %vm49_vm0, %v3939_v22  ;;  %1903 = vmatpush1.msra.mxu1 %v3985_v28 }
  0x2c   :  { %1936 = vmatprep.mubr.f32.mxu1 %v3658_v3  ;;  %1865 = vmatprep.mubr.f32.mxu0 %v3658_v3 }
  0x2d   :  { %3578 = vmatmul.mubr.msk.f32.vlgmr.msra.gmra.mxu1 %vm125_vm1, %v3758_v5  ;;  %3581 = vmatprep.subr.msk.mxu0 %vm49_vm0, %v3957_v24 }
  0x2e   :  { %3577 = vmatmul.mubr.msk.f32.vlgmr.msra.gmra.mxu0 %vm45_vm2, %v3764_v6  ;;  %2057 = vmatprep.subr.mxu1 %v3978_v27 }
  0x2f   :  { %3582 = vmatpush1.msk.msra.mxu0 %vm49_vm0, %v3939_v22  ;;  %2058 = vmatpush1.msra.mxu1 %v3985_v28 }
  0x30   :  { %2091 = vmatprep.mubr.f32.mxu1 %v3658_v3  ;;  %2017 = vmatprep.mubr.f32.mxu0 %v3658_v3 }
  0x31   :  { %3584 = vmatmul.mubr.msk.f32.vlgmr.msra.gmra.mxu1 %vm125_vm1, %v3780_v7  ;;  %3587 = vmatprep.subr.msk.mxu0 %vm49_vm0, %v3957_v24 }
  0x32   :  { %3583 = vmatmul.mubr.msk.f32.vlgmr.msra.gmra.mxu0 %vm45_vm2, %v3788_v8  ;;  %2227 = vmatprep.subr.mxu1 %v3978_v27 }
  0x33   :  { %3588 = vmatpush1.msk.msra.mxu0 %vm49_vm0, %v3939_v22  ;;  %2228 = vmatpush1.msra.mxu1 %v3985_v28 }
  0x34   :  { %2261 = vmatprep.mubr.f32.mxu1 %v3658_v3  ;;  %2187 = vmatprep.mubr.f32.mxu0 %v3658_v3 }
  0x35   :  { %3590 = vmatmul.mubr.msk.f32.vlgmr.msra.gmra.mxu1 %vm125_vm1, %v3802_v9  ;;  %3594 = vmatprep.subr.msk.mxu0 %vm49_vm0, %v3957_v24 }
  0x36   :  { %3589 = vmatmul.mubr.msk.f32.vlgmr.msra.gmra.mxu0 %vm45_vm2, %v3810_v10  ;;  %2399 = vmatprep.subr.mxu1 %v3978_v27 }
  0x37   :  { %3595 = vmatpush1.msk.msra.mxu0 %vm49_vm0, %v3939_v22  ;;  %2400 = vmatpush1.msra.mxu1 %v3985_v28 }
  0x38   :  { %2433 = vmatprep.mubr.f32.mxu1 %v3658_v3  ;;  %2359 = vmatprep.mubr.f32.mxu0 %v3658_v3 }
  0x39   :  { %3597 = vmatmul.mubr.msk.f32.vlgmr.msra.gmra.mxu1 %vm125_vm1, %v3824_v11  ;;  %3601 = vmatprep.subr.msk.mxu0 %vm49_vm0, %v3957_v24 }
  0x3a   :  { %3596 = vmatmul.mubr.msk.f32.vlgmr.msra.gmra.mxu0 %vm45_vm2, %v3832_v12  ;;  %2571 = vmatprep.subr.mxu1 %v3978_v27 }
  0x3b   :  { %3602 = vmatpush1.msk.msra.mxu0 %vm49_vm0, %v3939_v22  ;;  %2572 = vmatpush1.msra.mxu1 %v3985_v28 }
  0x3c   :  { %2605 = vmatprep.mubr.f32.mxu1 %v3658_v3  ;;  %2531 = vmatprep.mubr.f32.mxu0 %v3658_v3 }
  0x3d   :  { %3604 = vmatmul.mubr.msk.f32.vlgmr.msra.gmra.mxu1 %vm125_vm1, %v3846_v13  ;;  %3608 = vmatprep.subr.msk.mxu0 %vm49_vm0, %v3957_v24 }
  0x3e   :  { %3603 = vmatmul.mubr.msk.f32.vlgmr.msra.gmra.mxu0 %vm45_vm2, %v3854_v14  ;;  %2743 = vmatprep.subr.mxu1 %v3978_v27 }
  0x3f   :  { %3609 = vmatpush1.msk.msra.mxu0 %vm49_vm0, %v3939_v22  ;;  %2744 = vmatpush1.msra.mxu1 %v3985_v28 }
  0x40   :  { %2777 = vmatprep.mubr.f32.mxu1 %v3658_v3  ;;  %2703 = vmatprep.mubr.f32.mxu0 %v3658_v3 }
  0x41   :  { %3611 = vmatmul.mubr.msk.f32.vlgmr.msra.gmra.mxu1 %vm125_vm1, %v3868_v15  ;;  %3614 = vmatprep.subr.msk.mxu0 %vm49_vm0, %v3957_v24 }
  0x42   :  { %3610 = vmatmul.mubr.msk.f32.vlgmr.msra.gmra.mxu0 %vm45_vm2, %v3876_v16  ;;  %2895 = vmatprep.subr.mxu1 %v3978_v27 }
  0x43   :  { %3615 = vmatpush1.msk.msra.mxu0 %vm49_vm0, %v3939_v22  ;;  %2896 = vmatpush1.msra.mxu1 %v3985_v28 }
  0x44   :  { %2929 = vmatprep.mubr.f32.mxu1 %v3658_v3  ;;  %2855 = vmatprep.mubr.f32.mxu0 %v3658_v3 }
  0x45   :  { %3617 = vmatmul.mubr.msk.f32.vlgmr.msra.gmra.mxu1 %vm125_vm1, %v3890_v17  ;;  %3621 = vmatprep.subr.msk.mxu0 %vm49_vm0, %v3957_v24 }
  0x46   :  { %3616 = vmatmul.mubr.msk.f32.vlgmr.msra.gmra.mxu0 %vm45_vm2, %v3898_v18  ;;  %3067 = vmatprep.subr.mxu1 %v3978_v27 }
  0x47   :  { %3622 = vmatpush1.msk.msra.mxu0 %vm49_vm0, %v3939_v22  ;;  %3068 = vmatpush1.msra.mxu1 %v3985_v28 }
  0x48   :  { %3101 = vmatprep.mubr.f32.mxu1 %v3658_v3  ;;  %3027 = vmatprep.mubr.f32.mxu0 %v3658_v3 }
  0x49   :  { %3624 = vmatmul.mubr.msk.f32.vlgmr.msra.gmra.mxu1 %vm125_vm1, %v3912_v19  ;;  %3628 = vmatprep.subr.msk.mxu0 %vm49_vm0, %v3957_v24 }
  0x4a   :  { %3623 = vmatmul.mubr.msk.f32.vlgmr.msra.gmra.mxu0 %vm45_vm2, %v3920_v20  ;;  %3239 = vmatprep.subr.mxu1 %v3978_v27 }
  0x4b   :  { %3629 = vmatpush1.msk.msra.mxu0 %vm49_vm0, %v3939_v22  ;;  %3240 = vmatpush1.msra.mxu1 %v3985_v28 }
  0x4c   :  { %3273 = vmatprep.mubr.f32.mxu1 %v3658_v3  ;;  %3199 = vmatprep.mubr.f32.mxu0 %v3658_v3 }
  0x4d   :  { %3631 = vmatmul.mubr.msk.f32.vlgmr.msra.gmra.mxu1 %vm125_vm1, %v3934_v21  ;;  %3635 = vmatprep.subr.msk.mxu0 %vm49_vm0, %v3957_v24 }
  0x4e   :  { %3630 = vmatmul.mubr.msk.f32.vlgmr.msra.gmra.mxu0 %vm45_vm2, %v3947_v23  ;;  %3411 = vmatprep.subr.mxu1 %v3978_v27 }
  0x4f   :  { %3636 = vmatpush1.msk.msra.mxu0 %vm49_vm0, %v3939_v22  ;;  %3371 = vmatprep.mubr.f32.mxu0 %v3658_v3 }
  0x50   :  { %3412 = vmatpush1.msra.mxu1 %v3985_v28  ;;  %3445 = vmatprep.mubr.f32.mxu1 %v3658_v3 }
  0x51   :  { %3638 = vmatmul.mubr.msk.f32.vlgmr.msra.gmra.mxu1 %vm125_vm1, %v3965_v25 }
  0x52   :  { %3637 = vmatmul.mubr.msk.f32.vlgmr.msra.gmra.mxu0 %vm45_vm2, %v3973_v26 }
  0xc4   :  { %v195_v30 = vpop.f32.mrf.mxu1 }
  0xc6   :  { %v120_v31 = vpop.f32.mrf.mxu0  ;;  %v197_v32 = vpop.f32.mrf.mxu1 }
  0xc7   :  { %v4111_v33 = vadd.f32 %v195_v30, %v120_v31 }
  0xc8   :  { %v122_v34 = vpop.f32.mrf.mxu0 }
  0xc9   :  { %v4113_v35 = vadd.f32 %v197_v32, %v122_v34  ;;  %v354_v36 = vpop.f32.mrf.mxu1 }
  0xca   :  { %v280_v37 = vpop.f32.mrf.mxu0 }
  0xcb   :  { %v355_v38 = vadd.f32 %v354_v36, %v280_v37  ;;  %v356_v39 = vpop.f32.mrf.mxu1 }
  0xcc   :  { %v282_v40 = vpop.f32.mrf.mxu0 }
  0xcd   :  { %v529_v41 = vpop.f32.mrf.mxu1  ;;  %359 = vrot.lane.b32.xlu0 %v355_v38, %s3660_s1  ;;  %v357_v43 = vadd.f32 %v356_v39, %v282_v40 }
  0xce   :  { %v455_v42 = vpop.f32.mrf.mxu0 }
  0xcf   :  { %v530_v44 = vadd.f32 %v529_v41, %v455_v42  ;;  %v531_v45 = vpop.f32.mrf.mxu1 }
  0xd0   :  { %v457_v46 = vpop.f32.mrf.mxu0 }
  0xd1   :  { %v705_v47 = vpop.f32.mrf.mxu1  ;;  %534 = vrot.lane.b32.xlu1 %v530_v44, %s3661_s7  ;;  %361 = vrot.lane.b32.xlu0 %v357_v43, %s3660_s1  ;;  %v532_v49 = vadd.f32 %v531_v45, %v457_v46 }
  0xd2   :  { %v631_v48 = vpop.f32.mrf.mxu0 }
  0xd3   :  { %v706_v50 = vadd.f32 %v705_v47, %v631_v48  ;;  %v707_v51 = vpop.f32.mrf.mxu1 }
  0xd4   :  { %v633_v52 = vpop.f32.mrf.mxu0 }
  0xd5   :  { %v881_v53 = vpop.f32.mrf.mxu1  ;;  %536 = vrot.lane.b32.xlu1 %v532_v49, %s3661_s7  ;;  %710 = vrot.lane.b32.xlu0 %v706_v50, %s3662_s3  ;;  %v708_v55 = vadd.f32 %v707_v51, %v633_v52 }
  0xd6   :  { %v807_v54 = vpop.f32.mrf.mxu0 }
  0xd7   :  { %v882_v56 = vadd.f32 %v881_v53, %v807_v54  ;;  %v883_v57 = vpop.f32.mrf.mxu1 }
  0xd8   :  { %v809_v58 = vpop.f32.mrf.mxu0 }
  0xd9   :  { %v1057_v59 = vpop.f32.mrf.mxu1  ;;  %712 = vrot.lane.b32.xlu1 %v708_v55, %s3662_s3  ;;  %886 = vrot.lane.b32.xlu0 %v882_v56, %s3663_s4  ;;  %v884_v61 = vadd.f32 %v883_v57, %v809_v58 }
  0xda   :  { %v983_v60 = vpop.f32.mrf.mxu0 }
  0xdb   :  { %v4122_v62 = vadd.f32 %v1057_v59, %v983_v60  ;;  %v1059_v63 = vpop.f32.mrf.mxu1 }
  0xdc   :  { %v985_v0 = vpop.f32.mrf.mxu0 }
  0xdd   :  { %v4124_v1 = vadd.f32 %v1059_v63, %v985_v0  ;;  %v1211_v2 = vpop.f32.mrf.mxu1  ;;  %888 = vrot.lane.b32.xlu1 %v884_v61, %s3663_s4 }
  0xde   :  { %v1137_v3 = vpop.f32.mrf.mxu0 }
  0xdf   :  { %v1212_v4 = vadd.f32 %v1211_v2, %v1137_v3  ;;  %v1213_v5 = vpop.f32.mrf.mxu1 }
  0xe0   :  { %v1139_v6 = vpop.f32.mrf.mxu0 }
  0xe1   :  { %v1214_v7 = vadd.f32 %v1213_v5, %v1139_v6  ;;  %v1387_v8 = vpop.f32.mrf.mxu1  ;;  %1216 = vrot.lane.b32.xlu0 %v1212_v4, %s3664_s13 }
  0xe2   :  { %v1313_v9 = vpop.f32.mrf.mxu0 }
  0xe3   :  { %v1388_v10 = vadd.f32 %v1387_v8, %v1313_v9  ;;  %v1389_v11 = vpop.f32.mrf.mxu1  ;;  %1218 = vrot.lane.b32.xlu1 %v1214_v7, %s3664_s13 }
  0xe4   :  { %v1315_v12 = vpop.f32.mrf.mxu0 }
  0xe5   :  { %v1390_v13 = vadd.f32 %v1389_v11, %v1315_v12  ;;  %v1563_v14 = vpop.f32.mrf.mxu1  ;;  %1392 = vrot.lane.b32.xlu0 %v1388_v10, %s3665_s14 }
  0xe6   :  { %v1489_v15 = vpop.f32.mrf.mxu0 }
  0xe7   :  { %v1564_v16 = vadd.f32 %v1563_v14, %v1489_v15  ;;  %v1565_v17 = vpop.f32.mrf.mxu1  ;;  %1394 = vrot.lane.b32.xlu1 %v1390_v13, %s3665_s14 }
  0xe8   :  { %v1491_v18 = vpop.f32.mrf.mxu0 }
  0xe9   :  { %v1566_v19 = vadd.f32 %v1565_v17, %v1491_v18  ;;  %v1739_v20 = vpop.f32.mrf.mxu1  ;;  %1568 = vrot.lane.b32.xlu0 %v1564_v16, %s3666_s15 }
  0xea   :  { %v1665_v21 = vpop.f32.mrf.mxu0 }
  0xeb   :  { %v1740_v22 = vadd.f32 %v1739_v20, %v1665_v21  ;;  %v1741_v23 = vpop.f32.mrf.mxu1  ;;  %1570 = vrot.lane.b32.xlu1 %v1566_v19, %s3666_s15 }
  0xec   :  { %v1667_v24 = vpop.f32.mrf.mxu0 }
  0xed   :  { %v1742_v25 = vadd.f32 %v1741_v23, %v1667_v24  ;;  %v1938_v26 = vpop.f32.mrf.mxu1  ;;  %1744 = vrot.lane.b32.xlu0 %v1740_v22, %s3667_s16  ;;  %v39_v22 = vld [vmem:[%s4509_s8] sm:$0xff] }
  0xee   :  { %v1867_v27 = vpop.f32.mrf.mxu0 }
  0xef   :  { %v4134_v28 = vadd.f32 %v1938_v26, %v1867_v27  ;;  %v1940_v29 = vpop.f32.mrf.mxu1  ;;  %1746 = vrot.lane.b32.xlu1 %v1742_v25, %s3667_s16 }
  0xf0   :  { %v1869_v30 = vpop.f32.mrf.mxu0 }
  0xf1   :  { %v4137_v31 = vadd.f32 %v1940_v29, %v1869_v30  ;;  %v2093_v32 = vpop.f32.mrf.mxu1 }
  0xf2   :  { %v2019_v34 = vpop.f32.mrf.mxu0 }
  0xf3   :  { %v2094_v36 = vadd.f32 %v2093_v32, %v2019_v34  ;;  %v2095_v37 = vpop.f32.mrf.mxu1 }
  0xf4   :  { %v2021_v38 = vpop.f32.mrf.mxu0 }
  0xf5   :  { %v2096_v39 = vadd.f32 %v2095_v37, %v2021_v38  ;;  %v2263_v40 = vpop.f32.mrf.mxu1  ;;  %2098 = vrot.lane.b32.xlu0 %v2094_v36, %s3660_s1 }
  0xf6   :  { %v2189_v41 = vpop.f32.mrf.mxu0 }
  0xf7   :  { %v2264_v42 = vadd.f32 %v2263_v40, %v2189_v41  ;;  %v2265_v43 = vpop.f32.mrf.mxu1  ;;  %2100 = vrot.lane.b32.xlu1 %v2096_v39, %s3660_s1 }
  0xf8   :  { %v2191_v44 = vpop.f32.mrf.mxu0 }
  0xf9   :  { %v2266_v45 = vadd.f32 %v2265_v43, %v2191_v44  ;;  %v2435_v46 = vpop.f32.mrf.mxu1  ;;  %2268 = vrot.lane.b32.xlu0 %v2264_v42, %s3661_s7 }
  0xfa   :  { %v2361_v47 = vpop.f32.mrf.mxu0 }
  0xfb   :  { %v2436_v48 = vadd.f32 %v2435_v46, %v2361_v47  ;;  %v2437_v49 = vpop.f32.mrf.mxu1  ;;  %2270 = vrot.lane.b32.xlu1 %v2266_v45, %s3661_s7  ;;  %v363_v45 = vlaneseq }
  0xfc   :  { %v2363_v50 = vpop.f32.mrf.mxu0 }
  0xfd   :  { %v2438_v51 = vadd.f32 %v2437_v49, %v2363_v50  ;;  %v2607_v52 = vpop.f32.mrf.mxu1  ;;  %2440 = vrot.lane.b32.xlu0 %v2436_v48, %s3662_s3  ;;  %v371_v48 = vshrl.u32 %v363_v45, 7 }
  0xfe   :  { %v2533_v53 = vpop.f32.mrf.mxu0 }
  0xff   :  { %v2608_v54 = vadd.f32 %v2607_v52, %v2533_v53  ;;  %v2609_v55 = vpop.f32.mrf.mxu1  ;;  %2442 = vrot.lane.b32.xlu1 %v2438_v51, %s3662_s3  ;;  %v4186_v51 = vand.u32 127, %v363_v45  ;;  %v4188_v52 = vsub.s32 0, %v371_v48  ;;  %v4190_v53 = vsub.s32 1, %v371_v48 }
 0x100   :  { %v2535_v56 = vpop.f32.mrf.mxu0 }
 0x101   :  { %v2610_v57 = vadd.f32 %v2609_v55, %v2535_v56  ;;  %v2779_v58 = vpop.f32.mrf.mxu1  ;;  %2612 = vrot.lane.b32.xlu0 %v2608_v54, %s3663_s4  ;;  %v368_v54 = vld [vmem:[%s4510_s0] sm:$0x3]  ;;  %v3523_v56 = vld [vmem:[%s4510_s0 + $0x2] sm:$0x3]  ;;  %vm365_vm3 = vcmp.lt.s32.totalorder %v4186_v51, 17  ;;  %vm538_vm4 = vcmp.lt.s32.totalorder %v4186_v51, 16 }
 0x102   :  { %v2705_v59 = vpop.f32.mrf.mxu0  ;;  %vm714_vm5 = vcmp.lt.s32.totalorder %v4186_v51, 15  ;;  %vm890_vm6 = vcmp.lt.s32.totalorder %v4186_v51, 1  ;;  %vm1220_vm7 = vcmp.lt.s32.totalorder %v4186_v51, 127  ;;  %vm1396_vm8 = vcmp.lt.s32.totalorder %v4186_v51, 113 }
 0x103   :  { %v4146_v60 = vadd.f32 %v2779_v58, %v2705_v59  ;;  %v2781_v61 = vpop.f32.mrf.mxu1  ;;  %2614 = vrot.lane.b32.xlu1 %v2610_v57, %s3663_s4  ;;  %v3530_v57 = vld [vmem:[%s4510_s0 + $0x4] sm:$0x3]  ;;  %v373_v59 = vrot.slane %v368_v54, %v4188_v52  ;;  %vm1572_vm9 = vcmp.lt.s32.totalorder %v4186_v51, 112  ;;  %vm1748_vm10 = vcmp.lt.s32.totalorder %v4186_v51, 111 }
 0x104   :  { %v2707_v63 = vpop.f32.mrf.mxu0 }
 0x105   :  { %v4149_v0 = vadd.f32 %v2781_v61, %v2707_v63  ;;  %v2931_v2 = vpop.f32.mrf.mxu1  ;;  %v4210_v61 = vld [vmem:[%s4510_s0 + $0x6] sm:$0x3]  ;;  %v4215_v63 = vld [vmem:[%s4510_s0 + $0xa] sm:$0x3] }
 0x106   :  { %v2857_v3 = vpop.f32.mrf.mxu0 }
 0x107   :  { %v2932_v4 = vadd.f32 %v2931_v2, %v2857_v3  ;;  %v2933_v5 = vpop.f32.mrf.mxu1  ;;  %v377_v2 = vrot.slane %v368_v54, %v4190_v53  ;;  %v547_v3 = vrot.slane %v3523_v56, %v4188_v52 }
 0x108   :  { %v2859_v6 = vpop.f32.mrf.mxu0 }
 0x109   :  { %v2934_v7 = vadd.f32 %v2933_v5, %v2859_v6  ;;  %v3103_v8 = vpop.f32.mrf.mxu1  ;;  %2936 = vrot.lane.b32.xlu0 %v2932_v4, %s3664_s13  ;;  %v551_v4 = vrot.slane %v3523_v56, %v4190_v53  ;;  %v4224_v5 = vld [vmem:[%s4510_s0 + $0xc] sm:$0x3]  ;;  %v723_v6 = vrot.slane %v3530_v57, %v4188_v52  ;;  %v3598_v56 = vld [vmem:[%s4510_s0 + $0x4] sm:$0x3] }
 0x10a   :  { %v3029_v9 = vpop.f32.mrf.mxu0 }
 0x10b   :  { %v3104_v10 = vadd.f32 %v3103_v8, %v3029_v9  ;;  %v3105_v11 = vpop.f32.mrf.mxu1  ;;  %2938 = vrot.lane.b32.xlu1 %v2934_v7, %s3664_s13  ;;  %v727_v7 = vrot.slane %v3530_v57, %v4190_v53  ;;  %v4233_v8 = vld [vmem:[%s4510_s0 + $0xe] sm:$0x3]  ;;  %v899_v9 = vrot.slane %v4210_v61, %v4188_v52 }
 0x10c   :  { %v3031_v12 = vpop.f32.mrf.mxu0 }
 0x10d   :  { %v3106_v13 = vadd.f32 %v3105_v11, %v3031_v12  ;;  %v3275_v14 = vpop.f32.mrf.mxu1  ;;  %3108 = vrot.lane.b32.xlu0 %v3104_v10, %s3665_s14  ;;  %v903_v10 = vrot.slane %v4210_v61, %v4190_v53  ;;  %v1229_v11 = vrot.slane %v4215_v63, %v4188_v52  ;;  %v1233_v12 = vrot.slane %v4215_v63, %v4190_v53 }
 0x10e   :  { %v3201_v15 = vpop.f32.mrf.mxu0 }
 0x10f   :  { %v3276_v16 = vadd.f32 %v3275_v14, %v3201_v15  ;;  %v3277_v17 = vpop.f32.mrf.mxu1  ;;  %3110 = vrot.lane.b32.xlu1 %v3106_v13, %s3665_s14  ;;  %v4246_v13 = vld [vmem:[%s4510_s0 + $0x10] sm:$0x3] }
 0x110   :  { %v3203_v18 = vpop.f32.mrf.mxu0 }
 0x111   :  { %v3278_v19 = vadd.f32 %v3277_v17, %v3203_v18  ;;  %3280 = vrot.lane.b32.xlu0 %v3276_v16, %s3666_s15  ;;  %v3447_v20 = vpop.f32.mrf.mxu1  ;;  %v1405_v17 = vrot.slane %v4224_v5, %v4188_v52  ;;  %v1409_v18 = vrot.slane %v4224_v5, %v4190_v53 }
 0x112   :  { %v3373_v21 = vpop.f32.mrf.mxu0 }
 0x113   :  { %3282 = vrot.lane.b32.xlu1 %v3278_v19, %s3666_s15  ;;  %v3448_v23 = vadd.f32 %v3447_v20, %v3373_v21  ;;  %v3449_v25 = vpop.f32.mrf.mxu1  ;;  %v4260_v19 = vld [vmem:[%s4510_s0] sm:$0x3] }
 0x114   :  { %v3375_v24 = vpop.f32.mrf.mxu0  ;;  %v2109_v48 = vrot.slane %v4260_v19, %v4188_v52  ;;  %v2113_v54 = vrot.slane %v4260_v19, %v4190_v53 }
 0x115   :  { %1770 = vperm.xlu0 %3654, %v39_v22   ;;  %v3450_v26 = vadd.f32 %v3449_v25, %v3375_v24  ;;  %v3591_v24 = vld [vmem:[%s4510_s0 + $0x2] sm:$0x3] }
 0x116   :  { %v2279_v61 = vrot.slane %v3591_v24, %v4188_v52 }
 0x117   :  { %3452 = vrot.lane.b32.xlu1 %v3448_v23, %s3667_s16 }
 0x11b   :  { %3454 = vrot.lane.b32.xlu1 %v3450_v26, %s3667_s16 }
 0x13f   :  { %v360_v27 = vpop.permute.xlu0 %359 }
 0x143   :  { %v535_v29 = vpop.permute.xlu1 %534  ;;  %v362_v30 = vpop.permute.xlu0 %361 }
 0x144   :  { %v366_v20 = vsel %vm365_vm3, %v360_v27, %v362_v30  ;;  %v367_v21 = vsel %vm365_vm3, %v362_v30, %v360_v27 }
 0x145   :  { %v381_v57 = vmul.f32 %v377_v2, %v366_v20  ;;  %v2451_v20 = vrot.slane %v3598_v56, %v4188_v52 }
 0x147   :  { %v537_v32 = vpop.permute.xlu1 %536  ;;  %v711_v34 = vpop.permute.xlu0 %710 }
 0x148   :  { %v539_v15 = vsel %vm538_vm4, %v535_v29, %v537_v32  ;;  %v540_v16 = vsel %vm538_vm4, %v537_v32, %v535_v29 }
 0x149   :  { %v554_v32 = vmul.f32 %v547_v3, %v540_v16  ;;  %v555_v45 = vmul.f32 %v551_v4, %v539_v15  ;;  %v2283_v3 = vrot.slane %v3591_v24, %v4190_v53  ;;  %v4296_v4 = vld [vmem:[%s4510_s0 + $0xa] sm:$0x3]  ;;  %v4314_v24 = vld [vmem:[%s4510_s0 + $0xc] sm:$0x3] }
 0x14b   :  { %v713_v36 = vpop.permute.xlu1 %712  ;;  %v4162_v37 = vpop.permute.xlu0 %886 }
 0x14c   :  { %v715_v26 = vsel %vm714_vm5, %v711_v34, %v713_v36  ;;  %v716_v29 = vsel %vm714_vm5, %v713_v36, %v711_v34  ;;  %v3605_v34 = vld [vmem:[%s4510_s0 + $0x6] sm:$0x3]  ;;  %v380_v36 = vmul.f32 %v373_v59, %v367_v21  ;;  %v2455_v21 = vrot.slane %v3598_v56, %v4190_v53 }
 0x14d   :  { %v730_v15 = vmul.f32 %v723_v6, %v716_v29  ;;  %v731_v16 = vmul.f32 %v727_v7, %v715_v26  ;;  %v2623_v6 = vrot.slane %v3605_v34, %v4188_v52  ;;  %v2627_v7 = vrot.slane %v3605_v34, %v4190_v53 }
 0x14e   :  { %v556_v26 = vadd.f32 %v554_v32, %v380_v36  ;;  %v557_v29 = vadd.f32 %v555_v45, %v381_v57 }
 0x14f   :  { %v4164_v38 = vpop.permute.xlu1 %888 }
 0x150   :  { %v891_v19 = vsel %vm890_vm6, %v4162_v37, %v4164_v38  ;;  %v892_v59 = vsel %vm890_vm6, %v4164_v38, %v4162_v37  ;;  %v2947_v37 = vrot.slane %v4296_v4, %v4188_v52  ;;  %v732_v45 = vadd.f32 %v730_v15, %v556_v26 }
 0x151   :  { %v906_v27 = vmul.f32 %v899_v9, %v892_v59  ;;  %v907_v56 = vmul.f32 %v903_v10, %v891_v19  ;;  %v733_v36 = vadd.f32 %v731_v16, %v557_v29 }
 0x153   :  { %v4166_v39 = vpop.permute.xlu0 %1216 }
 0x155   :  { %v4168_v40 = vpop.permute.xlu1 %1218 }
 0x156   :  { %v1221_v16 = vsel %vm1220_vm7, %v4166_v39, %v4168_v40  ;;  %v1222_v19 = vsel %vm1220_vm7, %v4168_v40, %v4166_v39  ;;  %v4366_v40 = vld [vmem:[%s4510_s0 + $0x10] sm:$0x3] }
 0x157   :  { %v4170_v41 = vpop.permute.xlu0 %1392  ;;  %v3463_v63 = vrot.slane %v4366_v40, %v4188_v52 }
 0x159   :  { %v4172_v42 = vpop.permute.xlu1 %1394 }
 0x15b   :  { %v4174_v43 = vpop.permute.xlu0 %1568 }
 0x15d   :  { %v4176_v44 = vpop.permute.xlu1 %1570 }
 0x15f   :  { %v4178_v46 = vpop.permute.xlu0 %1744 }
 0x161   :  { %v4180_v47 = vpop.permute.xlu1 %1746 }
 0x167   :  { %v4182_v49 = vpop.permute.xlu0 %2098 }
 0x169   :  { %v4184_v50 = vpop.permute.xlu1 %2100 }
 0x16a   :  { %v2102_v10 = vsel %vm365_vm3, %v4182_v49, %v4184_v50 }
 0x16b   :  { %v4195_v55 = vpop.permute.xlu0 %2268  ;;  %v2117_v22 = vmul.f32 %v2113_v54, %v2102_v10 }
 0x16d   :  { %v4203_v58 = vpop.permute.xlu1 %2270 }
 0x16e   :  { %v2272_v34 = vsel %vm538_vm4, %v4195_v55, %v4203_v58  ;;  %v2273_v32 = vsel %vm538_vm4, %v4203_v58, %v4195_v55  ;;  %v2103_v55 = vsel %vm365_vm3, %v4184_v50, %v4182_v49  ;;  %v4357_v49 = vld [vmem:[%s4510_s0 + $0xe] sm:$0x3]  ;;  %v908_v50 = vadd.f32 %v906_v27, %v732_v45 }
 0x16f   :  { %v2441_v14 = vpop.permute.xlu0 %2440  ;;  %v2286_v59 = vmul.f32 %v2279_v61, %v2273_v32  ;;  %v2287_v26 = vmul.f32 %v2283_v3, %v2272_v34  ;;  %v2116_v23 = vmul.f32 %v2109_v48, %v2103_v55  ;;  %v1236_v27 = vmul.f32 %v1229_v11, %v1221_v16 }
 0x170   :  { %v1237_v61 = vmul.f32 %v1233_v12, %v1222_v19  ;;  %v3295_v48 = vrot.slane %v4357_v49, %v4190_v53  ;;  %v1062_v34 = vadd.f32 %v4122_v62, %v908_v50  ;;  %v3467_v12 = vrot.slane %v4366_v40, %v4190_v53 }
 0x171   :  { %v2443_v25 = vpop.permute.xlu1 %2442  ;;  %v2288_v54 = vadd.f32 %v2286_v59, %v2116_v23  ;;  %v2289_v3 = vadd.f32 %v2287_v26, %v2117_v22  ;;  %v1397_v23 = vsel %vm1396_vm8, %v4170_v41, %v4172_v42  ;;  %v1398_v22 = vsel %vm1396_vm8, %v4172_v42, %v4170_v41 }
 0x172   :  { %v2444_v58 = vsel %vm714_vm5, %v2441_v14, %v2443_v25  ;;  %v2445_v15 = vsel %vm714_vm5, %v2443_v25, %v2441_v14  ;;  %v909_v14 = vadd.f32 %v907_v56, %v733_v36  ;;  %v1573_v36 = vsel %vm1572_vm9, %v4174_v43, %v4176_v44 }
 0x173   :  { %v2613_v2 = vpop.permute.xlu0 %2612  ;;  %v2458_v38 = vmul.f32 %v2451_v20, %v2445_v15  ;;  %v2459_v39 = vmul.f32 %v2455_v21, %v2444_v58  ;;  %v1574_v41 = vsel %vm1572_vm9, %v4176_v44, %v4174_v43  ;;  %v1412_v10 = vmul.f32 %v1405_v17, %v1397_v23 }
 0x174   :  { %v1063_v11 = vadd.f32 %v4124_v1, %v909_v14  ;;  %v1749_v43 = vsel %vm1748_vm10, %v4178_v46, %v4180_v47  ;;  %v1750_v44 = vsel %vm1748_vm10, %v4180_v47, %v4178_v46  ;;  %v4516_v17 = vrot.slane %v4296_v4, %v4190_v53 }
 0x175   :  { %v2615_v30 = vpop.permute.xlu1 %2614  ;;  %v2461_v62 = vadd.f32 %v2459_v39, %v2289_v3  ;;  %v4517_v16 = vrot.slane %v4233_v8, %v4188_v52  ;;  %v4518_v59 = vrot.slane %v4233_v8, %v4190_v53  ;;  %v4520_v50 = vrot.slane %v4314_v24, %v4190_v53 }
 0x176   :  { %v2616_v25 = vsel %vm890_vm6, %v2613_v2, %v2615_v30  ;;  %v2617_v9 = vsel %vm890_vm6, %v2615_v30, %v2613_v2  ;;  %v3291_v30 = vrot.slane %v4357_v49, %v4188_v52  ;;  %v1239_v1 = vadd.f32 %v1237_v61, %v1063_v11 }
 0x177   :  { %v2630_v2 = vmul.f32 %v2623_v6, %v2617_v9  ;;  %v2631_v20 = vmul.f32 %v2627_v7, %v2616_v25  ;;  %v2460_v6 = vadd.f32 %v2458_v38, %v2288_v54  ;;  %v1238_v7 = vadd.f32 %v1236_v27, %v1062_v34 }
 0x178   :  { %v1588_v19 = vmul.f32 %v4517_v16, %v1573_v36  ;;  %v1589_v26 = vmul.f32 %v4518_v59, %v1574_v41  ;;  %v4521_v40 = vrot.slane %v4246_v13, %v4188_v52 }
 0x179   :  { %v2632_v42 = vadd.f32 %v2630_v2, %v2460_v6  ;;  %v2633_v38 = vadd.f32 %v2631_v20, %v2461_v62  ;;  %v1414_v25 = vadd.f32 %v1412_v10, %v1238_v7 }
 0x17a   :  { %v1764_v27 = vmul.f32 %v4521_v40, %v1749_v43 }
 0x17b   :  { %v2937_v57 = vpop.permute.xlu0 %2936  ;;  %v2785_v4 = vadd.f32 %v4149_v0, %v2633_v38  ;;  %v1590_v20 = vadd.f32 %v1588_v19, %v1414_v25 }
 0x17d   :  { %v2939_v29 = vpop.permute.xlu1 %2938  ;;  %v1766_v11 = vadd.f32 %v1764_v27, %v1590_v20 }
 0x17e   :  { %v2940_v32 = vsel %vm1220_vm7, %v2937_v57, %v2939_v29  ;;  %v2941_v45 = vsel %vm1220_vm7, %v2939_v29, %v2937_v57  ;;  %v1413_v57 = vmul.f32 %v1409_v18, %v1398_v22  ;;  %v4519_v29 = vrot.slane %v4314_v24, %v4188_v52 }
 0x17f   :  { %v3109_v21 = vpop.permute.xlu0 %3108  ;;  %v2954_v5 = vmul.f32 %v2947_v37, %v2940_v32  ;;  %v2955_v18 = vmul.f32 %v4516_v17, %v2941_v45  ;;  %v2784_v37 = vadd.f32 %v4146_v60, %v2632_v42  ;;  %v4522_v60 = vrot.slane %v4246_v13, %v4190_v53 }
 0x180   :  { %v1415_v39 = vadd.f32 %v1413_v57, %v1239_v1 }
 0x181   :  { %v3111_v56 = vpop.permute.xlu1 %3110  ;;  %v1765_v61 = vmul.f32 %v4522_v60, %v1750_v44  ;;  %v2956_v0 = vadd.f32 %v2954_v5, %v2784_v37  ;;  %v2957_v54 = vadd.f32 %v2955_v18, %v2785_v4  ;;  %v38_v44 = vld [vmem:[%s4512_s5] sm:$0xff] }
 0x182   :  { %v3112_v55 = vsel %vm1396_vm8, %v3109_v21, %v3111_v56  ;;  %v3113_v58 = vsel %vm1396_vm8, %v3111_v56, %v3109_v21  ;;  %v1591_v21 = vadd.f32 %v1589_v26, %v1415_v39 }
 0x183   :  { %v3281_v15 = vpop.permute.xlu0 %3280  ;;  %v3126_v49 = vmul.f32 %v4519_v29, %v3112_v55  ;;  %v3127_v14 = vmul.f32 %v4520_v50, %v3113_v58 }
 0x184   :  { %v1767_v23 = vadd.f32 %v1765_v61, %v1591_v21 }
 0x185   :  { %v3283_v9 = vpop.permute.xlu1 %3282  ;;  %v3128_v56 = vadd.f32 %v3126_v49, %v2956_v0  ;;  %v3129_v24 = vadd.f32 %v3127_v14, %v2957_v54 }
 0x186   :  { %v3284_v46 = vsel %vm1572_vm9, %v3281_v15, %v3283_v9  ;;  %v3285_v47 = vsel %vm1572_vm9, %v3283_v9, %v3281_v15 }
 0x187   :  { %v3298_v3 = vmul.f32 %v3291_v30, %v3284_v46  ;;  %v3299_v2 = vmul.f32 %v3295_v48, %v3285_v47 }
 0x189   :  { %v3453_v8 = vpop.permute.xlu1 %3452  ;;  %v3300_v6 = vadd.f32 %v3298_v3, %v3128_v56  ;;  %v3301_v53 = vadd.f32 %v3299_v2, %v3129_v24 }
 0x18d   :  { %v3455_v34 = vpop.permute.xlu1 %3454 }
 0x18e   :  { %v3456_v22 = vsel %vm1748_vm10, %v3453_v8, %v3455_v34  ;;  %v3457_v52 = vsel %vm1748_vm10, %v3455_v34, %v3453_v8 }
 0x18f   :  { %v3470_v13 = vmul.f32 %v3463_v63, %v3456_v22  ;;  %v3471_v62 = vmul.f32 %v3467_v12, %v3457_v52 }
 0x190   :  { %v1771_v7 = vpop.permute.xlu0 %1770 }
 0x191   :  { %v3472_v30 = vadd.f32 %v3470_v13, %v3300_v6  ;;  %v3473_v48 = vadd.f32 %v3471_v62, %v3301_v53  ;;  %v1773_v1 = vadd.f32 %v1771_v7, %v1766_v11  ;;  %v1774_v32 = vadd.f32 %v1771_v7, %v1767_v23 }
 0x193   :  { %v3474_v45 = vadd.f32 %v3472_v30, %v1771_v7  ;;  %v3475_v36 = vadd.f32 %v3473_v48, %v1771_v7  ;;  %v1775_v41 = vmax.f32 %v1773_v1, 0.0  ;;  %v1776_v42 = vmax.f32 %v1774_v32, 0.0 }
 0x195   :  { %1778 = vst [vmem:[%s4511_s10 + $0x8] sm:$0xff] %v1776_v42  ;;  %v1779_v38 = vadd.f32 %v1776_v42, %v1775_v41  ;;  %1777 = vst [vmem:[%s4511_s10] sm:$0xff] %v1775_v41  ;;  %v1784_v51 = vmul.f32 %v1775_v41, %v1775_v41  ;;  %v1785_v63 = vmul.f32 %v1776_v42, %v1776_v42  ;;  %v3476_v12 = vmax.f32 %v3474_v45, 0.0 }
 0x196   :  { %v3477_v9 = vmax.f32 %v3475_v36, 0.0 }
 0x197   :  { %1780 = vadd.xlane.f32.xlu0 %v1779_v38  ;;  %v1786_v10 = vadd.f32 %v1785_v63, %v1784_v51  ;;  %3640 = vst [vmem:[%s4511_s10 + $0x10] sm:$0xff] %v3476_v12  ;;  %v3486_v57 = vmul.f32 %v3476_v12, %v3476_v12 }
 0x198   :  { %3641 = vst [vmem:[%s4511_s10 + $0x18] sm:$0xff] %v3477_v9  ;;  %v3481_v55 = vadd.f32 %v3477_v9, %v3476_v12  ;;  %v3487_v58 = vmul.f32 %v3477_v9, %v3477_v9 }
 0x199   :  { %1787 = vadd.xlane.f32.xlu1 %v1786_v10 }
 0x19a   :  { %v3488_v43 = vadd.f32 %v3487_v58, %v3486_v57 }
 0x19b   :  { %3482 = vadd.xlane.f32.xlu0 %v3481_v55 }
 0x19f   :  { %3489 = vadd.xlane.f32.xlu0 %v3488_v43 }
 0x1aa   :  { %202 = vperm.xlu1 %3655, %v38_v44  }
 0x220   :  { %v1781_v5 = vpop.xlane.xlu0 %1780 }
 0x221   :  { %1783 = vst.msk [vmem:[%s4513_s11] sm:$0xff] %vm1782_vm11, %v1781_v5 }
 0x222   :  { %v1788_v17 = vpop.xlane.xlu1 %1787 }
 0x223   :  { %1789 = vst.msk [vmem:[%s4514_s12] sm:$0xff] %vm1782_vm11, %v1788_v17 }
 0x224   :  { %v3483_v18 = vpop.xlane.xlu0 %3482 }
 0x225   :  { %3642 = vst.msk [vmem:[%s4513_s11 + $0x8] sm:$0xff] %vm1782_vm11, %v3483_v18 }
 0x226   :  { %v203_v15 = vpop.permute.xlu1 %202 }
 0x227   :  { %v205_v16 = vadd.f32 %v203_v15, %v4111_v33  ;;  %v206_v19 = vadd.f32 %v203_v15, %v4113_v35  ;;  %v1943_v59 = vadd.f32 %v4134_v28, %v203_v15  ;;  %v1944_v26 = vadd.f32 %v4137_v31, %v203_v15 }
 0x228   :  { %v3490_v46 = vpop.xlane.xlu0 %3489 }
 0x229   :  { %207 = vst [vmem:[%s4515_s9] sm:$0xff] %v205_v16  ;;  %208 = vst [vmem:[%s4515_s9 + $0x8] sm:$0xff] %v206_v19 }
 0x22a   :  { %3579 = vst [vmem:[%s4515_s9 + $0x10] sm:$0xff] %v1943_v59  ;;  %3580 = vst [vmem:[%s4515_s9 + $0x18] sm:$0xff] %v1944_v26 }
 0x22b   :  { %3643 = vst.msk [vmem:[%s4514_s12 + $0x8] sm:$0xff] %vm1782_vm11, %v3490_v46 }

</bundles_post_ra>
